<compile_context>
chip_gen: v6e
topology: v6e:2x2x1
jax: 0.10.0
libtpu: 0.0.40
codegen_flags: <defaults>
</compile_context>

<pallas_src>
import numpy as np
import jax
import jax.numpy as jnp
from jax import lax
from jax.experimental import pallas as pl
from jax.experimental.pallas import tpu as pltpu

# ----------------------------- sizes (small, synthetic) -----------------------------
B = 2                  # real batch
BP = 8                 # batch padded to a full sublane tile
C_IN, IMG = 4, 16      # observation image: (B, 4, 16, 16) NCHW at the boundary
K, STRIDE = 4, 2       # conv kernel / stride (valid padding)
C1, C2 = 8, 16         # conv channels
STOCH, DETER, HID = 16, 32, 32
ACTIONS = 6            # configuration.number_of_possible_actions
O1 = (IMG - K) // STRIDE + 1          # 7
O2 = (O1 - K) // STRIDE + 1           # 2
EMBED = C2 * O2 * O2                  # 64

# --------------------------- packed-layout constants ---------------------------
IMG_FLAT = IMG * IMG * C_IN           # 1024 (NHWC-flattened image)
ONES_LANE = IMG_FLAT                  # constant 1.0 lane -> folds conv1 bias into w1
FIRST_LANE = IMG_FLAT + 1             # per-row is_first flag lane
XW = IMG_FLAT + 128                   # 1152 lane-dense augmented input width

H1W = O1 * O1 * C1 + 8                # 400: conv1 output (392) + bias-carrier lane (col 392)

# state / output slab layout: one lane-dense (BP, 128) f32 slab per step
SL_ACT = 0                            # [0:6]   one-hot action
SL_LOGP = 8                           # [8]     log-probability
SL_STOCH = 16                         # [16:32] stochastic (== posterior mean on eval path)
SL_DETER = 32                         # [32:64] deterministic (GRU state)
SL_STD = 64                           # [64:80] posterior std
SLAB_W = 128

# packed small-weight slab (rows x 128 lanes); each matrix lives at (row_off, 0:out_dim)
OFF_IN = 0        # (128, HID)  state-slab -> hidden (rows 0:6 action, rows 16:32 stoch)
OFF_XR = 128      # (HID, DETER)
OFF_DR = 160      # (DETER, DETER)
OFF_XC = 192
OFF_DC = 224
OFF_XU = 256
OFF_DU = 288
OFF_OBS_D = 320   # (DETER, HID)
OFF_OBS_E = 352   # (EMBED, HID)
OFF_MEAN = 416    # (HID, STOCH)
OFF_STD = 448     # (HID, STOCH)
OFF_A1S = 480     # (STOCH, HID)
OFF_A1D = 496     # (DETER, HID)
OFF_A2 = 528      # (HID, ACTIONS)
P_ROWS = 560

# bias slab rows (16 x 128); biases are zero at init (as in the reference) but kept general
BI_IN, BI_R, BI_C, BI_U, BI_OBS, BI_MEAN, BI_STD, BI_A1, BI_A2 = range(9)
WB_ROWS = 16


# ------------------------------- in-kernel helpers -------------------------------
def _sigmoid(x):
    # 1 / (1 + exp(-x)): exp on the EUP, approx reciprocal also on the EUP (frees the VPU).
    return pl.reciprocal(1.0 + jnp.exp(-x), approx=True)


def _silu(x):
    return x * _sigmoid(x)


def _softplus(x):
    # overflow-safe softplus: max(x, 0) + log(1 + exp(-|x|))
    return jnp.maximum(x, 0.0) + jnp.log(1.0 + jnp.exp(-jnp.abs(x)))


# ---------------------- Pallas kernel: fully fused Dreamer step ----------------------
def _dreamer_step_kernel(x_ref, state_ref, w1_ref, w2_ref, wp_ref, wb_ref, out_ref):
    f32 = jnp.float32

    def dot(a, b):
        return jnp.dot(a, b, preferred_element_type=f32)

    def wmat(off, rows, cols):          # static view into the packed weight slab
        return wp_ref[off:off + rows, 0:cols]

    def bias(row, cols):                # static view into the packed bias slab
        return wb_ref[row:row + 1, 0:cols]

    x = x_ref[...]                                               # (BP, 1152)
    is_first = x_ref[:, FIRST_LANE:FIRST_LANE + 1]               # (BP, 1)
    keep = 1.0 - is_first

    # is_first resets the carried state (prev action / stoch / deter all live in the slab).
    state = state_ref[...] * keep                                # (BP, 128)
    prev_deter = state_ref[:, SL_DETER:SL_DETER + DETER] * keep  # (BP, 32)

    # ---- CNN encoder: two valid convs (stride 2) as dense matmuls; biases folded in via the
    #      constant-1 lane of x (conv1) and the bias-carrier lane of h1 (conv2).
    h1 = jnp.maximum(dot(x, w1_ref[...]), 0.0)                   # (BP, 400)
    embed = jnp.maximum(dot(h1, w2_ref[...]), 0.0)               # (BP, 64)

    # ---- RSSM prior input MLP: [prev_stoch, prev_action] -> hidden (single dot on the slab;
    #      weight rows for the unused slab lanes are zero, so no activation slicing needed).
    xh = _silu(dot(state, wmat(OFF_IN, SLAB_W, HID)) + bias(BI_IN, HID))

    # ---- Dreamer GRU cell: one dot per gate and per source (no concat, no result slicing).
    r = _sigmoid(dot(xh, wmat(OFF_XR, HID, DETER))
                 + dot(prev_deter, wmat(OFF_DR, DETER, DETER)) + bias(BI_R, DETER))
    c = jnp.tanh(r * (dot(xh, wmat(OFF_XC, HID, DETER))
                      + dot(prev_deter, wmat(OFF_DC, DETER, DETER)) + bias(BI_C, DETER)))
    u = _sigmoid(dot(xh, wmat(OFF_XU, HID, DETER))
                 + dot(prev_deter, wmat(OFF_DU, DETER, DETER)) + bias(BI_U, DETER) - 1.0)
    deter = u * c + (1.0 - u) * prev_deter                       # (BP, 32)

    # ---- posterior head: [deter, embedding] -> (mean, std) via split dots.
    h = _silu(dot(deter, wmat(OFF_OBS_D, DETER, HID))
              + dot(embed, wmat(OFF_OBS_E, EMBED, HID)) + bias(BI_OBS, HID))
    mean = dot(h, wmat(OFF_MEAN, HID, STOCH)) + bias(BI_MEAN, STOCH)
    std = _softplus(dot(h, wmat(OFF_STD, HID, STOCH)) + bias(BI_STD, STOCH)) + 0.1
    stoch = mean      # eval path: use_state_mean_for_evaluation -> stochastic = mean

    # ---- actor MLP over features = [stoch, deter] (split dots).
    a = _silu(dot(stoch, wmat(OFF_A1S, STOCH, HID))
              + dot(deter, wmat(OFF_A1D, DETER, HID)) + bias(BI_A1, HID))
    logits = dot(a, wmat(OFF_A2, HID, ACTIONS)) + bias(BI_A2, ACTIONS)   # (BP, 6)

    # ---- action = dist.mode() (one-hot of argmax, first max on ties); log_prob(one-hot).
    mx = jnp.max(logits, axis=-1, keepdims=True)
    iota = lax.broadcasted_iota(jnp.int32, logits.shape, 1)
    first_idx = jnp.min(jnp.where(logits >= mx, iota, ACTIONS), axis=-1, keepdims=True)
    onehot = (iota == first_idx).astype(f32)
    lse = mx + jnp.log(jnp.sum(jnp.exp(logits - mx), axis=-1, keepdims=True))
    logp = jnp.sum(onehot * (logits - lse), axis=-1, keepdims=True)

    # ---- pack everything into one lane-dense output slab: single dense writeback DMA.
    out_ref[...] = jnp.zeros_like(out_ref)
    out_ref[:, SL_ACT:SL_ACT + ACTIONS] = onehot
    out_ref[:, SL_LOGP:SL_LOGP + 1] = logp
    out_ref[:, SL_STOCH:SL_STOCH + STOCH] = mean
    out_ref[:, SL_DETER:SL_DETER + DETER] = deter
    out_ref[:, SL_STD:SL_STD + STOCH] = std


def _fused_step(params, x_aug, state_slab):
    vm = pl.BlockSpec(memory_space=pltpu.MemorySpace.VMEM)
    # No grid: one invocation, everything VMEM-resident (<3 MB total).
    # On v7x a "parallel" batch grid axis would only pay off if batch were scaled up.
    return pl.pallas_call(
        _dreamer_step_kernel,
        out_shape=jax.ShapeDtypeStruct((BP, SLAB_W), jnp.float32),
        in_specs=[vm] * 6,
        out_specs=vm,
    )(x_aug, state_slab, params["w1"], params["w2"], params["wp"], params["wb"])


# ------------------------------------ JAX glue -------------------------------------
@jax.jit
def _forward_jit(params, image, is_first, state_slab):
    # preprocess: image / 255 - 0.5 ; NCHW -> NHWC flat; append bias / is_first lanes; pad batch.
    img = image.astype(jnp.float32) / 255.0 - 0.5
    x = jnp.transpose(img, (0, 2, 3, 1)).reshape(B, IMG_FLAT)
    isf = is_first.astype(jnp.float32).reshape(B, 1)
    tail = jnp.zeros((B, XW - (IMG_FLAT + 2)), jnp.float32)
    x_rows = jnp.concatenate([x, jnp.ones((B, 1), jnp.float32), isf, tail], axis=1)
    pad = (jnp.zeros((BP - B, XW), jnp.float32)
           .at[:, ONES_LANE].set(1.0)
           .at[:, FIRST_LANE].set(1.0))          # padded rows always reset to the zero state
    x_aug = jnp.concatenate([x_rows, pad], axis=0)

    out = _fused_step(params, x_aug, state_slab)

    action = out[:B, SL_ACT:SL_ACT + ACTIONS]
    logp = out[:B, SL_LOGP]
    mean = out[:B, SL_STOCH:SL_STOCH + STOCH]
    deter = out[:B, SL_DETER:SL_DETER + DETER]
    std = out[:B, SL_STD:SL_STD + STOCH]
    return out, action, logp, mean, deter, std


@jax.jit
def _pack_state(stoch, deter, action):
    slab = jnp.zeros((BP, SLAB_W), jnp.float32)
    slab = slab.at[:B, SL_ACT:SL_ACT + ACTIONS].set(action)
    slab = slab.at[:B, SL_STOCH:SL_STOCH + STOCH].set(stoch)
    slab = slab.at[:B, SL_DETER:SL_DETER + DETER].set(deter)
    return slab


def dreamer_agent_forward(params, observation, state=None):
    """Mirrors DreamerAgent._compute_policy (eval / deterministic path)."""
    if state is None:
        state_slab = jnp.zeros((BP, SLAB_W), jnp.float32)
    else:
        latent, prev_action = state
        if "packed" in latent:                   # fast path: thread the packed slab unchanged
            state_slab = latent["packed"]
        else:                                    # fallback: rebuild slab from unpacked fields
            state_slab = _pack_state(latent["stochastic"], latent["deterministic"], prev_action)

    out, action, logp, mean, deter, std = _forward_jit(
        params, observation["image"], observation["is_first"], state_slab)

    latent_state = {"stochastic": mean, "deterministic": deter, "mean": mean, "std": std,
                    "packed": out}
    policy_output = {"action": action, "log_probability": logp}
    new_state = (latent_state, action)
    return policy_output, new_state


# --------------------------------- parameter setup ---------------------------------
def _expand_conv(w, b, in_hw, c_in, k, s, c_out):
    """Valid square conv (NHWC) as a dense block-sparse matmul.

    w: (k*k*c_in, c_out), feature order (ki, kj, cin).
    Returns an (in_hw*in_hw*c_in, oh*oh*c_out) weight and an (oh*oh*c_out,) bias, NHWC-flat.
    """
    oh = (in_hw - k) // s + 1
    w4 = np.asarray(w, np.float32).reshape(k, k, c_in, c_out)
    big = np.zeros((in_hw * in_hw * c_in, oh * oh * c_out), np.float32)
    for oi in range(oh):
        for oj in range(oh):
            col0 = (oi * oh + oj) * c_out
            for ki in range(k):
                for kj in range(k):
                    row0 = ((oi * s + ki) * in_hw + (oj * s + kj)) * c_in
                    big[row0:row0 + c_in, col0:col0 + c_out] = w4[ki, kj]
    b_big = np.tile(np.asarray(b, np.float32).reshape(1, c_out), (oh * oh, 1)).reshape(-1)
    return big, b_big


def init_params(key):
    def dense(k, i, o, scale=0.1):
        return np.asarray(jax.random.normal(k, (i, o), jnp.float32)) * scale

    ks = jax.random.split(key, 17)

    # ---- encoder: expand both conv layers into dense matmul weights (done once at init).
    conv1_w = dense(ks[0], K * K * C_IN, C1)
    conv2_w = dense(ks[1], K * K * C1, C2)
    conv1_b = np.zeros((C1,), np.float32)
    conv2_b = np.zeros((C2,), np.float32)
    c1_big, b1_big = _expand_conv(conv1_w, conv1_b, IMG, C_IN, K, STRIDE, C1)   # (1024, 392)
    c2_big, b2_big = _expand_conv(conv2_w, conv2_b, O1, C1, K, STRIDE, C2)      # (392, 64)

    w1 = np.zeros((XW, H1W), np.float32)
    w1[:IMG_FLAT, :c1_big.shape[1]] = c1_big
    w1[ONES_LANE, :c1_big.shape[1]] = b1_big     # conv1 bias via the constant-1 input lane
    w1[ONES_LANE, c1_big.shape[1]] = 1.0         # bias-carrier lane for conv2
    w2 = np.zeros((H1W, EMBED), np.float32)
    w2[:c2_big.shape[0], :] = c2_big
    w2[c2_big.shape[0], :] = b2_big              # conv2 bias via the bias-carrier lane

    # ---- packed RSSM / actor weight slab.
    wp = np.zeros((P_ROWS, SLAB_W), np.float32)
    # prior input MLP: state slab (action @ lanes 0:6, stoch @ lanes 16:32) -> hidden
    wp[OFF_IN + SL_ACT:OFF_IN + SL_ACT + ACTIONS, :HID] = dense(ks[2], ACTIONS, HID)
    wp[OFF_IN + SL_STOCH:OFF_IN + SL_STOCH + STOCH, :HID] = dense(ks[3], STOCH, HID)
    # GRU gates, split per gate and per source
    wp[OFF_XR:OFF_XR + HID, :DETER] = dense(ks[4], HID, DETER)
    wp[OFF_DR:OFF_DR + DETER, :DETER] = dense(ks[5], DETER, DETER)
    wp[OFF_XC:OFF_XC + HID, :DETER] = dense(ks[6], HID, DETER)
    wp[OFF_DC:OFF_DC + DETER, :DETER] = dense(ks[7], DETER, DETER)
    wp[OFF_XU:OFF_XU + HID, :DETER] = dense(ks[8], HID, DETER)
    wp[OFF_DU:OFF_DU + DETER, :DETER] = dense(ks[9], DETER, DETER)
    # posterior head
    wp[OFF_OBS_D:OFF_OBS_D + DETER, :HID] = dense(ks[10], DETER, HID)
    wp[OFF_OBS_E:OFF_OBS_E + EMBED, :HID] = dense(ks[11], EMBED, HID)
    wp[OFF_MEAN:OFF_MEAN + HID, :STOCH] = dense(ks[12], HID, STOCH)
    wp[OFF_STD:OFF_STD + HID, :STOCH] = dense(ks[13], HID, STOCH)
    # actor
    wp[OFF_A1S:OFF_A1S + STOCH, :HID] = dense(ks[14], STOCH, HID)
    wp[OFF_A1D:OFF_A1D + DETER, :HID] = dense(ks[15], DETER, HID)
    wp[OFF_A2:OFF_A2 + HID, :ACTIONS] = dense(ks[16], HID, ACTIONS)

    # ---- packed bias slab (all biases zero at init, as in the reference implementation).
    wb = np.zeros((WB_ROWS, SLAB_W), np.float32)

    return {"w1": jnp.asarray(w1), "w2": jnp.asarray(w2),
            "wp": jnp.asarray(wp), "wb": jnp.asarray(wb)}


if __name__ == "__main__":
    key = jax.random.PRNGKey(0)
    k_params, k_img = jax.random.split(key)
    params = init_params(k_params)

    image = jax.random.randint(k_img, (B, C_IN, IMG, IMG), 0, 256, dtype=jnp.int32)

    # step 1: no carried state (is_first = 1)
    obs1 = {"image": image, "is_first": jnp.ones((B,), jnp.float32)}
    policy_out, state = dreamer_agent_forward(params, obs1, state=None)
    # step 2: carry the packed state forward (is_first = 0)
    obs2 = {"image": image, "is_first": jnp.zeros((B,), jnp.float32)}
    policy_out2, state2 = dreamer_agent_forward(params, obs2, state=state)

    jax.block_until_ready((policy_out, state, policy_out2, state2))
    assert policy_out["action"].shape == (B, ACTIONS)
    assert policy_out["log_probability"].shape == (B,)
    assert state2[0]["deterministic"].shape == (B, DETER)
    assert bool(jnp.all(jnp.isfinite(state2[0]["std"])))
    assert bool(jnp.allclose(policy_out["action"].sum(axis=-1), 1.0))
    assert bool(jnp.allclose(policy_out2["action"].sum(axis=-1), 1.0))
    print("KERNEL_OK")
</pallas_src>

<mosaic_0001>
module attributes {stable_mosaic.version = 11 : i64} {
  func.func @_dreamer_step_kernel(%arg0: memref<8x1152xf32, #tpu.memory_space<vmem>>, %arg1: memref<8x128xf32, #tpu.memory_space<vmem>>, %arg2: memref<1152x400xf32, #tpu.memory_space<vmem>>, %arg3: memref<400x64xf32, #tpu.memory_space<vmem>>, %arg4: memref<560x128xf32, #tpu.memory_space<vmem>>, %arg5: memref<16x128xf32, #tpu.memory_space<vmem>>, %arg6: memref<8x128xf32, #tpu.memory_space<vmem>>) attributes {dimension_semantics = [], scalar_prefetch = 0 : i64, scratch_operands = 0 : i64, tpu.core_type = #tpu.core_type<tc>} {
    %c0 = arith.constant 0 : index
    %c0_0 = arith.constant 0 : index
    %0 = vector.load %arg0[%c0, %c0_0] : memref<8x1152xf32, #tpu.memory_space<vmem>>, vector<8x1152xf32>
    %c0_1 = arith.constant 0 : index
    %c1025 = arith.constant 1025 : index
    %1 = vector.load %arg0[%c0_1, %c1025] : memref<8x1152xf32, #tpu.memory_space<vmem>>, vector<8x1xf32>
    %cst = arith.constant 1.000000e+00 : f32
    %2 = vector.broadcast %cst : f32 to vector<8x1xf32>
    %3 = arith.subf %2, %1 : vector<8x1xf32>
    %c0_2 = arith.constant 0 : index
    %c0_3 = arith.constant 0 : index
    %4 = vector.load %arg1[%c0_2, %c0_3] : memref<8x128xf32, #tpu.memory_space<vmem>>, vector<8x128xf32>
    %5 = vector.broadcast %3 : vector<8x1xf32> to vector<8x128xf32>
    %6 = arith.mulf %4, %5 : vector<8x128xf32>
    %c0_4 = arith.constant 0 : index
    %c32 = arith.constant 32 : index
    %7 = vector.load %arg1[%c0_4, %c32] : memref<8x128xf32, #tpu.memory_space<vmem>>, vector<8x32xf32>
    %8 = vector.broadcast %3 : vector<8x1xf32> to vector<8x32xf32>
    %9 = arith.mulf %7, %8 : vector<8x32xf32>
    %c0_5 = arith.constant 0 : index
    %c0_6 = arith.constant 0 : index
    %10 = vector.load %arg2[%c0_5, %c0_6] : memref<1152x400xf32, #tpu.memory_space<vmem>>, vector<1152x400xf32>
    %cst_7 = arith.constant dense<0.000000e+00> : vector<8x400xf32>
    %11 = tpu.matmul %0, %10, %cst_7 {dimension_numbers = #tpu.dot_dimension_numbers<[1], [0], [0], [1], [0, 0, 1, 1], [], []>} : vector<8x1152xf32>, vector<1152x400xf32>, vector<8x400xf32> -> vector<8x400xf32>
    %cst_8 = arith.constant 0.000000e+00 : f32
    %12 = vector.broadcast %cst_8 : f32 to vector<8x400xf32>
    %13 = arith.maximumf %11, %12 : vector<8x400xf32>
    %c0_9 = arith.constant 0 : index
    %c0_10 = arith.constant 0 : index
    %14 = vector.load %arg3[%c0_9, %c0_10] : memref<400x64xf32, #tpu.memory_space<vmem>>, vector<400x64xf32>
    %cst_11 = arith.constant dense<0.000000e+00> : vector<8x64xf32>
    %15 = tpu.matmul %13, %14, %cst_11 {dimension_numbers = #tpu.dot_dimension_numbers<[1], [0], [0], [1], [0, 0, 1, 1], [], []>} : vector<8x400xf32>, vector<400x64xf32>, vector<8x64xf32> -> vector<8x64xf32>
    %cst_12 = arith.constant 0.000000e+00 : f32
    %16 = vector.broadcast %cst_12 : f32 to vector<8x64xf32>
    %17 = arith.maximumf %15, %16 : vector<8x64xf32>
    %c0_13 = arith.constant 0 : index
    %c0_14 = arith.constant 0 : index
    %18 = vector.load %arg4[%c0_13, %c0_14] : memref<560x128xf32, #tpu.memory_space<vmem>>, vector<128x32xf32>
    %cst_15 = arith.constant dense<0.000000e+00> : vector<8x32xf32>
    %19 = tpu.matmul %6, %18, %cst_15 {dimension_numbers = #tpu.dot_dimension_numbers<[1], [0], [0], [1], [0, 0, 1, 1], [], []>} : vector<8x128xf32>, vector<128x32xf32>, vector<8x32xf32> -> vector<8x32xf32>
    %c0_16 = arith.constant 0 : index
    %c0_17 = arith.constant 0 : index
    %20 = vector.load %arg5[%c0_16, %c0_17] : memref<16x128xf32, #tpu.memory_space<vmem>>, vector<1x32xf32>
    %21 = vector.broadcast %20 : vector<1x32xf32> to vector<8x32xf32>
    %22 = arith.addf %19, %21 : vector<8x32xf32>
    %cst_18 = arith.constant 0.000000e+00 : f32
    %23 = vector.broadcast %cst_18 : f32 to vector<8x32xf32>
    %24 = arith.subf %23, %22 : vector<8x32xf32>
    %25 = math.exp %24 : vector<8x32xf32>
    %cst_19 = arith.constant 1.000000e+00 : f32
    %26 = vector.broadcast %cst_19 : f32 to vector<8x32xf32>
    %27 = arith.addf %26, %25 : vector<8x32xf32>
    %28 = tpu.reciprocal %27 {approx = true} : vector<8x32xf32> -> vector<8x32xf32>
    %29 = arith.mulf %22, %28 : vector<8x32xf32>
    %c128 = arith.constant 128 : index
    %c0_20 = arith.constant 0 : index
    %30 = vector.load %arg4[%c128, %c0_20] : memref<560x128xf32, #tpu.memory_space<vmem>>, vector<32x32xf32>
    %cst_21 = arith.constant dense<0.000000e+00> : vector<8x32xf32>
    %31 = tpu.matmul %29, %30, %cst_21 {dimension_numbers = #tpu.dot_dimension_numbers<[1], [0], [0], [1], [0, 0, 1, 1], [], []>} : vector<8x32xf32>, vector<32x32xf32>, vector<8x32xf32> -> vector<8x32xf32>
    %c160 = arith.constant 160 : index
    %c0_22 = arith.constant 0 : index
    %32 = vector.load %arg4[%c160, %c0_22] : memref<560x128xf32, #tpu.memory_space<vmem>>, vector<32x32xf32>
    %cst_23 = arith.constant dense<0.000000e+00> : vector<8x32xf32>
    %33 = tpu.matmul %9, %32, %cst_23 {dimension_numbers = #tpu.dot_dimension_numbers<[1], [0], [0], [1], [0, 0, 1, 1], [], []>} : vector<8x32xf32>, vector<32x32xf32>, vector<8x32xf32> -> vector<8x32xf32>
    %34 = arith.addf %31, %33 : vector<8x32xf32>
    %c1 = arith.constant 1 : index
    %c0_24 = arith.constant 0 : index
    %35 = vector.load %arg5[%c1, %c0_24] : memref<16x128xf32, #tpu.memory_space<vmem>>, vector<1x32xf32>
    %36 = vector.broadcast %35 : vector<1x32xf32> to vector<8x32xf32>
    %37 = arith.addf %34, %36 : vector<8x32xf32>
    %cst_25 = arith.constant 0.000000e+00 : f32
    %38 = vector.broadcast %cst_25 : f32 to vector<8x32xf32>
    %39 = arith.subf %38, %37 : vector<8x32xf32>
    %40 = math.exp %39 : vector<8x32xf32>
    %cst_26 = arith.constant 1.000000e+00 : f32
    %41 = vector.broadcast %cst_26 : f32 to vector<8x32xf32>
    %42 = arith.addf %41, %40 : vector<8x32xf32>
    %43 = tpu.reciprocal %42 {approx = true} : vector<8x32xf32> -> vector<8x32xf32>
    %c192 = arith.constant 192 : index
    %c0_27 = arith.constant 0 : index
    %44 = vector.load %arg4[%c192, %c0_27] : memref<560x128xf32, #tpu.memory_space<vmem>>, vector<32x32xf32>
    %cst_28 = arith.constant dense<0.000000e+00> : vector<8x32xf32>
    %45 = tpu.matmul %29, %44, %cst_28 {dimension_numbers = #tpu.dot_dimension_numbers<[1], [0], [0], [1], [0, 0, 1, 1], [], []>} : vector<8x32xf32>, vector<32x32xf32>, vector<8x32xf32> -> vector<8x32xf32>
    %c224 = arith.constant 224 : index
    %c0_29 = arith.constant 0 : index
    %46 = vector.load %arg4[%c224, %c0_29] : memref<560x128xf32, #tpu.memory_space<vmem>>, vector<32x32xf32>
    %cst_30 = arith.constant dense<0.000000e+00> : vector<8x32xf32>
    %47 = tpu.matmul %9, %46, %cst_30 {dimension_numbers = #tpu.dot_dimension_numbers<[1], [0], [0], [1], [0, 0, 1, 1], [], []>} : vector<8x32xf32>, vector<32x32xf32>, vector<8x32xf32> -> vector<8x32xf32>
    %48 = arith.addf %45, %47 : vector<8x32xf32>
    %c2 = arith.constant 2 : index
    %c0_31 = arith.constant 0 : index
    %49 = vector.load %arg5[%c2, %c0_31] : memref<16x128xf32, #tpu.memory_space<vmem>>, vector<1x32xf32>
    %50 = vector.broadcast %49 : vector<1x32xf32> to vector<8x32xf32>
    %51 = arith.addf %48, %50 : vector<8x32xf32>
    %52 = arith.mulf %43, %51 : vector<8x32xf32>
    %53 = math.tanh %52 : vector<8x32xf32>
    %c256 = arith.constant 256 : index
    %c0_32 = arith.constant 0 : index
    %54 = vector.load %arg4[%c256, %c0_32] : memref<560x128xf32, #tpu.memory_space<vmem>>, vector<32x32xf32>
    %cst_33 = arith.constant dense<0.000000e+00> : vector<8x32xf32>
    %55 = tpu.matmul %29, %54, %cst_33 {dimension_numbers = #tpu.dot_dimension_numbers<[1], [0], [0], [1], [0, 0, 1, 1], [], []>} : vector<8x32xf32>, vector<32x32xf32>, vector<8x32xf32> -> vector<8x32xf32>
    %c288 = arith.constant 288 : index
    %c0_34 = arith.constant 0 : index
    %56 = vector.load %arg4[%c288, %c0_34] : memref<560x128xf32, #tpu.memory_space<vmem>>, vector<32x32xf32>
    %cst_35 = arith.constant dense<0.000000e+00> : vector<8x32xf32>
    %57 = tpu.matmul %9, %56, %cst_35 {dimension_numbers = #tpu.dot_dimension_numbers<[1], [0], [0], [1], [0, 0, 1, 1], [], []>} : vector<8x32xf32>, vector<32x32xf32>, vector<8x32xf32> -> vector<8x32xf32>
    %58 = arith.addf %55, %57 : vector<8x32xf32>
    %c3 = arith.constant 3 : index
    %c0_36 = arith.constant 0 : index
    %59 = vector.load %arg5[%c3, %c0_36] : memref<16x128xf32, #tpu.memory_space<vmem>>, vector<1x32xf32>
    %60 = vector.broadcast %59 : vector<1x32xf32> to vector<8x32xf32>
    %61 = arith.addf %58, %60 : vector<8x32xf32>
    %cst_37 = arith.constant 1.000000e+00 : f32
    %62 = vector.broadcast %cst_37 : f32 to vector<8x32xf32>
    %63 = arith.subf %61, %62 : vector<8x32xf32>
    %cst_38 = arith.constant 0.000000e+00 : f32
    %64 = vector.broadcast %cst_38 : f32 to vector<8x32xf32>
    %65 = arith.subf %64, %63 : vector<8x32xf32>
    %66 = math.exp %65 : vector<8x32xf32>
    %cst_39 = arith.constant 1.000000e+00 : f32
    %67 = vector.broadcast %cst_39 : f32 to vector<8x32xf32>
    %68 = arith.addf %67, %66 : vector<8x32xf32>
    %69 = tpu.reciprocal %68 {approx = true} : vector<8x32xf32> -> vector<8x32xf32>
    %70 = arith.mulf %69, %53 : vector<8x32xf32>
    %cst_40 = arith.constant 1.000000e+00 : f32
    %71 = vector.broadcast %cst_40 : f32 to vector<8x32xf32>
    %72 = arith.subf %71, %69 : vector<8x32xf32>
    %73 = arith.mulf %72, %9 : vector<8x32xf32>
    %74 = arith.addf %70, %73 : vector<8x32xf32>
    %c320 = arith.constant 320 : index
    %c0_41 = arith.constant 0 : index
    %75 = vector.load %arg4[%c320, %c0_41] : memref<560x128xf32, #tpu.memory_space<vmem>>, vector<32x32xf32>
    %cst_42 = arith.constant dense<0.000000e+00> : vector<8x32xf32>
    %76 = tpu.matmul %74, %75, %cst_42 {dimension_numbers = #tpu.dot_dimension_numbers<[1], [0], [0], [1], [0, 0, 1, 1], [], []>} : vector<8x32xf32>, vector<32x32xf32>, vector<8x32xf32> -> vector<8x32xf32>
    %c352 = arith.constant 352 : index
    %c0_43 = arith.constant 0 : index
    %77 = vector.load %arg4[%c352, %c0_43] : memref<560x128xf32, #tpu.memory_space<vmem>>, vector<64x32xf32>
    %cst_44 = arith.constant dense<0.000000e+00> : vector<8x32xf32>
    %78 = tpu.matmul %17, %77, %cst_44 {dimension_numbers = #tpu.dot_dimension_numbers<[1], [0], [0], [1], [0, 0, 1, 1], [], []>} : vector<8x64xf32>, vector<64x32xf32>, vector<8x32xf32> -> vector<8x32xf32>
    %79 = arith.addf %76, %78 : vector<8x32xf32>
    %c4 = arith.constant 4 : index
    %c0_45 = arith.constant 0 : index
    %80 = vector.load %arg5[%c4, %c0_45] : memref<16x128xf32, #tpu.memory_space<vmem>>, vector<1x32xf32>
    %81 = vector.broadcast %80 : vector<1x32xf32> to vector<8x32xf32>
    %82 = arith.addf %79, %81 : vector<8x32xf32>
    %cst_46 = arith.constant 0.000000e+00 : f32
    %83 = vector.broadcast %cst_46 : f32 to vector<8x32xf32>
    %84 = arith.subf %83, %82 : vector<8x32xf32>
    %85 = math.exp %84 : vector<8x32xf32>
    %cst_47 = arith.constant 1.000000e+00 : f32
    %86 = vector.broadcast %cst_47 : f32 to vector<8x32xf32>
    %87 = arith.addf %86, %85 : vector<8x32xf32>
    %88 = tpu.reciprocal %87 {approx = true} : vector<8x32xf32> -> vector<8x32xf32>
    %89 = arith.mulf %82, %88 : vector<8x32xf32>
    %c416 = arith.constant 416 : index
    %c0_48 = arith.constant 0 : index
    %90 = vector.load %arg4[%c416, %c0_48] : memref<560x128xf32, #tpu.memory_space<vmem>>, vector<32x16xf32>
    %cst_49 = arith.constant dense<0.000000e+00> : vector<8x16xf32>
    %91 = tpu.matmul %89, %90, %cst_49 {dimension_numbers = #tpu.dot_dimension_numbers<[1], [0], [0], [1], [0, 0, 1, 1], [], []>} : vector<8x32xf32>, vector<32x16xf32>, vector<8x16xf32> -> vector<8x16xf32>
    %c5 = arith.constant 5 : index
    %c0_50 = arith.constant 0 : index
    %92 = vector.load %arg5[%c5, %c0_50] : memref<16x128xf32, #tpu.memory_space<vmem>>, vector<1x16xf32>
    %93 = vector.broadcast %92 : vector<1x16xf32> to vector<8x16xf32>
    %94 = arith.addf %91, %93 : vector<8x16xf32>
    %c448 = arith.constant 448 : index
    %c0_51 = arith.constant 0 : index
    %95 = vector.load %arg4[%c448, %c0_51] : memref<560x128xf32, #tpu.memory_space<vmem>>, vector<32x16xf32>
    %cst_52 = arith.constant dense<0.000000e+00> : vector<8x16xf32>
    %96 = tpu.matmul %89, %95, %cst_52 {dimension_numbers = #tpu.dot_dimension_numbers<[1], [0], [0], [1], [0, 0, 1, 1], [], []>} : vector<8x32xf32>, vector<32x16xf32>, vector<8x16xf32> -> vector<8x16xf32>
    %c6 = arith.constant 6 : index
    %c0_53 = arith.constant 0 : index
    %97 = vector.load %arg5[%c6, %c0_53] : memref<16x128xf32, #tpu.memory_space<vmem>>, vector<1x16xf32>
    %98 = vector.broadcast %97 : vector<1x16xf32> to vector<8x16xf32>
    %99 = arith.addf %96, %98 : vector<8x16xf32>
    %cst_54 = arith.constant 0.000000e+00 : f32
    %100 = vector.broadcast %cst_54 : f32 to vector<8x16xf32>
    %101 = arith.maximumf %99, %100 : vector<8x16xf32>
    %102 = math.absf %99 : vector<8x16xf32>
    %cst_55 = arith.constant 0.000000e+00 : f32
    %103 = vector.broadcast %cst_55 : f32 to vector<8x16xf32>
    %104 = arith.subf %103, %102 : vector<8x16xf32>
    %105 = math.exp %104 : vector<8x16xf32>
    %cst_56 = arith.constant 1.000000e+00 : f32
    %106 = vector.broadcast %cst_56 : f32 to vector<8x16xf32>
    %107 = arith.addf %106, %105 : vector<8x16xf32>
    %108 = math.log %107 : vector<8x16xf32>
    %109 = arith.addf %101, %108 : vector<8x16xf32>
    %cst_57 = arith.constant 1.000000e-01 : f32
    %110 = vector.broadcast %cst_57 : f32 to vector<8x16xf32>
    %111 = arith.addf %109, %110 : vector<8x16xf32>
    %c480 = arith.constant 480 : index
    %c0_58 = arith.constant 0 : index
    %112 = vector.load %arg4[%c480, %c0_58] : memref<560x128xf32, #tpu.memory_space<vmem>>, vector<16x32xf32>
    %cst_59 = arith.constant dense<0.000000e+00> : vector<8x32xf32>
    %113 = tpu.matmul %94, %112, %cst_59 {dimension_numbers = #tpu.dot_dimension_numbers<[1], [0], [0], [1], [0, 0, 1, 1], [], []>} : vector<8x16xf32>, vector<16x32xf32>, vector<8x32xf32> -> vector<8x32xf32>
    %c496 = arith.constant 496 : index
    %c0_60 = arith.constant 0 : index
    %114 = vector.load %arg4[%c496, %c0_60] : memref<560x128xf32, #tpu.memory_space<vmem>>, vector<32x32xf32>
    %cst_61 = arith.constant dense<0.000000e+00> : vector<8x32xf32>
    %115 = tpu.matmul %74, %114, %cst_61 {dimension_numbers = #tpu.dot_dimension_numbers<[1], [0], [0], [1], [0, 0, 1, 1], [], []>} : vector<8x32xf32>, vector<32x32xf32>, vector<8x32xf32> -> vector<8x32xf32>
    %116 = arith.addf %113, %115 : vector<8x32xf32>
    %c7 = arith.constant 7 : index
    %c0_62 = arith.constant 0 : index
    %117 = vector.load %arg5[%c7, %c0_62] : memref<16x128xf32, #tpu.memory_space<vmem>>, vector<1x32xf32>
    %118 = vector.broadcast %117 : vector<1x32xf32> to vector<8x32xf32>
    %119 = arith.addf %116, %118 : vector<8x32xf32>
    %cst_63 = arith.constant 0.000000e+00 : f32
    %120 = vector.broadcast %cst_63 : f32 to vector<8x32xf32>
    %121 = arith.subf %120, %119 : vector<8x32xf32>
    %122 = math.exp %121 : vector<8x32xf32>
    %cst_64 = arith.constant 1.000000e+00 : f32
    %123 = vector.broadcast %cst_64 : f32 to vector<8x32xf32>
    %124 = arith.addf %123, %122 : vector<8x32xf32>
    %125 = tpu.reciprocal %124 {approx = true} : vector<8x32xf32> -> vector<8x32xf32>
    %126 = arith.mulf %119, %125 : vector<8x32xf32>
    %c528 = arith.constant 528 : index
    %c0_65 = arith.constant 0 : index
    %127 = vector.load %arg4[%c528, %c0_65] : memref<560x128xf32, #tpu.memory_space<vmem>>, vector<32x6xf32>
    %cst_66 = arith.constant dense<0.000000e+00> : vector<8x6xf32>
    %128 = tpu.matmul %126, %127, %cst_66 {dimension_numbers = #tpu.dot_dimension_numbers<[1], [0], [0], [1], [0, 0, 1, 1], [], []>} : vector<8x32xf32>, vector<32x6xf32>, vector<8x6xf32> -> vector<8x6xf32>
    %c8 = arith.constant 8 : index
    %c0_67 = arith.constant 0 : index
    %129 = vector.load %arg5[%c8, %c0_67] : memref<16x128xf32, #tpu.memory_space<vmem>>, vector<1x6xf32>
    %130 = vector.broadcast %129 : vector<1x6xf32> to vector<8x6xf32>
    %131 = arith.addf %128, %130 : vector<8x6xf32>
    %cst_68 = arith.constant dense<0xFF800000> : vector<8xf32>
    %132 = vector.multi_reduction <maximumf>, %131, %cst_68 [1] : vector<8x6xf32> to vector<8xf32>
    %133 = vector.shape_cast %132 : vector<8xf32> to vector<8x1xf32>
    %134 = tpu.iota {dimensions = array<i32: 1>} : vector<8x6xi32>
    %135 = vector.broadcast %133 : vector<8x1xf32> to vector<8x6xf32>
    %136 = arith.cmpf oge, %131, %135 : vector<8x6xf32>
    %c6_i32 = arith.constant 6 : i32
    %137 = vector.broadcast %c6_i32 : i32 to vector<8x6xi32>
    %138 = arith.select %136, %134, %137 : vector<8x6xi1>, vector<8x6xi32>
    %cst_69 = arith.constant dense<2147483647> : vector<8xi32>
    %139 = vector.multi_reduction <minsi>, %138, %cst_69 [1] : vector<8x6xi32> to vector<8xi32>
    %140 = vector.shape_cast %139 : vector<8xi32> to vector<8x1xi32>
    %141 = vector.broadcast %140 : vector<8x1xi32> to vector<8x6xi32>
    %142 = arith.cmpi eq, %134, %141 : vector<8x6xi32>
    %143 = arith.extui %142 : vector<8x6xi1> to vector<8x6xi32>
    %144 = arith.sitofp %143 : vector<8x6xi32> to vector<8x6xf32>
    %145 = vector.broadcast %133 : vector<8x1xf32> to vector<8x6xf32>
    %146 = arith.subf %131, %145 : vector<8x6xf32>
    %147 = math.exp %146 : vector<8x6xf32>
    %cst_70 = arith.constant dense<0.000000e+00> : vector<8xf32>
    %148 = vector.multi_reduction <add>, %147, %cst_70 [1] : vector<8x6xf32> to vector<8xf32>
    %149 = vector.shape_cast %148 : vector<8xf32> to vector<8x1xf32>
    %150 = math.log %149 : vector<8x1xf32>
    %151 = arith.addf %133, %150 : vector<8x1xf32>
    %152 = vector.broadcast %151 : vector<8x1xf32> to vector<8x6xf32>
    %153 = arith.subf %131, %152 : vector<8x6xf32>
    %154 = arith.mulf %144, %153 : vector<8x6xf32>
    %cst_71 = arith.constant dense<0.000000e+00> : vector<8xf32>
    %155 = vector.multi_reduction <add>, %154, %cst_71 [1] : vector<8x6xf32> to vector<8xf32>
    %156 = vector.shape_cast %155 : vector<8xf32> to vector<8x1xf32>
    %cst_72 = arith.constant 0.000000e+00 : f32
    %157 = vector.broadcast %cst_72 : f32 to vector<8x128xf32>
    %c0_73 = arith.constant 0 : index
    %c0_74 = arith.constant 0 : index
    %158 = vector.load %arg6[%c0_73, %c0_74] : memref<8x128xf32, #tpu.memory_space<vmem>>, vector<8x128xf32>
    tpu.vector_store %arg6[%c0_73, %c0_74], %157 {strides = array<i32>} : memref<8x128xf32, #tpu.memory_space<vmem>>, vector<8x128xf32>,
    %c0_75 = arith.constant 0 : index
    %c0_76 = arith.constant 0 : index
    %159 = vector.load %arg6[%c0_75, %c0_76] : memref<8x128xf32, #tpu.memory_space<vmem>>, vector<8x6xf32>
    tpu.vector_store %arg6[%c0_75, %c0_76], %144 {strides = array<i32>} : memref<8x128xf32, #tpu.memory_space<vmem>>, vector<8x6xf32>,
    %c0_77 = arith.constant 0 : index
    %c8_78 = arith.constant 8 : index
    %160 = vector.load %arg6[%c0_77, %c8_78] : memref<8x128xf32, #tpu.memory_space<vmem>>, vector<8x1xf32>
    tpu.vector_store %arg6[%c0_77, %c8_78], %156 {strides = array<i32>} : memref<8x128xf32, #tpu.memory_space<vmem>>, vector<8x1xf32>,
    %c0_79 = arith.constant 0 : index
    %c16 = arith.constant 16 : index
    %161 = vector.load %arg6[%c0_79, %c16] : memref<8x128xf32, #tpu.memory_space<vmem>>, vector<8x16xf32>
    tpu.vector_store %arg6[%c0_79, %c16], %94 {strides = array<i32>} : memref<8x128xf32, #tpu.memory_space<vmem>>, vector<8x16xf32>,
    %c0_80 = arith.constant 0 : index
    %c32_81 = arith.constant 32 : index
    %162 = vector.load %arg6[%c0_80, %c32_81] : memref<8x128xf32, #tpu.memory_space<vmem>>, vector<8x32xf32>
    tpu.vector_store %arg6[%c0_80, %c32_81], %74 {strides = array<i32>} : memref<8x128xf32, #tpu.memory_space<vmem>>, vector<8x32xf32>,
    %c0_82 = arith.constant 0 : index
    %c64 = arith.constant 64 : index
    %163 = vector.load %arg6[%c0_82, %c64] : memref<8x128xf32, #tpu.memory_space<vmem>>, vector<8x16xf32>
    tpu.vector_store %arg6[%c0_82, %c64], %111 {strides = array<i32>} : memref<8x128xf32, #tpu.memory_space<vmem>>, vector<8x16xf32>,
    return
  }
}

</mosaic_0001>

<bundles_post_ra>
// kernel: _forward_jit.1
= control target key start
LH: loop header
LB: loop body
LE: loop exit
PB: predicated region body
PF: predicated region fallthrough
CT: control target
= control target key end

     0   :  { %vm3135_vm0 = vmmov 0   ;;  %s3136_s13 = smov 96   ;;  %vm1380_vm1 = vcmask 130048   ;;  %vm1633_vm2 = vcmask 261120   ;;  %vm2123_vm3 = vcmask 523264   ;;  %s3137_s21 = smov 16   ;;  %s5524_s2 = inlined_call_operand.vmem [shape: f32[1152,400], index: 2, kind: input, shape index: {}]   ;;  %s5525_s0 = inlined_call_operand.vmem [shape: f32[8,1152], index: 0, kind: input, shape index: {}]   ;;  %s5526_s3 = inlined_call_operand.vmem [shape: f32[400,64], index: 3, kind: input, shape index: {}]   ;;  %s5527_s4 = inlined_call_operand.vmem [shape: f32[560,128], index: 4, kind: input, shape index: {}]   ;;  %s5528_s1 = inlined_call_operand.vmem [shape: f32[8,128], index: 1, kind: input, shape index: {}]   ;;  %s5529_s5 = inlined_call_operand.vmem [shape: f32[16,128], index: 5, kind: input, shape index: {}]   ;;  %s5530_s6 = inlined_call_operand.vmem [shape: f32[8,128], index: 6, kind: output, shape index: {}]  }
   0x1   :  { %v101_v0 = vld [vmem:[%s5524_s2 + $0x1e8] sm:$0xff]  ;;  %v100_v2 = vld [vmem:[%s5524_s2 + $0x1e0] sm:$0xff]  ;;  %vm2696_vm4 = vcmask 48128   ;;  %s3139_s27 = smov 64   ;;  %vm2738_vm8 = vcmask 72768   ;;  %vm2743_vm9 = vcmask 261248  }
   0x2   :  { %v229_v1 = vld [vmem:[%s5524_s2 + $0x5e8] sm:$0xff]  ;;  %616 = vmatprep.subr.mxu0 %v101_v0  ;;  %v228_v3 = vld [vmem:[%s5524_s2 + $0x5e0] sm:$0xff]  ;;  %vm2748_vm10 = vcmask 523520   ;;  %vm2754_vm11 = vcmask 654848  }
   0x3   :  { %687 = vmatprep.subr.mxu1 %v229_v1  ;;  %v97_v4 = vld [vmem:[%s5524_s2 + $0x1c8] sm:$0xff]  ;;  %617 = vmatpush1.msra.mxu0 %v100_v2  ;;  %v96_v6 = vld [vmem:[%s5524_s2 + $0x1c0] sm:$0xff] }
   0x4   :  { %v225_v5 = vld [vmem:[%s5524_s2 + $0x5c8] sm:$0xff]  ;;  %688 = vmatpush1.msra.mxu1 %v228_v3  ;;  %v224_v7 = vld [vmem:[%s5524_s2 + $0x5c0] sm:$0xff]  ;;  %618 = vmatprep.subr.mxu0 %v97_v4 }
   0x5   :  { %v93_v8 = vld [vmem:[%s5524_s2 + $0x1a8] sm:$0xff]  ;;  %689 = vmatprep.subr.mxu1 %v225_v5  ;;  %v92_v10 = vld [vmem:[%s5524_s2 + $0x1a0] sm:$0xff]  ;;  %619 = vmatpush1.msra.mxu0 %v96_v6 }
   0x6   :  { %v221_v9 = vld [vmem:[%s5524_s2 + $0x5a8] sm:$0xff]  ;;  %v220_v11 = vld [vmem:[%s5524_s2 + $0x5a0] sm:$0xff]  ;;  %690 = vmatpush1.msra.mxu1 %v224_v7  ;;  %620 = vmatprep.subr.mxu0 %v93_v8 }
   0x7   :  { %v89_v12 = vld [vmem:[%s5524_s2 + $0x188] sm:$0xff]  ;;  %691 = vmatprep.subr.mxu1 %v221_v9  ;;  %v88_v14 = vld [vmem:[%s5524_s2 + $0x180] sm:$0xff]  ;;  %621 = vmatpush1.msra.mxu0 %v92_v10 }
   0x8   :  { %v217_v13 = vld [vmem:[%s5524_s2 + $0x588] sm:$0xff]  ;;  %v216_v15 = vld [vmem:[%s5524_s2 + $0x580] sm:$0xff]  ;;  %692 = vmatpush1.msra.mxu1 %v220_v11  ;;  %622 = vmatprep.subr.mxu0 %v89_v12 }
   0x9   :  { %v85_v16 = vld [vmem:[%s5524_s2 + $0x168] sm:$0xff]  ;;  %693 = vmatprep.subr.mxu1 %v217_v13  ;;  %v84_v18 = vld [vmem:[%s5524_s2 + $0x160] sm:$0xff]  ;;  %623 = vmatpush1.msra.mxu0 %v88_v14 }
   0xa   :  { %v213_v17 = vld [vmem:[%s5524_s2 + $0x568] sm:$0xff]  ;;  %v212_v19 = vld [vmem:[%s5524_s2 + $0x560] sm:$0xff]  ;;  %694 = vmatpush1.msra.mxu1 %v216_v15  ;;  %624 = vmatprep.subr.mxu0 %v85_v16 }
   0xb   :  { %v81_v20 = vld [vmem:[%s5524_s2 + $0x148] sm:$0xff]  ;;  %695 = vmatprep.subr.mxu1 %v213_v17  ;;  %v80_v22 = vld [vmem:[%s5524_s2 + $0x140] sm:$0xff]  ;;  %625 = vmatpush1.msra.mxu0 %v84_v18 }
   0xc   :  { %v209_v21 = vld [vmem:[%s5524_s2 + $0x548] sm:$0xff]  ;;  %v208_v23 = vld [vmem:[%s5524_s2 + $0x540] sm:$0xff]  ;;  %696 = vmatpush1.msra.mxu1 %v212_v19  ;;  %626 = vmatprep.subr.mxu0 %v81_v20 }
   0xd   :  { %v77_v24 = vld [vmem:[%s5524_s2 + $0x128] sm:$0xff]  ;;  %697 = vmatprep.subr.mxu1 %v209_v21  ;;  %v76_v26 = vld [vmem:[%s5524_s2 + $0x120] sm:$0xff]  ;;  %627 = vmatpush1.msra.mxu0 %v80_v22 }
   0xe   :  { %v205_v25 = vld [vmem:[%s5524_s2 + $0x528] sm:$0xff]  ;;  %v204_v27 = vld [vmem:[%s5524_s2 + $0x520] sm:$0xff]  ;;  %698 = vmatpush1.msra.mxu1 %v208_v23  ;;  %628 = vmatprep.subr.mxu0 %v77_v24 }
   0xf   :  { %v73_v28 = vld [vmem:[%s5524_s2 + $0x108] sm:$0xff]  ;;  %699 = vmatprep.subr.mxu1 %v205_v25  ;;  %v72_v30 = vld [vmem:[%s5524_s2 + $0x100] sm:$0xff]  ;;  %629 = vmatpush1.msra.mxu0 %v76_v26 }
  0x10   :  { %v201_v29 = vld [vmem:[%s5524_s2 + $0x508] sm:$0xff]  ;;  %v200_v31 = vld [vmem:[%s5524_s2 + $0x500] sm:$0xff]  ;;  %700 = vmatpush1.msra.mxu1 %v204_v27  ;;  %630 = vmatprep.subr.mxu0 %v73_v28 }
  0x11   :  { %v69_v32 = vld [vmem:[%s5524_s2 + $0xe8] sm:$0xff]  ;;  %701 = vmatprep.subr.mxu1 %v201_v29  ;;  %v68_v34 = vld [vmem:[%s5524_s2 + $0xe0] sm:$0xff]  ;;  %631 = vmatpush1.msra.mxu0 %v72_v30 }
  0x12   :  { %v197_v33 = vld [vmem:[%s5524_s2 + $0x4e8] sm:$0xff]  ;;  %v196_v35 = vld [vmem:[%s5524_s2 + $0x4e0] sm:$0xff]  ;;  %702 = vmatpush1.msra.mxu1 %v200_v31  ;;  %632 = vmatprep.subr.mxu0 %v69_v32 }
  0x13   :  { %v65_v36 = vld [vmem:[%s5524_s2 + $0xc8] sm:$0xff]  ;;  %703 = vmatprep.subr.mxu1 %v197_v33  ;;  %v64_v38 = vld [vmem:[%s5524_s2 + $0xc0] sm:$0xff]  ;;  %633 = vmatpush1.msra.mxu0 %v68_v34 }
  0x14   :  { %v193_v37 = vld [vmem:[%s5524_s2 + $0x4c8] sm:$0xff]  ;;  %v192_v39 = vld [vmem:[%s5524_s2 + $0x4c0] sm:$0xff]  ;;  %704 = vmatpush1.msra.mxu1 %v196_v35  ;;  %634 = vmatprep.subr.mxu0 %v65_v36 }
  0x15   :  { %v61_v40 = vld [vmem:[%s5524_s2 + $0xa8] sm:$0xff]  ;;  %705 = vmatprep.subr.mxu1 %v193_v37  ;;  %v60_v42 = vld [vmem:[%s5524_s2 + $0xa0] sm:$0xff]  ;;  %635 = vmatpush1.msra.mxu0 %v64_v38 }
  0x16   :  { %v189_v41 = vld [vmem:[%s5524_s2 + $0x4a8] sm:$0xff]  ;;  %v188_v43 = vld [vmem:[%s5524_s2 + $0x4a0] sm:$0xff]  ;;  %706 = vmatpush1.msra.mxu1 %v192_v39  ;;  %636 = vmatprep.subr.mxu0 %v61_v40 }
  0x17   :  { %v57_v44 = vld [vmem:[%s5524_s2 + $0x88] sm:$0xff]  ;;  %707 = vmatprep.subr.mxu1 %v189_v41  ;;  %v56_v46 = vld [vmem:[%s5524_s2 + $0x80] sm:$0xff]  ;;  %637 = vmatpush1.msra.mxu0 %v60_v42 }
  0x18   :  { %v185_v45 = vld [vmem:[%s5524_s2 + $0x488] sm:$0xff]  ;;  %v184_v47 = vld [vmem:[%s5524_s2 + $0x480] sm:$0xff]  ;;  %708 = vmatpush1.msra.mxu1 %v188_v43  ;;  %638 = vmatprep.subr.mxu0 %v57_v44 }
  0x19   :  { %v53_v48 = vld [vmem:[%s5524_s2 + $0x68] sm:$0xff]  ;;  %709 = vmatprep.subr.mxu1 %v185_v45  ;;  %v52_v50 = vld [vmem:[%s5524_s2 + $0x60] sm:$0xff]  ;;  %639 = vmatpush1.msra.mxu0 %v56_v46 }
  0x1a   :  { %v181_v49 = vld [vmem:[%s5524_s2 + $0x468] sm:$0xff]  ;;  %v180_v51 = vld [vmem:[%s5524_s2 + $0x460] sm:$0xff]  ;;  %710 = vmatpush1.msra.mxu1 %v184_v47  ;;  %640 = vmatprep.subr.mxu0 %v53_v48 }
  0x1b   :  { %v49_v52 = vld [vmem:[%s5524_s2 + $0x48] sm:$0xff]  ;;  %711 = vmatprep.subr.mxu1 %v181_v49  ;;  %v48_v54 = vld [vmem:[%s5524_s2 + $0x40] sm:$0xff]  ;;  %641 = vmatpush1.msra.mxu0 %v52_v50 }
  0x1c   :  { %v177_v53 = vld [vmem:[%s5524_s2 + $0x448] sm:$0xff]  ;;  %v176_v55 = vld [vmem:[%s5524_s2 + $0x440] sm:$0xff]  ;;  %712 = vmatpush1.msra.mxu1 %v180_v51  ;;  %642 = vmatprep.subr.mxu0 %v49_v52 }
  0x1d   :  { %v45_v56 = vld [vmem:[%s5524_s2 + $0x28] sm:$0xff]  ;;  %713 = vmatprep.subr.mxu1 %v177_v53  ;;  %v44_v58 = vld [vmem:[%s5524_s2 + $0x20] sm:$0xff]  ;;  %643 = vmatpush1.msra.mxu0 %v48_v54 }
  0x1e   :  { %v173_v57 = vld [vmem:[%s5524_s2 + $0x428] sm:$0xff]  ;;  %v172_v59 = vld [vmem:[%s5524_s2 + $0x420] sm:$0xff]  ;;  %714 = vmatpush1.msra.mxu1 %v176_v55  ;;  %644 = vmatprep.subr.mxu0 %v45_v56 }
  0x1f   :  { %v41_v60 = vld [vmem:[%s5524_s2 + $0x8] sm:$0xff]  ;;  %715 = vmatprep.subr.mxu1 %v173_v57  ;;  %v40_v62 = vld [vmem:[%s5524_s2] sm:$0xff]  ;;  %645 = vmatpush1.msra.mxu0 %v44_v58 }
  0x20   :  { %v169_v61 = vld [vmem:[%s5524_s2 + $0x408] sm:$0xff]  ;;  %v168_v63 = vld [vmem:[%s5524_s2 + $0x400] sm:$0xff]  ;;  %716 = vmatpush1.msra.mxu1 %v172_v59  ;;  %646 = vmatprep.subr.mxu0 %v41_v60 }
  0x21   :  { %v165_v0 = vld [vmem:[%s5524_s2 + $0x3e8] sm:$0xff]  ;;  %717 = vmatprep.subr.mxu1 %v169_v61  ;;  %v164_v2 = vld [vmem:[%s5524_s2 + $0x3e0] sm:$0xff]  ;;  %647 = vmatpush1.msra.mxu0 %v40_v62 }
  0x22   :  { %v293_v1 = vld [vmem:[%s5524_s2 + $0x7e8] sm:$0xff]  ;;  %v292_v3 = vld [vmem:[%s5524_s2 + $0x7e0] sm:$0xff]  ;;  %718 = vmatpush1.msra.mxu1 %v168_v63  ;;  %648 = vmatprep.subr.mxu0 %v165_v0 }
  0x23   :  { %v161_v4 = vld [vmem:[%s5524_s2 + $0x3c8] sm:$0xff]  ;;  %719 = vmatprep.subr.mxu1 %v293_v1  ;;  %v160_v6 = vld [vmem:[%s5524_s2 + $0x3c0] sm:$0xff]  ;;  %649 = vmatpush2.msra.mxu0 %v164_v2  ;;  %v26_v1 = vld [vmem:[%s5525_s0 + $0x18] sm:$0xff] }
  0x24   :  { %v289_v5 = vld [vmem:[%s5524_s2 + $0x7c8] sm:$0xff]  ;;  %v288_v7 = vld [vmem:[%s5524_s2 + $0x7c0] sm:$0xff]  ;;  %720 = vmatpush2.msra.mxu1 %v292_v3  ;;  %650 = vmatprep.subr.mxu0 %v161_v4  ;;  %v25_v3 = vld [vmem:[%s5525_s0 + $0x10] sm:$0xff] }
  0x25   :  { %v157_v8 = vld [vmem:[%s5524_s2 + $0x3a8] sm:$0xff]  ;;  %721 = vmatprep.subr.mxu1 %v289_v5  ;;  %v156_v10 = vld [vmem:[%s5524_s2 + $0x3a0] sm:$0xff]  ;;  %651 = vmatpush2.msra.mxu0 %v160_v6 }
  0x26   :  { %v285_v9 = vld [vmem:[%s5524_s2 + $0x7a8] sm:$0xff]  ;;  %v284_v11 = vld [vmem:[%s5524_s2 + $0x7a0] sm:$0xff]  ;;  %722 = vmatpush2.msra.mxu1 %v288_v7  ;;  %652 = vmatprep.subr.mxu0 %v157_v8 }
  0x27   :  { %v153_v12 = vld [vmem:[%s5524_s2 + $0x388] sm:$0xff]  ;;  %723 = vmatprep.subr.mxu1 %v285_v9  ;;  %v152_v14 = vld [vmem:[%s5524_s2 + $0x380] sm:$0xff]  ;;  %653 = vmatpush2.msra.mxu0 %v156_v10 }
  0x28   :  { %v281_v13 = vld [vmem:[%s5524_s2 + $0x788] sm:$0xff]  ;;  %v280_v15 = vld [vmem:[%s5524_s2 + $0x780] sm:$0xff]  ;;  %724 = vmatpush2.msra.mxu1 %v284_v11  ;;  %654 = vmatprep.subr.mxu0 %v153_v12 }
  0x29   :  { %v149_v16 = vld [vmem:[%s5524_s2 + $0x368] sm:$0xff]  ;;  %725 = vmatprep.subr.mxu1 %v281_v13  ;;  %v148_v18 = vld [vmem:[%s5524_s2 + $0x360] sm:$0xff]  ;;  %655 = vmatpush2.msra.mxu0 %v152_v14 }
  0x2a   :  { %v277_v17 = vld [vmem:[%s5524_s2 + $0x768] sm:$0xff]  ;;  %v276_v19 = vld [vmem:[%s5524_s2 + $0x760] sm:$0xff]  ;;  %726 = vmatpush2.msra.mxu1 %v280_v15  ;;  %656 = vmatprep.subr.mxu0 %v149_v16 }
  0x2b   :  { %v145_v20 = vld [vmem:[%s5524_s2 + $0x348] sm:$0xff]  ;;  %727 = vmatprep.subr.mxu1 %v277_v17  ;;  %v144_v22 = vld [vmem:[%s5524_s2 + $0x340] sm:$0xff]  ;;  %657 = vmatpush2.msra.mxu0 %v148_v18 }
  0x2c   :  { %v273_v21 = vld [vmem:[%s5524_s2 + $0x748] sm:$0xff]  ;;  %v272_v23 = vld [vmem:[%s5524_s2 + $0x740] sm:$0xff]  ;;  %728 = vmatpush2.msra.mxu1 %v276_v19  ;;  %658 = vmatprep.subr.mxu0 %v145_v20 }
  0x2d   :  { %v141_v24 = vld [vmem:[%s5524_s2 + $0x328] sm:$0xff]  ;;  %729 = vmatprep.subr.mxu1 %v273_v21  ;;  %v140_v26 = vld [vmem:[%s5524_s2 + $0x320] sm:$0xff]  ;;  %659 = vmatpush2.msra.mxu0 %v144_v22 }
  0x2e   :  { %v269_v25 = vld [vmem:[%s5524_s2 + $0x728] sm:$0xff]  ;;  %v268_v27 = vld [vmem:[%s5524_s2 + $0x720] sm:$0xff]  ;;  %730 = vmatpush2.msra.mxu1 %v272_v23  ;;  %660 = vmatprep.subr.mxu0 %v141_v24 }
  0x2f   :  { %v137_v28 = vld [vmem:[%s5524_s2 + $0x308] sm:$0xff]  ;;  %731 = vmatprep.subr.mxu1 %v269_v25  ;;  %v136_v30 = vld [vmem:[%s5524_s2 + $0x300] sm:$0xff]  ;;  %661 = vmatpush2.msra.mxu0 %v140_v26 }
  0x30   :  { %v265_v29 = vld [vmem:[%s5524_s2 + $0x708] sm:$0xff]  ;;  %v264_v31 = vld [vmem:[%s5524_s2 + $0x700] sm:$0xff]  ;;  %732 = vmatpush2.msra.mxu1 %v268_v27  ;;  %662 = vmatprep.subr.mxu0 %v137_v28 }
  0x31   :  { %v133_v32 = vld [vmem:[%s5524_s2 + $0x2e8] sm:$0xff]  ;;  %733 = vmatprep.subr.mxu1 %v265_v29  ;;  %v132_v34 = vld [vmem:[%s5524_s2 + $0x2e0] sm:$0xff]  ;;  %663 = vmatpush2.msra.mxu0 %v136_v30 }
  0x32   :  { %v261_v33 = vld [vmem:[%s5524_s2 + $0x6e8] sm:$0xff]  ;;  %v260_v35 = vld [vmem:[%s5524_s2 + $0x6e0] sm:$0xff]  ;;  %734 = vmatpush2.msra.mxu1 %v264_v31  ;;  %664 = vmatprep.subr.mxu0 %v133_v32 }
  0x33   :  { %v129_v36 = vld [vmem:[%s5524_s2 + $0x2c8] sm:$0xff]  ;;  %735 = vmatprep.subr.mxu1 %v261_v33  ;;  %v128_v38 = vld [vmem:[%s5524_s2 + $0x2c0] sm:$0xff]  ;;  %665 = vmatpush2.msra.mxu0 %v132_v34 }
  0x34   :  { %v257_v37 = vld [vmem:[%s5524_s2 + $0x6c8] sm:$0xff]  ;;  %v256_v39 = vld [vmem:[%s5524_s2 + $0x6c0] sm:$0xff]  ;;  %736 = vmatpush2.msra.mxu1 %v260_v35  ;;  %666 = vmatprep.subr.mxu0 %v129_v36 }
  0x35   :  { %v125_v40 = vld [vmem:[%s5524_s2 + $0x2a8] sm:$0xff]  ;;  %737 = vmatprep.subr.mxu1 %v257_v37  ;;  %v124_v42 = vld [vmem:[%s5524_s2 + $0x2a0] sm:$0xff]  ;;  %667 = vmatpush2.msra.mxu0 %v128_v38 }
  0x36   :  { %v253_v41 = vld [vmem:[%s5524_s2 + $0x6a8] sm:$0xff]  ;;  %v252_v43 = vld [vmem:[%s5524_s2 + $0x6a0] sm:$0xff]  ;;  %738 = vmatpush2.msra.mxu1 %v256_v39  ;;  %668 = vmatprep.subr.mxu0 %v125_v40 }
  0x37   :  { %v121_v44 = vld [vmem:[%s5524_s2 + $0x288] sm:$0xff]  ;;  %739 = vmatprep.subr.mxu1 %v253_v41  ;;  %v120_v46 = vld [vmem:[%s5524_s2 + $0x280] sm:$0xff]  ;;  %669 = vmatpush2.msra.mxu0 %v124_v42 }
  0x38   :  { %v249_v45 = vld [vmem:[%s5524_s2 + $0x688] sm:$0xff]  ;;  %v248_v47 = vld [vmem:[%s5524_s2 + $0x680] sm:$0xff]  ;;  %740 = vmatpush2.msra.mxu1 %v252_v43  ;;  %670 = vmatprep.subr.mxu0 %v121_v44 }
  0x39   :  { %v117_v48 = vld [vmem:[%s5524_s2 + $0x268] sm:$0xff]  ;;  %741 = vmatprep.subr.mxu1 %v249_v45  ;;  %v116_v50 = vld [vmem:[%s5524_s2 + $0x260] sm:$0xff]  ;;  %671 = vmatpush2.msra.mxu0 %v120_v46 }
  0x3a   :  { %v245_v49 = vld [vmem:[%s5524_s2 + $0x668] sm:$0xff]  ;;  %v244_v51 = vld [vmem:[%s5524_s2 + $0x660] sm:$0xff]  ;;  %742 = vmatpush2.msra.mxu1 %v248_v47  ;;  %672 = vmatprep.subr.mxu0 %v117_v48 }
  0x3b   :  { %v113_v52 = vld [vmem:[%s5524_s2 + $0x248] sm:$0xff]  ;;  %743 = vmatprep.subr.mxu1 %v245_v49  ;;  %v112_v54 = vld [vmem:[%s5524_s2 + $0x240] sm:$0xff]  ;;  %673 = vmatpush2.msra.mxu0 %v116_v50 }
  0x3c   :  { %v241_v53 = vld [vmem:[%s5524_s2 + $0x648] sm:$0xff]  ;;  %v240_v55 = vld [vmem:[%s5524_s2 + $0x640] sm:$0xff]  ;;  %744 = vmatpush2.msra.mxu1 %v244_v51  ;;  %674 = vmatprep.subr.mxu0 %v113_v52 }
  0x3d   :  { %v109_v56 = vld [vmem:[%s5524_s2 + $0x228] sm:$0xff]  ;;  %745 = vmatprep.subr.mxu1 %v241_v53  ;;  %v108_v58 = vld [vmem:[%s5524_s2 + $0x220] sm:$0xff]  ;;  %675 = vmatpush2.msra.mxu0 %v112_v54 }
  0x3e   :  { %v237_v57 = vld [vmem:[%s5524_s2 + $0x628] sm:$0xff]  ;;  %v236_v59 = vld [vmem:[%s5524_s2 + $0x620] sm:$0xff]  ;;  %746 = vmatpush2.msra.mxu1 %v240_v55  ;;  %676 = vmatprep.subr.mxu0 %v109_v56 }
  0x3f   :  { %v105_v60 = vld [vmem:[%s5524_s2 + $0x208] sm:$0xff]  ;;  %747 = vmatprep.subr.mxu1 %v237_v57  ;;  %v104_v62 = vld [vmem:[%s5524_s2 + $0x200] sm:$0xff]  ;;  %677 = vmatpush2.msra.mxu0 %v108_v58 }
  0x40   :  { %v233_v61 = vld [vmem:[%s5524_s2 + $0x608] sm:$0xff]  ;;  %748 = vmatpush2.msra.mxu1 %v236_v59  ;;  %v232_v0 = vld [vmem:[%s5524_s2 + $0x600] sm:$0xff]  ;;  %678 = vmatprep.subr.mxu0 %v105_v60 }
  0x41   :  { %v24_v63 = vld [vmem:[%s5525_s0 + $0x8] sm:$0xff]  ;;  %749 = vmatprep.subr.mxu1 %v233_v61  ;;  %v23_v2 = vld [vmem:[%s5525_s0] sm:$0xff]  ;;  %679 = vmatpush2.msra.mxu0 %v104_v62 }
  0x42   :  { %680 = vmatprep.mubr.f32.mxu0 %v24_v63  ;;  %v357_v4 = vld [vmem:[%s5524_s2 + $0x9e8] sm:$0xff]  ;;  %750 = vmatpush2.msra.mxu1 %v232_v0  ;;  %v356_v6 = vld [vmem:[%s5524_s2 + $0x9e0] sm:$0xff] }
  0x43   :  { %v485_v5 = vld [vmem:[%s5524_s2 + $0xde8] sm:$0xff]  ;;  %751 = vmatprep.mubr.f32.mxu1 %v26_v1  ;;  %v484_v7 = vld [vmem:[%s5524_s2 + $0xde0] sm:$0xff]  ;;  %681 = vmatmul.mubr.f32.vlgmr.msra.gmra.mxu0 %v23_v2 }
  0x44   :  { %752 = vmatmul.mubr.f32.vlgmr.msra.gmra.mxu1 %v25_v3  ;;  %v353_v8 = vld [vmem:[%s5524_s2 + $0x9c8] sm:$0xff]  ;;  %758 = vmatprep.subr.mxu0 %v357_v4  ;;  %v352_v10 = vld [vmem:[%s5524_s2 + $0x9c0] sm:$0xff] }
  0x45   :  { %v481_v9 = vld [vmem:[%s5524_s2 + $0xdc8] sm:$0xff]  ;;  %829 = vmatprep.subr.mxu1 %v485_v5  ;;  %v480_v11 = vld [vmem:[%s5524_s2 + $0xdc0] sm:$0xff]  ;;  %759 = vmatpush1.msra.mxu0 %v356_v6 }
  0x46   :  { %830 = vmatpush1.msra.mxu1 %v484_v7  ;;  %v349_v12 = vld [vmem:[%s5524_s2 + $0x9a8] sm:$0xff]  ;;  %760 = vmatprep.subr.mxu0 %v353_v8  ;;  %v348_v14 = vld [vmem:[%s5524_s2 + $0x9a0] sm:$0xff] }
  0x47   :  { %v477_v13 = vld [vmem:[%s5524_s2 + $0xda8] sm:$0xff]  ;;  %831 = vmatprep.subr.mxu1 %v481_v9  ;;  %v476_v15 = vld [vmem:[%s5524_s2 + $0xda0] sm:$0xff]  ;;  %761 = vmatpush1.msra.mxu0 %v352_v10 }
  0x48   :  { %832 = vmatpush1.msra.mxu1 %v480_v11  ;;  %v345_v16 = vld [vmem:[%s5524_s2 + $0x988] sm:$0xff]  ;;  %762 = vmatprep.subr.mxu0 %v349_v12  ;;  %v344_v18 = vld [vmem:[%s5524_s2 + $0x980] sm:$0xff] }
  0x49   :  { %v473_v17 = vld [vmem:[%s5524_s2 + $0xd88] sm:$0xff]  ;;  %833 = vmatprep.subr.mxu1 %v477_v13  ;;  %v472_v19 = vld [vmem:[%s5524_s2 + $0xd80] sm:$0xff]  ;;  %763 = vmatpush1.msra.mxu0 %v348_v14 }
  0x4a   :  { %834 = vmatpush1.msra.mxu1 %v476_v15  ;;  %v341_v20 = vld [vmem:[%s5524_s2 + $0x968] sm:$0xff]  ;;  %764 = vmatprep.subr.mxu0 %v345_v16  ;;  %v340_v22 = vld [vmem:[%s5524_s2 + $0x960] sm:$0xff] }
  0x4b   :  { %v469_v21 = vld [vmem:[%s5524_s2 + $0xd68] sm:$0xff]  ;;  %835 = vmatprep.subr.mxu1 %v473_v17  ;;  %v468_v23 = vld [vmem:[%s5524_s2 + $0xd60] sm:$0xff]  ;;  %765 = vmatpush1.msra.mxu0 %v344_v18 }
  0x4c   :  { %836 = vmatpush1.msra.mxu1 %v472_v19  ;;  %v337_v24 = vld [vmem:[%s5524_s2 + $0x948] sm:$0xff]  ;;  %766 = vmatprep.subr.mxu0 %v341_v20  ;;  %v336_v26 = vld [vmem:[%s5524_s2 + $0x940] sm:$0xff] }
  0x4d   :  { %v465_v25 = vld [vmem:[%s5524_s2 + $0xd48] sm:$0xff]  ;;  %837 = vmatprep.subr.mxu1 %v469_v21  ;;  %v464_v27 = vld [vmem:[%s5524_s2 + $0xd40] sm:$0xff]  ;;  %767 = vmatpush1.msra.mxu0 %v340_v22 }
  0x4e   :  { %838 = vmatpush1.msra.mxu1 %v468_v23  ;;  %v333_v28 = vld [vmem:[%s5524_s2 + $0x928] sm:$0xff]  ;;  %768 = vmatprep.subr.mxu0 %v337_v24  ;;  %v332_v30 = vld [vmem:[%s5524_s2 + $0x920] sm:$0xff] }
  0x4f   :  { %v461_v29 = vld [vmem:[%s5524_s2 + $0xd28] sm:$0xff]  ;;  %839 = vmatprep.subr.mxu1 %v465_v25  ;;  %v460_v31 = vld [vmem:[%s5524_s2 + $0xd20] sm:$0xff]  ;;  %769 = vmatpush1.msra.mxu0 %v336_v26 }
  0x50   :  { %840 = vmatpush1.msra.mxu1 %v464_v27  ;;  %v329_v32 = vld [vmem:[%s5524_s2 + $0x908] sm:$0xff]  ;;  %770 = vmatprep.subr.mxu0 %v333_v28  ;;  %v328_v34 = vld [vmem:[%s5524_s2 + $0x900] sm:$0xff] }
  0x51   :  { %v457_v33 = vld [vmem:[%s5524_s2 + $0xd08] sm:$0xff]  ;;  %841 = vmatprep.subr.mxu1 %v461_v29  ;;  %v456_v35 = vld [vmem:[%s5524_s2 + $0xd00] sm:$0xff]  ;;  %771 = vmatpush1.msra.mxu0 %v332_v30 }
  0x52   :  { %842 = vmatpush1.msra.mxu1 %v460_v31  ;;  %v325_v36 = vld [vmem:[%s5524_s2 + $0x8e8] sm:$0xff]  ;;  %772 = vmatprep.subr.mxu0 %v329_v32  ;;  %v324_v38 = vld [vmem:[%s5524_s2 + $0x8e0] sm:$0xff] }
  0x53   :  { %v453_v37 = vld [vmem:[%s5524_s2 + $0xce8] sm:$0xff]  ;;  %843 = vmatprep.subr.mxu1 %v457_v33  ;;  %v452_v39 = vld [vmem:[%s5524_s2 + $0xce0] sm:$0xff]  ;;  %773 = vmatpush1.msra.mxu0 %v328_v34 }
  0x54   :  { %844 = vmatpush1.msra.mxu1 %v456_v35  ;;  %v321_v40 = vld [vmem:[%s5524_s2 + $0x8c8] sm:$0xff]  ;;  %774 = vmatprep.subr.mxu0 %v325_v36  ;;  %v320_v42 = vld [vmem:[%s5524_s2 + $0x8c0] sm:$0xff] }
  0x55   :  { %v449_v41 = vld [vmem:[%s5524_s2 + $0xcc8] sm:$0xff]  ;;  %845 = vmatprep.subr.mxu1 %v453_v37  ;;  %v448_v43 = vld [vmem:[%s5524_s2 + $0xcc0] sm:$0xff]  ;;  %775 = vmatpush1.msra.mxu0 %v324_v38 }
  0x56   :  { %846 = vmatpush1.msra.mxu1 %v452_v39  ;;  %v317_v44 = vld [vmem:[%s5524_s2 + $0x8a8] sm:$0xff]  ;;  %776 = vmatprep.subr.mxu0 %v321_v40  ;;  %v316_v46 = vld [vmem:[%s5524_s2 + $0x8a0] sm:$0xff] }
  0x57   :  { %v445_v45 = vld [vmem:[%s5524_s2 + $0xca8] sm:$0xff]  ;;  %847 = vmatprep.subr.mxu1 %v449_v41  ;;  %v444_v47 = vld [vmem:[%s5524_s2 + $0xca0] sm:$0xff]  ;;  %777 = vmatpush1.msra.mxu0 %v320_v42 }
  0x58   :  { %848 = vmatpush1.msra.mxu1 %v448_v43  ;;  %v313_v48 = vld [vmem:[%s5524_s2 + $0x888] sm:$0xff]  ;;  %778 = vmatprep.subr.mxu0 %v317_v44  ;;  %v312_v50 = vld [vmem:[%s5524_s2 + $0x880] sm:$0xff] }
  0x59   :  { %v441_v49 = vld [vmem:[%s5524_s2 + $0xc88] sm:$0xff]  ;;  %849 = vmatprep.subr.mxu1 %v445_v45  ;;  %v440_v51 = vld [vmem:[%s5524_s2 + $0xc80] sm:$0xff]  ;;  %779 = vmatpush1.msra.mxu0 %v316_v46 }
  0x5a   :  { %850 = vmatpush1.msra.mxu1 %v444_v47  ;;  %v309_v52 = vld [vmem:[%s5524_s2 + $0x868] sm:$0xff]  ;;  %780 = vmatprep.subr.mxu0 %v313_v48  ;;  %v308_v54 = vld [vmem:[%s5524_s2 + $0x860] sm:$0xff] }
  0x5b   :  { %v437_v53 = vld [vmem:[%s5524_s2 + $0xc68] sm:$0xff]  ;;  %851 = vmatprep.subr.mxu1 %v441_v49  ;;  %v436_v55 = vld [vmem:[%s5524_s2 + $0xc60] sm:$0xff]  ;;  %781 = vmatpush1.msra.mxu0 %v312_v50 }
  0x5c   :  { %852 = vmatpush1.msra.mxu1 %v440_v51  ;;  %v305_v56 = vld [vmem:[%s5524_s2 + $0x848] sm:$0xff]  ;;  %782 = vmatprep.subr.mxu0 %v309_v52  ;;  %v304_v58 = vld [vmem:[%s5524_s2 + $0x840] sm:$0xff] }
  0x5d   :  { %v433_v57 = vld [vmem:[%s5524_s2 + $0xc48] sm:$0xff]  ;;  %853 = vmatprep.subr.mxu1 %v437_v53  ;;  %v432_v59 = vld [vmem:[%s5524_s2 + $0xc40] sm:$0xff]  ;;  %783 = vmatpush1.msra.mxu0 %v308_v54 }
  0x5e   :  { %854 = vmatpush1.msra.mxu1 %v436_v55  ;;  %v301_v60 = vld [vmem:[%s5524_s2 + $0x828] sm:$0xff]  ;;  %784 = vmatprep.subr.mxu0 %v305_v56  ;;  %v300_v62 = vld [vmem:[%s5524_s2 + $0x820] sm:$0xff] }
  0x5f   :  { %v429_v61 = vld [vmem:[%s5524_s2 + $0xc28] sm:$0xff]  ;;  %855 = vmatprep.subr.mxu1 %v433_v57  ;;  %v428_v63 = vld [vmem:[%s5524_s2 + $0xc20] sm:$0xff]  ;;  %785 = vmatpush1.msra.mxu0 %v304_v58 }
  0x60   :  { %856 = vmatpush1.msra.mxu1 %v432_v59  ;;  %v297_v0 = vld [vmem:[%s5524_s2 + $0x808] sm:$0xff]  ;;  %786 = vmatprep.subr.mxu0 %v301_v60  ;;  %v296_v2 = vld [vmem:[%s5524_s2 + $0x800] sm:$0xff] }
  0x61   :  { %v425_v1 = vld [vmem:[%s5524_s2 + $0xc08] sm:$0xff]  ;;  %857 = vmatprep.subr.mxu1 %v429_v61  ;;  %v424_v3 = vld [vmem:[%s5524_s2 + $0xc00] sm:$0xff]  ;;  %787 = vmatpush1.msra.mxu0 %v300_v62 }
  0x62   :  { %858 = vmatpush1.msra.mxu1 %v428_v63  ;;  %v421_v4 = vld [vmem:[%s5524_s2 + $0xbe8] sm:$0xff]  ;;  %788 = vmatprep.subr.mxu0 %v297_v0  ;;  %v420_v6 = vld [vmem:[%s5524_s2 + $0xbe0] sm:$0xff] }
  0x63   :  { %v549_v5 = vld [vmem:[%s5524_s2 + $0xfe8] sm:$0xff]  ;;  %859 = vmatprep.subr.mxu1 %v425_v1  ;;  %v548_v7 = vld [vmem:[%s5524_s2 + $0xfe0] sm:$0xff]  ;;  %789 = vmatpush1.msra.mxu0 %v296_v2 }
  0x64   :  { %860 = vmatpush1.msra.mxu1 %v424_v3  ;;  %v417_v8 = vld [vmem:[%s5524_s2 + $0xbc8] sm:$0xff]  ;;  %790 = vmatprep.subr.mxu0 %v421_v4  ;;  %v416_v10 = vld [vmem:[%s5524_s2 + $0xbc0] sm:$0xff] }
  0x65   :  { %v545_v9 = vld [vmem:[%s5524_s2 + $0xfc8] sm:$0xff]  ;;  %861 = vmatprep.subr.mxu1 %v549_v5  ;;  %v544_v11 = vld [vmem:[%s5524_s2 + $0xfc0] sm:$0xff]  ;;  %791 = vmatpush2.msra.mxu0 %v420_v6 }
  0x66   :  { %862 = vmatpush2.msra.mxu1 %v548_v7  ;;  %v413_v12 = vld [vmem:[%s5524_s2 + $0xba8] sm:$0xff]  ;;  %792 = vmatprep.subr.mxu0 %v417_v8  ;;  %v412_v14 = vld [vmem:[%s5524_s2 + $0xba0] sm:$0xff]  ;;  %v30_v7 = vld [vmem:[%s5525_s0 + $0x38] sm:$0xff] }
  0x67   :  { %v541_v13 = vld [vmem:[%s5524_s2 + $0xfa8] sm:$0xff]  ;;  %863 = vmatprep.subr.mxu1 %v545_v9  ;;  %v540_v15 = vld [vmem:[%s5524_s2 + $0xfa0] sm:$0xff]  ;;  %793 = vmatpush2.msra.mxu0 %v416_v10  ;;  %v29_v9 = vld [vmem:[%s5525_s0 + $0x30] sm:$0xff] }
  0x68   :  { %864 = vmatpush2.msra.mxu1 %v544_v11  ;;  %v409_v16 = vld [vmem:[%s5524_s2 + $0xb88] sm:$0xff]  ;;  %794 = vmatprep.subr.mxu0 %v413_v12  ;;  %v408_v18 = vld [vmem:[%s5524_s2 + $0xb80] sm:$0xff]  ;;  %v103_v11 = vld [vmem:[%s5524_s2 + $0x1f8] sm:$0xff] }
  0x69   :  { %v537_v17 = vld [vmem:[%s5524_s2 + $0xf88] sm:$0xff]  ;;  %865 = vmatprep.subr.mxu1 %v541_v13  ;;  %v536_v19 = vld [vmem:[%s5524_s2 + $0xf80] sm:$0xff]  ;;  %795 = vmatpush2.msra.mxu0 %v412_v14  ;;  %v102_v13 = vld [vmem:[%s5524_s2 + $0x1f0] sm:$0xff] }
  0x6a   :  { %866 = vmatpush2.msra.mxu1 %v540_v15  ;;  %v405_v20 = vld [vmem:[%s5524_s2 + $0xb68] sm:$0xff]  ;;  %796 = vmatprep.subr.mxu0 %v409_v16  ;;  %v404_v22 = vld [vmem:[%s5524_s2 + $0xb60] sm:$0xff]  ;;  %v99_v15 = vld [vmem:[%s5524_s2 + $0x1d8] sm:$0xff] }
  0x6b   :  { %v533_v21 = vld [vmem:[%s5524_s2 + $0xf68] sm:$0xff]  ;;  %867 = vmatprep.subr.mxu1 %v537_v17  ;;  %v532_v23 = vld [vmem:[%s5524_s2 + $0xf60] sm:$0xff]  ;;  %797 = vmatpush2.msra.mxu0 %v408_v18  ;;  %v98_v17 = vld [vmem:[%s5524_s2 + $0x1d0] sm:$0xff] }
  0x6c   :  { %868 = vmatpush2.msra.mxu1 %v536_v19  ;;  %v401_v24 = vld [vmem:[%s5524_s2 + $0xb48] sm:$0xff]  ;;  %798 = vmatprep.subr.mxu0 %v405_v20  ;;  %v400_v26 = vld [vmem:[%s5524_s2 + $0xb40] sm:$0xff]  ;;  %v95_v19 = vld [vmem:[%s5524_s2 + $0x1b8] sm:$0xff] }
  0x6d   :  { %v529_v25 = vld [vmem:[%s5524_s2 + $0xf48] sm:$0xff]  ;;  %869 = vmatprep.subr.mxu1 %v533_v21  ;;  %v528_v27 = vld [vmem:[%s5524_s2 + $0xf40] sm:$0xff]  ;;  %799 = vmatpush2.msra.mxu0 %v404_v22  ;;  %v94_v21 = vld [vmem:[%s5524_s2 + $0x1b0] sm:$0xff] }
  0x6e   :  { %870 = vmatpush2.msra.mxu1 %v532_v23  ;;  %v397_v28 = vld [vmem:[%s5524_s2 + $0xb28] sm:$0xff]  ;;  %800 = vmatprep.subr.mxu0 %v401_v24  ;;  %v396_v30 = vld [vmem:[%s5524_s2 + $0xb20] sm:$0xff]  ;;  %v91_v23 = vld [vmem:[%s5524_s2 + $0x198] sm:$0xff] }
  0x6f   :  { %v525_v29 = vld [vmem:[%s5524_s2 + $0xf28] sm:$0xff]  ;;  %871 = vmatprep.subr.mxu1 %v529_v25  ;;  %v524_v31 = vld [vmem:[%s5524_s2 + $0xf20] sm:$0xff]  ;;  %801 = vmatpush2.msra.mxu0 %v400_v26  ;;  %v90_v25 = vld [vmem:[%s5524_s2 + $0x190] sm:$0xff] }
  0x70   :  { %872 = vmatpush2.msra.mxu1 %v528_v27  ;;  %v393_v32 = vld [vmem:[%s5524_s2 + $0xb08] sm:$0xff]  ;;  %802 = vmatprep.subr.mxu0 %v397_v28  ;;  %v392_v34 = vld [vmem:[%s5524_s2 + $0xb00] sm:$0xff]  ;;  %v87_v27 = vld [vmem:[%s5524_s2 + $0x178] sm:$0xff] }
  0x71   :  { %v521_v33 = vld [vmem:[%s5524_s2 + $0xf08] sm:$0xff]  ;;  %873 = vmatprep.subr.mxu1 %v525_v29  ;;  %v520_v35 = vld [vmem:[%s5524_s2 + $0xf00] sm:$0xff]  ;;  %803 = vmatpush2.msra.mxu0 %v396_v30  ;;  %v86_v29 = vld [vmem:[%s5524_s2 + $0x170] sm:$0xff] }
  0x72   :  { %874 = vmatpush2.msra.mxu1 %v524_v31  ;;  %v389_v36 = vld [vmem:[%s5524_s2 + $0xae8] sm:$0xff]  ;;  %804 = vmatprep.subr.mxu0 %v393_v32  ;;  %v388_v38 = vld [vmem:[%s5524_s2 + $0xae0] sm:$0xff]  ;;  %v83_v31 = vld [vmem:[%s5524_s2 + $0x158] sm:$0xff] }
  0x73   :  { %v517_v37 = vld [vmem:[%s5524_s2 + $0xee8] sm:$0xff]  ;;  %875 = vmatprep.subr.mxu1 %v521_v33  ;;  %v516_v39 = vld [vmem:[%s5524_s2 + $0xee0] sm:$0xff]  ;;  %805 = vmatpush2.msra.mxu0 %v392_v34  ;;  %v82_v33 = vld [vmem:[%s5524_s2 + $0x150] sm:$0xff] }
  0x74   :  { %876 = vmatpush2.msra.mxu1 %v520_v35  ;;  %v385_v40 = vld [vmem:[%s5524_s2 + $0xac8] sm:$0xff]  ;;  %806 = vmatprep.subr.mxu0 %v389_v36  ;;  %v384_v42 = vld [vmem:[%s5524_s2 + $0xac0] sm:$0xff]  ;;  %v79_v35 = vld [vmem:[%s5524_s2 + $0x138] sm:$0xff] }
  0x75   :  { %v513_v41 = vld [vmem:[%s5524_s2 + $0xec8] sm:$0xff]  ;;  %877 = vmatprep.subr.mxu1 %v517_v37  ;;  %v512_v43 = vld [vmem:[%s5524_s2 + $0xec0] sm:$0xff]  ;;  %807 = vmatpush2.msra.mxu0 %v388_v38  ;;  %v78_v37 = vld [vmem:[%s5524_s2 + $0x130] sm:$0xff] }
  0x76   :  { %878 = vmatpush2.msra.mxu1 %v516_v39  ;;  %v381_v44 = vld [vmem:[%s5524_s2 + $0xaa8] sm:$0xff]  ;;  %808 = vmatprep.subr.mxu0 %v385_v40  ;;  %v380_v46 = vld [vmem:[%s5524_s2 + $0xaa0] sm:$0xff]  ;;  %v75_v39 = vld [vmem:[%s5524_s2 + $0x118] sm:$0xff] }
  0x77   :  { %v509_v45 = vld [vmem:[%s5524_s2 + $0xea8] sm:$0xff]  ;;  %879 = vmatprep.subr.mxu1 %v513_v41  ;;  %v508_v47 = vld [vmem:[%s5524_s2 + $0xea0] sm:$0xff]  ;;  %809 = vmatpush2.msra.mxu0 %v384_v42  ;;  %v74_v41 = vld [vmem:[%s5524_s2 + $0x110] sm:$0xff] }
  0x78   :  { %880 = vmatpush2.msra.mxu1 %v512_v43  ;;  %v377_v48 = vld [vmem:[%s5524_s2 + $0xa88] sm:$0xff]  ;;  %810 = vmatprep.subr.mxu0 %v381_v44  ;;  %v376_v50 = vld [vmem:[%s5524_s2 + $0xa80] sm:$0xff]  ;;  %v71_v43 = vld [vmem:[%s5524_s2 + $0xf8] sm:$0xff] }
  0x79   :  { %v505_v49 = vld [vmem:[%s5524_s2 + $0xe88] sm:$0xff]  ;;  %881 = vmatprep.subr.mxu1 %v509_v45  ;;  %v504_v51 = vld [vmem:[%s5524_s2 + $0xe80] sm:$0xff]  ;;  %811 = vmatpush2.msra.mxu0 %v380_v46  ;;  %v70_v45 = vld [vmem:[%s5524_s2 + $0xf0] sm:$0xff] }
  0x7a   :  { %882 = vmatpush2.msra.mxu1 %v508_v47  ;;  %v373_v52 = vld [vmem:[%s5524_s2 + $0xa68] sm:$0xff]  ;;  %812 = vmatprep.subr.mxu0 %v377_v48  ;;  %v372_v54 = vld [vmem:[%s5524_s2 + $0xa60] sm:$0xff]  ;;  %v67_v47 = vld [vmem:[%s5524_s2 + $0xd8] sm:$0xff] }
  0x7b   :  { %v501_v53 = vld [vmem:[%s5524_s2 + $0xe68] sm:$0xff]  ;;  %883 = vmatprep.subr.mxu1 %v505_v49  ;;  %v500_v55 = vld [vmem:[%s5524_s2 + $0xe60] sm:$0xff]  ;;  %813 = vmatpush2.msra.mxu0 %v376_v50  ;;  %v66_v49 = vld [vmem:[%s5524_s2 + $0xd0] sm:$0xff] }
  0x7c   :  { %884 = vmatpush2.msra.mxu1 %v504_v51  ;;  %v369_v56 = vld [vmem:[%s5524_s2 + $0xa48] sm:$0xff]  ;;  %814 = vmatprep.subr.mxu0 %v373_v52  ;;  %v368_v58 = vld [vmem:[%s5524_s2 + $0xa40] sm:$0xff]  ;;  %v63_v51 = vld [vmem:[%s5524_s2 + $0xb8] sm:$0xff] }
  0x7d   :  { %v497_v57 = vld [vmem:[%s5524_s2 + $0xe48] sm:$0xff]  ;;  %885 = vmatprep.subr.mxu1 %v501_v53  ;;  %v496_v59 = vld [vmem:[%s5524_s2 + $0xe40] sm:$0xff]  ;;  %815 = vmatpush2.msra.mxu0 %v372_v54  ;;  %v62_v53 = vld [vmem:[%s5524_s2 + $0xb0] sm:$0xff] }
  0x7e   :  { %886 = vmatpush2.msra.mxu1 %v500_v55  ;;  %v365_v60 = vld [vmem:[%s5524_s2 + $0xa28] sm:$0xff]  ;;  %816 = vmatprep.subr.mxu0 %v369_v56  ;;  %v364_v62 = vld [vmem:[%s5524_s2 + $0xa20] sm:$0xff]  ;;  %v59_v55 = vld [vmem:[%s5524_s2 + $0x98] sm:$0xff] }
  0x7f   :  { %v493_v61 = vld [vmem:[%s5524_s2 + $0xe28] sm:$0xff]  ;;  %887 = vmatprep.subr.mxu1 %v497_v57  ;;  %817 = vmatpush2.msra.mxu0 %v368_v58  ;;  %v492_v1 = vld [vmem:[%s5524_s2 + $0xe20] sm:$0xff]  ;;  %v58_v57 = vld [vmem:[%s5524_s2 + $0x90] sm:$0xff] }
  0x80   :  { %v28_v63 = vld [vmem:[%s5525_s0 + $0x28] sm:$0xff]  ;;  %888 = vmatpush2.msra.mxu1 %v496_v59  ;;  %818 = vmatprep.subr.mxu0 %v365_v60  ;;  %v360_v2 = vld [vmem:[%s5524_s2 + $0xa00] sm:$0xff]  ;;  %v55_v59 = vld [vmem:[%s5524_s2 + $0x78] sm:$0xff] }
  0x81   :  { %v361_v0 = vld [vmem:[%s5524_s2 + $0xa08] sm:$0xff]  ;;  %889 = vmatprep.subr.mxu1 %v493_v61  ;;  %819 = vmatpush2.msra.mxu0 %v364_v62  ;;  %v27_v4 = vld [vmem:[%s5525_s0 + $0x20] sm:$0xff]  ;;  %v54_v61 = vld [vmem:[%s5524_s2 + $0x70] sm:$0xff] }
  0x82   :  { %v489_v3 = vld [vmem:[%s5524_s2 + $0xe08] sm:$0xff]  ;;  %822 = vmatprep.mubr.f32.mxu0 %v28_v63  ;;  %820 = vmatprep.subr.mxu0 %v361_v0  ;;  %v488_v6 = vld [vmem:[%s5524_s2 + $0xe00] sm:$0xff]  ;;  %v51_v63 = vld [vmem:[%s5524_s2 + $0x58] sm:$0xff] }
  0x83   :  { %v613_v5 = vld [vmem:[%s5524_s2 + $0x11e8] sm:$0xff]  ;;  %890 = vmatpush2.msra.mxu1 %v492_v1  ;;  %821 = vmatpush2.msra.mxu0 %v360_v2  ;;  %v612_v8 = vld [vmem:[%s5524_s2 + $0x11e0] sm:$0xff]  ;;  %v50_v1 = vld [vmem:[%s5524_s2 + $0x50] sm:$0xff] }
  0x84   :  { %891 = vmatprep.subr.mxu1 %v489_v3  ;;  %823 = vmatmul.mubr.f32.vlgmr.msra.gmra.mxu0 %v27_v4  ;;  %v609_v10 = vld [vmem:[%s5524_s2 + $0x11c8] sm:$0xff]  ;;  %v608_v12 = vld [vmem:[%s5524_s2 + $0x11c0] sm:$0xff]  ;;  %v47_v3 = vld [vmem:[%s5524_s2 + $0x38] sm:$0xff] }
  0x85   :  { %900 = vmatprep.subr.mxu0 %v613_v5  ;;  %892 = vmatpush2.msra.mxu1 %v488_v6  ;;  %v605_v14 = vld [vmem:[%s5524_s2 + $0x11a8] sm:$0xff]  ;;  %v604_v16 = vld [vmem:[%s5524_s2 + $0x11a0] sm:$0xff]  ;;  %v46_v5 = vld [vmem:[%s5524_s2 + $0x30] sm:$0xff] }
  0x86   :  { %893 = vmatprep.mubr.f32.mxu1 %v30_v7  ;;  %901 = vmatpush1.msra.mxu0 %v612_v8  ;;  %v601_v18 = vld [vmem:[%s5524_s2 + $0x1188] sm:$0xff]  ;;  %v600_v20 = vld [vmem:[%s5524_s2 + $0x1180] sm:$0xff]  ;;  %v43_v7 = vld [vmem:[%s5524_s2 + $0x18] sm:$0xff] }
  0x87   :  { %894 = vmatmul.mubr.f32.vlgmr.msra.gmra.mxu1 %v29_v9  ;;  %902 = vmatprep.subr.mxu0 %v609_v10  ;;  %v597_v22 = vld [vmem:[%s5524_s2 + $0x1168] sm:$0xff]  ;;  %v596_v24 = vld [vmem:[%s5524_s2 + $0x1160] sm:$0xff]  ;;  %v231_v8 = vld [vmem:[%s5524_s2 + $0x5f8] sm:$0xff]  ;;  %v3133_v9 = vmov 0.0  }
  0x88   :  { %971 = vmatprep.subr.mxu1 %v103_v11  ;;  %903 = vmatpush1.msra.mxu0 %v608_v12  ;;  %v593_v26 = vld [vmem:[%s5524_s2 + $0x1148] sm:$0xff]  ;;  %v592_v28 = vld [vmem:[%s5524_s2 + $0x1140] sm:$0xff]  ;;  %v42_v10 = vld [vmem:[%s5524_s2 + $0x10] sm:$0xff]  ;;  %2736 = vst [vmem:[%s5530_s6] sm:$0xff] %v3133_v9 }
  0x89   :  { %972 = vmatpush1.msra.mxu1 %v102_v13  ;;  %904 = vmatprep.subr.mxu0 %v605_v14  ;;  %v589_v30 = vld [vmem:[%s5524_s2 + $0x1128] sm:$0xff]  ;;  %v588_v32 = vld [vmem:[%s5524_s2 + $0x1120] sm:$0xff]  ;;  %v230_v11 = vld [vmem:[%s5524_s2 + $0x5f0] sm:$0xff] }
  0x8a   :  { %973 = vmatprep.subr.mxu1 %v99_v15  ;;  %905 = vmatpush1.msra.mxu0 %v604_v16  ;;  %v585_v34 = vld [vmem:[%s5524_s2 + $0x1108] sm:$0xff]  ;;  %v584_v36 = vld [vmem:[%s5524_s2 + $0x1100] sm:$0xff]  ;;  %v167_v12 = vld [vmem:[%s5524_s2 + $0x3f8] sm:$0xff] }
  0x8b   :  { %974 = vmatpush1.msra.mxu1 %v98_v17  ;;  %906 = vmatprep.subr.mxu0 %v601_v18  ;;  %v581_v38 = vld [vmem:[%s5524_s2 + $0x10e8] sm:$0xff]  ;;  %v580_v40 = vld [vmem:[%s5524_s2 + $0x10e0] sm:$0xff]  ;;  %v227_v13 = vld [vmem:[%s5524_s2 + $0x5d8] sm:$0xff] }
  0x8c   :  { %975 = vmatprep.subr.mxu1 %v95_v19  ;;  %907 = vmatpush1.msra.mxu0 %v600_v20  ;;  %v577_v42 = vld [vmem:[%s5524_s2 + $0x10c8] sm:$0xff]  ;;  %v576_v44 = vld [vmem:[%s5524_s2 + $0x10c0] sm:$0xff]  ;;  %v166_v14 = vld [vmem:[%s5524_s2 + $0x3f0] sm:$0xff] }
  0x8d   :  { %976 = vmatpush1.msra.mxu1 %v94_v21  ;;  %908 = vmatprep.subr.mxu0 %v597_v22  ;;  %v573_v46 = vld [vmem:[%s5524_s2 + $0x10a8] sm:$0xff]  ;;  %v572_v48 = vld [vmem:[%s5524_s2 + $0x10a0] sm:$0xff]  ;;  %v226_v15 = vld [vmem:[%s5524_s2 + $0x5d0] sm:$0xff] }
  0x8e   :  { %977 = vmatprep.subr.mxu1 %v91_v23  ;;  %909 = vmatpush1.msra.mxu0 %v596_v24  ;;  %v569_v50 = vld [vmem:[%s5524_s2 + $0x1088] sm:$0xff]  ;;  %v568_v52 = vld [vmem:[%s5524_s2 + $0x1080] sm:$0xff]  ;;  %v163_v16 = vld [vmem:[%s5524_s2 + $0x3d8] sm:$0xff] }
  0x8f   :  { %978 = vmatpush1.msra.mxu1 %v90_v25  ;;  %910 = vmatprep.subr.mxu0 %v593_v26  ;;  %v565_v54 = vld [vmem:[%s5524_s2 + $0x1068] sm:$0xff]  ;;  %v564_v56 = vld [vmem:[%s5524_s2 + $0x1060] sm:$0xff]  ;;  %v223_v17 = vld [vmem:[%s5524_s2 + $0x5b8] sm:$0xff] }
  0x90   :  { %979 = vmatprep.subr.mxu1 %v87_v27  ;;  %911 = vmatpush1.msra.mxu0 %v592_v28  ;;  %v561_v58 = vld [vmem:[%s5524_s2 + $0x1048] sm:$0xff]  ;;  %v560_v60 = vld [vmem:[%s5524_s2 + $0x1040] sm:$0xff]  ;;  %v162_v18 = vld [vmem:[%s5524_s2 + $0x3d0] sm:$0xff] }
  0x91   :  { %980 = vmatpush1.msra.mxu1 %v86_v29  ;;  %912 = vmatprep.subr.mxu0 %v589_v30  ;;  %v557_v62 = vld [vmem:[%s5524_s2 + $0x1028] sm:$0xff]  ;;  %v556_v0 = vld [vmem:[%s5524_s2 + $0x1020] sm:$0xff]  ;;  %v222_v19 = vld [vmem:[%s5524_s2 + $0x5b0] sm:$0xff] }
  0x92   :  { %981 = vmatprep.subr.mxu1 %v83_v31  ;;  %913 = vmatpush1.msra.mxu0 %v588_v32  ;;  %v553_v2 = vld [vmem:[%s5524_s2 + $0x1008] sm:$0xff]  ;;  %v552_v4 = vld [vmem:[%s5524_s2 + $0x1000] sm:$0xff]  ;;  %v159_v20 = vld [vmem:[%s5524_s2 + $0x3b8] sm:$0xff] }
  0x93   :  { %982 = vmatpush1.msra.mxu1 %v82_v33  ;;  %914 = vmatprep.subr.mxu0 %v585_v34  ;;  %v4156_v6 = vld [vmem:[%s5525_s0 + $0x40] sm:$0xff]  ;;  %v219_v21 = vld [vmem:[%s5524_s2 + $0x598] sm:$0xff]  ;;  %v158_v22 = vld [vmem:[%s5524_s2 + $0x3b0] sm:$0xff] }
  0x94   :  { %983 = vmatprep.subr.mxu1 %v79_v35  ;;  %915 = vmatpush1.msra.mxu0 %v584_v36  ;;  %v218_v23 = vld [vmem:[%s5524_s2 + $0x590] sm:$0xff]  ;;  %v155_v24 = vld [vmem:[%s5524_s2 + $0x398] sm:$0xff] }
  0x95   :  { %984 = vmatpush1.msra.mxu1 %v78_v37  ;;  %916 = vmatprep.subr.mxu0 %v581_v38  ;;  %v215_v25 = vld [vmem:[%s5524_s2 + $0x578] sm:$0xff]  ;;  %v154_v26 = vld [vmem:[%s5524_s2 + $0x390] sm:$0xff] }
  0x96   :  { %985 = vmatprep.subr.mxu1 %v75_v39  ;;  %917 = vmatpush1.msra.mxu0 %v580_v40  ;;  %v214_v27 = vld [vmem:[%s5524_s2 + $0x570] sm:$0xff]  ;;  %v151_v28 = vld [vmem:[%s5524_s2 + $0x378] sm:$0xff] }
  0x97   :  { %986 = vmatpush1.msra.mxu1 %v74_v41  ;;  %918 = vmatprep.subr.mxu0 %v577_v42  ;;  %v211_v29 = vld [vmem:[%s5524_s2 + $0x558] sm:$0xff]  ;;  %v150_v30 = vld [vmem:[%s5524_s2 + $0x370] sm:$0xff] }
  0x98   :  { %987 = vmatprep.subr.mxu1 %v71_v43  ;;  %919 = vmatpush1.msra.mxu0 %v576_v44  ;;  %v210_v31 = vld [vmem:[%s5524_s2 + $0x550] sm:$0xff]  ;;  %v147_v32 = vld [vmem:[%s5524_s2 + $0x358] sm:$0xff] }
  0x99   :  { %988 = vmatpush1.msra.mxu1 %v70_v45  ;;  %920 = vmatprep.subr.mxu0 %v573_v46  ;;  %v207_v33 = vld [vmem:[%s5524_s2 + $0x538] sm:$0xff]  ;;  %v146_v34 = vld [vmem:[%s5524_s2 + $0x350] sm:$0xff] }
  0x9a   :  { %989 = vmatprep.subr.mxu1 %v67_v47  ;;  %921 = vmatpush1.msra.mxu0 %v572_v48  ;;  %v206_v35 = vld [vmem:[%s5524_s2 + $0x530] sm:$0xff]  ;;  %v143_v36 = vld [vmem:[%s5524_s2 + $0x338] sm:$0xff] }
  0x9b   :  { %990 = vmatpush1.msra.mxu1 %v66_v49  ;;  %922 = vmatprep.subr.mxu0 %v569_v50  ;;  %v203_v37 = vld [vmem:[%s5524_s2 + $0x518] sm:$0xff]  ;;  %v142_v38 = vld [vmem:[%s5524_s2 + $0x330] sm:$0xff] }
  0x9c   :  { %991 = vmatprep.subr.mxu1 %v63_v51  ;;  %923 = vmatpush1.msra.mxu0 %v568_v52  ;;  %v202_v39 = vld [vmem:[%s5524_s2 + $0x510] sm:$0xff]  ;;  %v139_v40 = vld [vmem:[%s5524_s2 + $0x318] sm:$0xff] }
  0x9d   :  { %992 = vmatpush1.msra.mxu1 %v62_v53  ;;  %924 = vmatprep.subr.mxu0 %v565_v54  ;;  %v199_v41 = vld [vmem:[%s5524_s2 + $0x4f8] sm:$0xff]  ;;  %v138_v42 = vld [vmem:[%s5524_s2 + $0x310] sm:$0xff] }
  0x9e   :  { %993 = vmatprep.subr.mxu1 %v59_v55  ;;  %925 = vmatpush1.msra.mxu0 %v564_v56  ;;  %v198_v43 = vld [vmem:[%s5524_s2 + $0x4f0] sm:$0xff]  ;;  %v135_v44 = vld [vmem:[%s5524_s2 + $0x2f8] sm:$0xff] }
  0x9f   :  { %994 = vmatpush1.msra.mxu1 %v58_v57  ;;  %926 = vmatprep.subr.mxu0 %v561_v58  ;;  %v195_v45 = vld [vmem:[%s5524_s2 + $0x4d8] sm:$0xff]  ;;  %v134_v46 = vld [vmem:[%s5524_s2 + $0x2f0] sm:$0xff] }
  0xa0   :  { %995 = vmatprep.subr.mxu1 %v55_v59  ;;  %927 = vmatpush1.msra.mxu0 %v560_v60  ;;  %v194_v47 = vld [vmem:[%s5524_s2 + $0x4d0] sm:$0xff]  ;;  %v131_v48 = vld [vmem:[%s5524_s2 + $0x2d8] sm:$0xff] }
  0xa1   :  { %996 = vmatpush1.msra.mxu1 %v54_v61  ;;  %928 = vmatprep.subr.mxu0 %v557_v62  ;;  %v191_v49 = vld [vmem:[%s5524_s2 + $0x4b8] sm:$0xff]  ;;  %v130_v50 = vld [vmem:[%s5524_s2 + $0x2d0] sm:$0xff] }
  0xa2   :  { %997 = vmatprep.subr.mxu1 %v51_v63  ;;  %929 = vmatpush1.msra.mxu0 %v556_v0  ;;  %v190_v51 = vld [vmem:[%s5524_s2 + $0x4b0] sm:$0xff]  ;;  %v127_v52 = vld [vmem:[%s5524_s2 + $0x2b8] sm:$0xff] }
  0xa3   :  { %998 = vmatpush1.msra.mxu1 %v50_v1  ;;  %930 = vmatprep.subr.mxu0 %v553_v2  ;;  %v187_v53 = vld [vmem:[%s5524_s2 + $0x498] sm:$0xff]  ;;  %v126_v54 = vld [vmem:[%s5524_s2 + $0x2b0] sm:$0xff] }
  0xa4   :  { %999 = vmatprep.subr.mxu1 %v47_v3  ;;  %931 = vmatpush1.msra.mxu0 %v552_v4  ;;  %v186_v55 = vld [vmem:[%s5524_s2 + $0x490] sm:$0xff]  ;;  %v123_v56 = vld [vmem:[%s5524_s2 + $0x298] sm:$0xff] }
  0xa5   :  { %964 = vmatprep.mubr.f32.mxu0 %v3133_v9  ;;  %1000 = vmatpush1.msra.mxu1 %v46_v5  ;;  %v183_v57 = vld [vmem:[%s5524_s2 + $0x478] sm:$0xff]  ;;  %v122_v58 = vld [vmem:[%s5524_s2 + $0x290] sm:$0xff] }
  0xa6   :  { %965 = vmatmul.mubr.f32.vlgmr.msra.gmra.mxu0 %v4156_v6  ;;  %1001 = vmatprep.subr.mxu1 %v43_v7  ;;  %v182_v59 = vld [vmem:[%s5524_s2 + $0x470] sm:$0xff]  ;;  %v119_v60 = vld [vmem:[%s5524_s2 + $0x278] sm:$0xff] }
  0xa7   :  { %1042 = vmatprep.subr.mxu0 %v231_v8  ;;  %1002 = vmatpush1.msra.mxu1 %v42_v10  ;;  %v179_v61 = vld [vmem:[%s5524_s2 + $0x458] sm:$0xff]  ;;  %v118_v62 = vld [vmem:[%s5524_s2 + $0x270] sm:$0xff] }
  0xa8   :  { %1043 = vmatpush1.msra.mxu0 %v230_v11  ;;  %1003 = vmatprep.subr.mxu1 %v167_v12  ;;  %v178_v63 = vld [vmem:[%s5524_s2 + $0x450] sm:$0xff]  ;;  %v115_v0 = vld [vmem:[%s5524_s2 + $0x258] sm:$0xff] }
  0xa9   :  { %1044 = vmatprep.subr.mxu0 %v227_v13  ;;  %1004 = vmatpush2.msra.mxu1 %v166_v14  ;;  %v175_v1 = vld [vmem:[%s5524_s2 + $0x438] sm:$0xff]  ;;  %v114_v2 = vld [vmem:[%s5524_s2 + $0x250] sm:$0xff] }
  0xaa   :  { %1045 = vmatpush1.msra.mxu0 %v226_v15  ;;  %1005 = vmatprep.subr.mxu1 %v163_v16  ;;  %v174_v3 = vld [vmem:[%s5524_s2 + $0x430] sm:$0xff]  ;;  %v111_v4 = vld [vmem:[%s5524_s2 + $0x238] sm:$0xff] }
  0xab   :  { %1046 = vmatprep.subr.mxu0 %v223_v17  ;;  %1006 = vmatpush2.msra.mxu1 %v162_v18  ;;  %v171_v5 = vld [vmem:[%s5524_s2 + $0x418] sm:$0xff]  ;;  %v110_v7 = vld [vmem:[%s5524_s2 + $0x230] sm:$0xff]  ;;  %v3124_v18 = vld [vmem:[%s5525_s0 + $0x8] sm:$0xff] }
  0xac   :  { %1047 = vmatpush1.msra.mxu0 %v222_v19  ;;  %1007 = vmatprep.subr.mxu1 %v159_v20  ;;  %v170_v8 = vld [vmem:[%s5524_s2 + $0x410] sm:$0xff]  ;;  %v107_v10 = vld [vmem:[%s5524_s2 + $0x218] sm:$0xff] }
  0xad   :  { %1048 = vmatprep.subr.mxu0 %v219_v21  ;;  %1008 = vmatpush2.msra.mxu1 %v158_v22  ;;  %v295_v11 = vld [vmem:[%s5524_s2 + $0x7f8] sm:$0xff]  ;;  %v106_v12 = vld [vmem:[%s5524_s2 + $0x210] sm:$0xff]  ;;  %v3125_v21 = vld [vmem:[%s5525_s0] sm:$0xff] }
  0xae   :  { %1049 = vmatpush1.msra.mxu0 %v218_v23  ;;  %1009 = vmatprep.subr.mxu1 %v155_v24  ;;  %v294_v13 = vld [vmem:[%s5524_s2 + $0x7f0] sm:$0xff]  ;;  %v291_v14 = vld [vmem:[%s5524_s2 + $0x7d8] sm:$0xff] }
  0xaf   :  { %1050 = vmatprep.subr.mxu0 %v215_v25  ;;  %1010 = vmatpush2.msra.mxu1 %v154_v26  ;;  %v359_v15 = vld [vmem:[%s5524_s2 + $0x9f8] sm:$0xff]  ;;  %v290_v16 = vld [vmem:[%s5524_s2 + $0x7d0] sm:$0xff] }
  0xb0   :  { %1051 = vmatpush1.msra.mxu0 %v214_v27  ;;  %1011 = vmatprep.subr.mxu1 %v151_v28  ;;  %v358_v17 = vld [vmem:[%s5524_s2 + $0x9f0] sm:$0xff]  ;;  %v287_v19 = vld [vmem:[%s5524_s2 + $0x7b8] sm:$0xff] }
  0xb1   :  { %1052 = vmatprep.subr.mxu0 %v211_v29  ;;  %1012 = vmatpush2.msra.mxu1 %v150_v30  ;;  %v355_v20 = vld [vmem:[%s5524_s2 + $0x9d8] sm:$0xff]  ;;  %v286_v22 = vld [vmem:[%s5524_s2 + $0x7b0] sm:$0xff] }
  0xb2   :  { %1053 = vmatpush1.msra.mxu0 %v210_v31  ;;  %1013 = vmatprep.subr.mxu1 %v147_v32  ;;  %v354_v23 = vld [vmem:[%s5524_s2 + $0x9d0] sm:$0xff]  ;;  %v283_v24 = vld [vmem:[%s5524_s2 + $0x798] sm:$0xff] }
  0xb3   :  { %1054 = vmatprep.subr.mxu0 %v207_v33  ;;  %1014 = vmatpush2.msra.mxu1 %v146_v34  ;;  %v351_v25 = vld [vmem:[%s5524_s2 + $0x9b8] sm:$0xff]  ;;  %v282_v26 = vld [vmem:[%s5524_s2 + $0x790] sm:$0xff] }
  0xb4   :  { %1055 = vmatpush1.msra.mxu0 %v206_v35  ;;  %1015 = vmatprep.subr.mxu1 %v143_v36  ;;  %v350_v27 = vld [vmem:[%s5524_s2 + $0x9b0] sm:$0xff]  ;;  %v279_v28 = vld [vmem:[%s5524_s2 + $0x778] sm:$0xff] }
  0xb5   :  { %1056 = vmatprep.subr.mxu0 %v203_v37  ;;  %1016 = vmatpush2.msra.mxu1 %v142_v38  ;;  %v347_v29 = vld [vmem:[%s5524_s2 + $0x998] sm:$0xff]  ;;  %v278_v30 = vld [vmem:[%s5524_s2 + $0x770] sm:$0xff] }
  0xb6   :  { %1057 = vmatpush1.msra.mxu0 %v202_v39  ;;  %1017 = vmatprep.subr.mxu1 %v139_v40  ;;  %v346_v31 = vld [vmem:[%s5524_s2 + $0x990] sm:$0xff]  ;;  %v275_v32 = vld [vmem:[%s5524_s2 + $0x758] sm:$0xff] }
  0xb7   :  { %1058 = vmatprep.subr.mxu0 %v199_v41  ;;  %1018 = vmatpush2.msra.mxu1 %v138_v42  ;;  %v343_v33 = vld [vmem:[%s5524_s2 + $0x978] sm:$0xff]  ;;  %v274_v34 = vld [vmem:[%s5524_s2 + $0x750] sm:$0xff] }
  0xb8   :  { %1059 = vmatpush1.msra.mxu0 %v198_v43  ;;  %1019 = vmatprep.subr.mxu1 %v135_v44  ;;  %v342_v35 = vld [vmem:[%s5524_s2 + $0x970] sm:$0xff]  ;;  %v271_v36 = vld [vmem:[%s5524_s2 + $0x738] sm:$0xff] }
  0xb9   :  { %1060 = vmatprep.subr.mxu0 %v195_v45  ;;  %1020 = vmatpush2.msra.mxu1 %v134_v46  ;;  %v339_v37 = vld [vmem:[%s5524_s2 + $0x958] sm:$0xff]  ;;  %v270_v38 = vld [vmem:[%s5524_s2 + $0x730] sm:$0xff] }
  0xba   :  { %1061 = vmatpush1.msra.mxu0 %v194_v47  ;;  %1021 = vmatprep.subr.mxu1 %v131_v48  ;;  %v338_v39 = vld [vmem:[%s5524_s2 + $0x950] sm:$0xff]  ;;  %v267_v40 = vld [vmem:[%s5524_s2 + $0x718] sm:$0xff] }
  0xbb   :  { %1062 = vmatprep.subr.mxu0 %v191_v49  ;;  %1022 = vmatpush2.msra.mxu1 %v130_v50  ;;  %v335_v41 = vld [vmem:[%s5524_s2 + $0x938] sm:$0xff]  ;;  %v266_v42 = vld [vmem:[%s5524_s2 + $0x710] sm:$0xff] }
  0xbc   :  { %1063 = vmatpush1.msra.mxu0 %v190_v51  ;;  %1023 = vmatprep.subr.mxu1 %v127_v52  ;;  %v334_v43 = vld [vmem:[%s5524_s2 + $0x930] sm:$0xff]  ;;  %v263_v44 = vld [vmem:[%s5524_s2 + $0x6f8] sm:$0xff] }
  0xbd   :  { %1064 = vmatprep.subr.mxu0 %v187_v53  ;;  %1024 = vmatpush2.msra.mxu1 %v126_v54  ;;  %v331_v45 = vld [vmem:[%s5524_s2 + $0x918] sm:$0xff]  ;;  %v262_v46 = vld [vmem:[%s5524_s2 + $0x6f0] sm:$0xff] }
  0xbe   :  { %1065 = vmatpush1.msra.mxu0 %v186_v55  ;;  %1025 = vmatprep.subr.mxu1 %v123_v56  ;;  %v330_v47 = vld [vmem:[%s5524_s2 + $0x910] sm:$0xff]  ;;  %v259_v48 = vld [vmem:[%s5524_s2 + $0x6d8] sm:$0xff] }
  0xbf   :  { %1066 = vmatprep.subr.mxu0 %v183_v57  ;;  %1026 = vmatpush2.msra.mxu1 %v122_v58  ;;  %v327_v49 = vld [vmem:[%s5524_s2 + $0x8f8] sm:$0xff]  ;;  %v258_v50 = vld [vmem:[%s5524_s2 + $0x6d0] sm:$0xff] }
  0xc0   :  { %1067 = vmatpush1.msra.mxu0 %v182_v59  ;;  %1027 = vmatprep.subr.mxu1 %v119_v60  ;;  %v326_v51 = vld [vmem:[%s5524_s2 + $0x8f0] sm:$0xff]  ;;  %v255_v52 = vld [vmem:[%s5524_s2 + $0x6b8] sm:$0xff] }
  0xc1   :  { %1068 = vmatprep.subr.mxu0 %v179_v61  ;;  %1028 = vmatpush2.msra.mxu1 %v118_v62  ;;  %v323_v53 = vld [vmem:[%s5524_s2 + $0x8d8] sm:$0xff]  ;;  %v254_v54 = vld [vmem:[%s5524_s2 + $0x6b0] sm:$0xff] }
  0xc2   :  { %1069 = vmatpush1.msra.mxu0 %v178_v63  ;;  %1029 = vmatprep.subr.mxu1 %v115_v0  ;;  %v322_v55 = vld [vmem:[%s5524_s2 + $0x8d0] sm:$0xff]  ;;  %v251_v56 = vld [vmem:[%s5524_s2 + $0x698] sm:$0xff] }
  0xc3   :  { %1070 = vmatprep.subr.mxu0 %v175_v1  ;;  %1030 = vmatpush2.msra.mxu1 %v114_v2  ;;  %v319_v57 = vld [vmem:[%s5524_s2 + $0x8b8] sm:$0xff]  ;;  %v250_v58 = vld [vmem:[%s5524_s2 + $0x690] sm:$0xff] }
  0xc4   :  { %1071 = vmatpush1.msra.mxu0 %v174_v3  ;;  %1031 = vmatprep.subr.mxu1 %v111_v4  ;;  %v318_v59 = vld [vmem:[%s5524_s2 + $0x8b0] sm:$0xff]  ;;  %v247_v60 = vld [vmem:[%s5524_s2 + $0x678] sm:$0xff] }
  0xc5   :  { %1072 = vmatprep.subr.mxu0 %v171_v5  ;;  %1032 = vmatpush2.msra.mxu1 %v110_v7  ;;  %v315_v61 = vld [vmem:[%s5524_s2 + $0x898] sm:$0xff]  ;;  %v246_v62 = vld [vmem:[%s5524_s2 + $0x670] sm:$0xff] }
  0xc6   :  { %1073 = vmatpush1.msra.mxu0 %v170_v8  ;;  %1033 = vmatprep.subr.mxu1 %v107_v10  ;;  %v314_v63 = vld [vmem:[%s5524_s2 + $0x890] sm:$0xff]  ;;  %v243_v0 = vld [vmem:[%s5524_s2 + $0x658] sm:$0xff] }
  0xc7   :  { %1074 = vmatprep.subr.mxu0 %v295_v11  ;;  %1034 = vmatpush2.msra.mxu1 %v106_v12  ;;  %v311_v1 = vld [vmem:[%s5524_s2 + $0x878] sm:$0xff]  ;;  %v242_v2 = vld [vmem:[%s5524_s2 + $0x650] sm:$0xff] }
  0xc8   :  { %1075 = vmatpush2.msra.mxu0 %v294_v13  ;;  %1035 = vmatprep.mubr.f32.mxu1 %v3124_v18  ;;  %v310_v3 = vld [vmem:[%s5524_s2 + $0x870] sm:$0xff]  ;;  %v239_v4 = vld [vmem:[%s5524_s2 + $0x638] sm:$0xff] }
  0xc9   :  { %1076 = vmatprep.subr.mxu0 %v291_v14  ;;  %1113 = vmatprep.subr.mxu1 %v359_v15  ;;  %v307_v5 = vld [vmem:[%s5524_s2 + $0x858] sm:$0xff]  ;;  %v238_v7 = vld [vmem:[%s5524_s2 + $0x630] sm:$0xff] }
  0xca   :  { %1036 = vmatmul.mubr.f32.vlgmr.msra.gmra.mxu1 %v3125_v21  ;;  %1077 = vmatpush2.msra.mxu0 %v290_v16  ;;  %v306_v8 = vld [vmem:[%s5524_s2 + $0x850] sm:$0xff]  ;;  %v235_v10 = vld [vmem:[%s5524_s2 + $0x618] sm:$0xff] }
  0xcb   :  { %1114 = vmatpush1.msra.mxu1 %v358_v17  ;;  %1078 = vmatprep.subr.mxu0 %v287_v19  ;;  %v303_v11 = vld [vmem:[%s5524_s2 + $0x838] sm:$0xff]  ;;  %v234_v12 = vld [vmem:[%s5524_s2 + $0x610] sm:$0xff] }
  0xcc   :  { %1115 = vmatprep.subr.mxu1 %v355_v20  ;;  %1079 = vmatpush2.msra.mxu0 %v286_v22  ;;  %v302_v13 = vld [vmem:[%s5524_s2 + $0x830] sm:$0xff]  ;;  %v299_v14 = vld [vmem:[%s5524_s2 + $0x818] sm:$0xff] }
  0xcd   :  { %1116 = vmatpush1.msra.mxu1 %v354_v23  ;;  %1080 = vmatprep.subr.mxu0 %v283_v24  ;;  %v487_v15 = vld [vmem:[%s5524_s2 + $0xdf8] sm:$0xff]  ;;  %v298_v16 = vld [vmem:[%s5524_s2 + $0x810] sm:$0xff] }
  0xce   :  { %1117 = vmatprep.subr.mxu1 %v351_v25  ;;  %1081 = vmatpush2.msra.mxu0 %v282_v26  ;;  %v486_v17 = vld [vmem:[%s5524_s2 + $0xdf0] sm:$0xff]  ;;  %v3126_v18 = vld [vmem:[%s5525_s0 + $0x18] sm:$0xff] }
  0xcf   :  { %1118 = vmatpush1.msra.mxu1 %v350_v27  ;;  %1082 = vmatprep.subr.mxu0 %v279_v28  ;;  %v423_v19 = vld [vmem:[%s5524_s2 + $0xbf8] sm:$0xff]  ;;  %v3127_v21 = vld [vmem:[%s5525_s0 + $0x10] sm:$0xff] }
  0xd0   :  { %1119 = vmatprep.subr.mxu1 %v347_v29  ;;  %1083 = vmatpush2.msra.mxu0 %v278_v30  ;;  %v483_v20 = vld [vmem:[%s5524_s2 + $0xdd8] sm:$0xff]  ;;  %v422_v22 = vld [vmem:[%s5524_s2 + $0xbf0] sm:$0xff] }
  0xd1   :  { %1120 = vmatpush1.msra.mxu1 %v346_v31  ;;  %1084 = vmatprep.subr.mxu0 %v275_v32  ;;  %v482_v23 = vld [vmem:[%s5524_s2 + $0xdd0] sm:$0xff]  ;;  %v419_v24 = vld [vmem:[%s5524_s2 + $0xbd8] sm:$0xff] }
  0xd2   :  { %1121 = vmatprep.subr.mxu1 %v343_v33  ;;  %1085 = vmatpush2.msra.mxu0 %v274_v34  ;;  %v479_v25 = vld [vmem:[%s5524_s2 + $0xdb8] sm:$0xff]  ;;  %v418_v26 = vld [vmem:[%s5524_s2 + $0xbd0] sm:$0xff] }
  0xd3   :  { %1122 = vmatpush1.msra.mxu1 %v342_v35  ;;  %1086 = vmatprep.subr.mxu0 %v271_v36  ;;  %v478_v27 = vld [vmem:[%s5524_s2 + $0xdb0] sm:$0xff]  ;;  %v415_v28 = vld [vmem:[%s5524_s2 + $0xbb8] sm:$0xff] }
  0xd4   :  { %1123 = vmatprep.subr.mxu1 %v339_v37  ;;  %1087 = vmatpush2.msra.mxu0 %v270_v38  ;;  %v475_v29 = vld [vmem:[%s5524_s2 + $0xd98] sm:$0xff]  ;;  %v414_v30 = vld [vmem:[%s5524_s2 + $0xbb0] sm:$0xff] }
  0xd5   :  { %1124 = vmatpush1.msra.mxu1 %v338_v39  ;;  %1088 = vmatprep.subr.mxu0 %v267_v40  ;;  %v474_v31 = vld [vmem:[%s5524_s2 + $0xd90] sm:$0xff]  ;;  %v411_v32 = vld [vmem:[%s5524_s2 + $0xb98] sm:$0xff] }
  0xd6   :  { %1125 = vmatprep.subr.mxu1 %v335_v41  ;;  %1089 = vmatpush2.msra.mxu0 %v266_v42  ;;  %v471_v33 = vld [vmem:[%s5524_s2 + $0xd78] sm:$0xff]  ;;  %v410_v34 = vld [vmem:[%s5524_s2 + $0xb90] sm:$0xff] }
  0xd7   :  { %1126 = vmatpush1.msra.mxu1 %v334_v43  ;;  %1090 = vmatprep.subr.mxu0 %v263_v44  ;;  %v470_v35 = vld [vmem:[%s5524_s2 + $0xd70] sm:$0xff]  ;;  %v407_v36 = vld [vmem:[%s5524_s2 + $0xb78] sm:$0xff] }
  0xd8   :  { %1127 = vmatprep.subr.mxu1 %v331_v45  ;;  %1091 = vmatpush2.msra.mxu0 %v262_v46  ;;  %v467_v37 = vld [vmem:[%s5524_s2 + $0xd58] sm:$0xff]  ;;  %v406_v38 = vld [vmem:[%s5524_s2 + $0xb70] sm:$0xff] }
  0xd9   :  { %1128 = vmatpush1.msra.mxu1 %v330_v47  ;;  %1092 = vmatprep.subr.mxu0 %v259_v48  ;;  %v466_v39 = vld [vmem:[%s5524_s2 + $0xd50] sm:$0xff]  ;;  %v403_v40 = vld [vmem:[%s5524_s2 + $0xb58] sm:$0xff] }
  0xda   :  { %1129 = vmatprep.subr.mxu1 %v327_v49  ;;  %1093 = vmatpush2.msra.mxu0 %v258_v50  ;;  %v463_v41 = vld [vmem:[%s5524_s2 + $0xd38] sm:$0xff]  ;;  %v402_v42 = vld [vmem:[%s5524_s2 + $0xb50] sm:$0xff] }
  0xdb   :  { %1130 = vmatpush1.msra.mxu1 %v326_v51  ;;  %1094 = vmatprep.subr.mxu0 %v255_v52  ;;  %v462_v43 = vld [vmem:[%s5524_s2 + $0xd30] sm:$0xff]  ;;  %v399_v44 = vld [vmem:[%s5524_s2 + $0xb38] sm:$0xff] }
  0xdc   :  { %1131 = vmatprep.subr.mxu1 %v323_v53  ;;  %1095 = vmatpush2.msra.mxu0 %v254_v54  ;;  %v459_v45 = vld [vmem:[%s5524_s2 + $0xd18] sm:$0xff]  ;;  %v398_v46 = vld [vmem:[%s5524_s2 + $0xb30] sm:$0xff] }
  0xdd   :  { %1132 = vmatpush1.msra.mxu1 %v322_v55  ;;  %1096 = vmatprep.subr.mxu0 %v251_v56  ;;  %v458_v47 = vld [vmem:[%s5524_s2 + $0xd10] sm:$0xff]  ;;  %v395_v48 = vld [vmem:[%s5524_s2 + $0xb18] sm:$0xff] }
  0xde   :  { %1133 = vmatprep.subr.mxu1 %v319_v57  ;;  %1097 = vmatpush2.msra.mxu0 %v250_v58  ;;  %v455_v49 = vld [vmem:[%s5524_s2 + $0xcf8] sm:$0xff]  ;;  %v394_v50 = vld [vmem:[%s5524_s2 + $0xb10] sm:$0xff] }
  0xdf   :  { %1134 = vmatpush1.msra.mxu1 %v318_v59  ;;  %1098 = vmatprep.subr.mxu0 %v247_v60  ;;  %v454_v51 = vld [vmem:[%s5524_s2 + $0xcf0] sm:$0xff]  ;;  %v391_v52 = vld [vmem:[%s5524_s2 + $0xaf8] sm:$0xff] }
  0xe0   :  { %1135 = vmatprep.subr.mxu1 %v315_v61  ;;  %1099 = vmatpush2.msra.mxu0 %v246_v62  ;;  %v451_v53 = vld [vmem:[%s5524_s2 + $0xcd8] sm:$0xff]  ;;  %v390_v54 = vld [vmem:[%s5524_s2 + $0xaf0] sm:$0xff] }
  0xe1   :  { %1136 = vmatpush1.msra.mxu1 %v314_v63  ;;  %1100 = vmatprep.subr.mxu0 %v243_v0  ;;  %v450_v55 = vld [vmem:[%s5524_s2 + $0xcd0] sm:$0xff]  ;;  %v387_v56 = vld [vmem:[%s5524_s2 + $0xad8] sm:$0xff] }
  0xe2   :  { %1137 = vmatprep.subr.mxu1 %v311_v1  ;;  %1101 = vmatpush2.msra.mxu0 %v242_v2  ;;  %v447_v57 = vld [vmem:[%s5524_s2 + $0xcb8] sm:$0xff]  ;;  %v386_v58 = vld [vmem:[%s5524_s2 + $0xad0] sm:$0xff] }
  0xe3   :  { %1138 = vmatpush1.msra.mxu1 %v310_v3  ;;  %1102 = vmatprep.subr.mxu0 %v239_v4  ;;  %v446_v59 = vld [vmem:[%s5524_s2 + $0xcb0] sm:$0xff]  ;;  %v383_v60 = vld [vmem:[%s5524_s2 + $0xab8] sm:$0xff] }
  0xe4   :  { %1139 = vmatprep.subr.mxu1 %v307_v5  ;;  %1103 = vmatpush2.msra.mxu0 %v238_v7  ;;  %v443_v61 = vld [vmem:[%s5524_s2 + $0xc98] sm:$0xff]  ;;  %v382_v62 = vld [vmem:[%s5524_s2 + $0xab0] sm:$0xff] }
  0xe5   :  { %1140 = vmatpush1.msra.mxu1 %v306_v8  ;;  %1104 = vmatprep.subr.mxu0 %v235_v10  ;;  %v442_v63 = vld [vmem:[%s5524_s2 + $0xc90] sm:$0xff]  ;;  %v379_v0 = vld [vmem:[%s5524_s2 + $0xa98] sm:$0xff] }
  0xe6   :  { %1141 = vmatprep.subr.mxu1 %v303_v11  ;;  %1105 = vmatpush2.msra.mxu0 %v234_v12  ;;  %v439_v1 = vld [vmem:[%s5524_s2 + $0xc78] sm:$0xff]  ;;  %v378_v2 = vld [vmem:[%s5524_s2 + $0xa90] sm:$0xff] }
  0xe7   :  { %1142 = vmatpush1.msra.mxu1 %v302_v13  ;;  %1106 = vmatprep.mubr.f32.mxu0 %v3126_v18  ;;  %v438_v3 = vld [vmem:[%s5524_s2 + $0xc70] sm:$0xff]  ;;  %v375_v4 = vld [vmem:[%s5524_s2 + $0xa78] sm:$0xff] }
  0xe8   :  { %1143 = vmatprep.subr.mxu1 %v299_v14  ;;  %1184 = vmatprep.subr.mxu0 %v487_v15  ;;  %v435_v5 = vld [vmem:[%s5524_s2 + $0xc58] sm:$0xff]  ;;  %v374_v7 = vld [vmem:[%s5524_s2 + $0xa70] sm:$0xff] }
  0xe9   :  { %1107 = vmatmul.mubr.f32.vlgmr.msra.gmra.mxu0 %v3127_v21  ;;  %1144 = vmatpush1.msra.mxu1 %v298_v16  ;;  %v434_v8 = vld [vmem:[%s5524_s2 + $0xc50] sm:$0xff]  ;;  %v371_v10 = vld [vmem:[%s5524_s2 + $0xa58] sm:$0xff] }
  0xea   :  { %1185 = vmatpush1.msra.mxu0 %v486_v17  ;;  %1145 = vmatprep.subr.mxu1 %v423_v19  ;;  %v431_v11 = vld [vmem:[%s5524_s2 + $0xc38] sm:$0xff]  ;;  %v370_v12 = vld [vmem:[%s5524_s2 + $0xa50] sm:$0xff] }
  0xeb   :  { %1186 = vmatprep.subr.mxu0 %v483_v20  ;;  %1146 = vmatpush2.msra.mxu1 %v422_v22  ;;  %v430_v13 = vld [vmem:[%s5524_s2 + $0xc30] sm:$0xff]  ;;  %v367_v14 = vld [vmem:[%s5524_s2 + $0xa38] sm:$0xff] }
  0xec   :  { %1187 = vmatpush1.msra.mxu0 %v482_v23  ;;  %1147 = vmatprep.subr.mxu1 %v419_v24  ;;  %v427_v15 = vld [vmem:[%s5524_s2 + $0xc18] sm:$0xff]  ;;  %v366_v16 = vld [vmem:[%s5524_s2 + $0xa30] sm:$0xff] }
  0xed   :  { %1188 = vmatprep.subr.mxu0 %v479_v25  ;;  %1148 = vmatpush2.msra.mxu1 %v418_v26  ;;  %v426_v17 = vld [vmem:[%s5524_s2 + $0xc10] sm:$0xff]  ;;  %v363_v18 = vld [vmem:[%s5524_s2 + $0xa18] sm:$0xff]  ;;  %v3128_v26 = vld [vmem:[%s5525_s0 + $0x28] sm:$0xff] }
  0xee   :  { %1189 = vmatpush1.msra.mxu0 %v478_v27  ;;  %1149 = vmatprep.subr.mxu1 %v415_v28  ;;  %v551_v19 = vld [vmem:[%s5524_s2 + $0xff8] sm:$0xff]  ;;  %v362_v20 = vld [vmem:[%s5524_s2 + $0xa10] sm:$0xff] }
  0xef   :  { %1190 = vmatprep.subr.mxu0 %v475_v29  ;;  %1150 = vmatpush2.msra.mxu1 %v414_v30  ;;  %v550_v21 = vld [vmem:[%s5524_s2 + $0xff0] sm:$0xff]  ;;  %v547_v22 = vld [vmem:[%s5524_s2 + $0xfd8] sm:$0xff]  ;;  %v3129_v29 = vld [vmem:[%s5525_s0 + $0x20] sm:$0xff] }
  0xf0   :  { %1191 = vmatpush1.msra.mxu0 %v474_v31  ;;  %1151 = vmatprep.subr.mxu1 %v411_v32  ;;  %v615_v23 = vld [vmem:[%s5524_s2 + $0x11f8] sm:$0xff]  ;;  %v546_v24 = vld [vmem:[%s5524_s2 + $0xfd0] sm:$0xff] }
  0xf1   :  { %1192 = vmatprep.subr.mxu0 %v471_v33  ;;  %1152 = vmatpush2.msra.mxu1 %v410_v34  ;;  %v614_v25 = vld [vmem:[%s5524_s2 + $0x11f0] sm:$0xff]  ;;  %v543_v27 = vld [vmem:[%s5524_s2 + $0xfb8] sm:$0xff]  ;;  %v32_v33 = vsub.f32 1.0, %v4156_v6 }
  0xf2   :  { %1193 = vmatpush1.msra.mxu0 %v470_v35  ;;  %1153 = vmatprep.subr.mxu1 %v407_v36  ;;  %v611_v28 = vld [vmem:[%s5524_s2 + $0x11d8] sm:$0xff]  ;;  %v542_v30 = vld [vmem:[%s5524_s2 + $0xfb0] sm:$0xff] }
  0xf3   :  { %1194 = vmatprep.subr.mxu0 %v467_v37  ;;  %1154 = vmatpush2.msra.mxu1 %v406_v38  ;;  %v610_v31 = vld [vmem:[%s5524_s2 + $0x11d0] sm:$0xff]  ;;  %v539_v32 = vld [vmem:[%s5524_s2 + $0xf98] sm:$0xff]  ;;  %v3134_v37 = vmov 1  }
  0xf4   :  { %1195 = vmatpush1.msra.mxu0 %v466_v39  ;;  %1155 = vmatprep.subr.mxu1 %v403_v40  ;;  %v607_v34 = vld [vmem:[%s5524_s2 + $0x11b8] sm:$0xff]  ;;  %v538_v35 = vld [vmem:[%s5524_s2 + $0xf90] sm:$0xff] }
  0xf5   :  { %1196 = vmatprep.subr.mxu0 %v463_v41  ;;  %1156 = vmatpush2.msra.mxu1 %v402_v42  ;;  %v606_v36 = vld [vmem:[%s5524_s2 + $0x11b0] sm:$0xff]  ;;  %v535_v6 = vld [vmem:[%s5524_s2 + $0xf78] sm:$0xff] }
  0xf6   :  { %1197 = vmatpush1.msra.mxu0 %v462_v43  ;;  %1157 = vmatprep.subr.mxu1 %v399_v44  ;;  %v603_v38 = vld [vmem:[%s5524_s2 + $0x1198] sm:$0xff]  ;;  %v534_v39 = vld [vmem:[%s5524_s2 + $0xf70] sm:$0xff] }
  0xf7   :  { %1198 = vmatprep.subr.mxu0 %v459_v45  ;;  %1158 = vmatpush2.msra.mxu1 %v398_v46  ;;  %v602_v40 = vld [vmem:[%s5524_s2 + $0x1190] sm:$0xff]  ;;  %v531_v41 = vld [vmem:[%s5524_s2 + $0xf58] sm:$0xff] }
  0xf8   :  { %1199 = vmatpush1.msra.mxu0 %v458_v47  ;;  %1159 = vmatprep.subr.mxu1 %v395_v48  ;;  %v599_v42 = vld [vmem:[%s5524_s2 + $0x1178] sm:$0xff]  ;;  %v530_v43 = vld [vmem:[%s5524_s2 + $0xf50] sm:$0xff] }
  0xf9   :  { %1200 = vmatprep.subr.mxu0 %v455_v49  ;;  %1160 = vmatpush2.msra.mxu1 %v394_v50  ;;  %v598_v44 = vld [vmem:[%s5524_s2 + $0x1170] sm:$0xff]  ;;  %v527_v45 = vld [vmem:[%s5524_s2 + $0xf38] sm:$0xff] }
  0xfa   :  { %1201 = vmatpush1.msra.mxu0 %v454_v51  ;;  %1161 = vmatprep.subr.mxu1 %v391_v52  ;;  %v595_v46 = vld [vmem:[%s5524_s2 + $0x1158] sm:$0xff]  ;;  %v526_v47 = vld [vmem:[%s5524_s2 + $0xf30] sm:$0xff] }
  0xfb   :  { %1202 = vmatprep.subr.mxu0 %v451_v53  ;;  %1162 = vmatpush2.msra.mxu1 %v390_v54  ;;  %v594_v48 = vld [vmem:[%s5524_s2 + $0x1150] sm:$0xff]  ;;  %v523_v49 = vld [vmem:[%s5524_s2 + $0xf18] sm:$0xff] }
  0xfc   :  { %1203 = vmatpush1.msra.mxu0 %v450_v55  ;;  %1163 = vmatprep.subr.mxu1 %v387_v56  ;;  %v591_v50 = vld [vmem:[%s5524_s2 + $0x1138] sm:$0xff]  ;;  %v522_v51 = vld [vmem:[%s5524_s2 + $0xf10] sm:$0xff] }
  0xfd   :  { %1204 = vmatprep.subr.mxu0 %v447_v57  ;;  %1164 = vmatpush2.msra.mxu1 %v386_v58  ;;  %v590_v52 = vld [vmem:[%s5524_s2 + $0x1130] sm:$0xff]  ;;  %v519_v53 = vld [vmem:[%s5524_s2 + $0xef8] sm:$0xff] }
  0xfe   :  { %1205 = vmatpush1.msra.mxu0 %v446_v59  ;;  %1165 = vmatprep.subr.mxu1 %v383_v60  ;;  %v587_v54 = vld [vmem:[%s5524_s2 + $0x1118] sm:$0xff]  ;;  %v518_v55 = vld [vmem:[%s5524_s2 + $0xef0] sm:$0xff] }
  0xff   :  { %1206 = vmatprep.subr.mxu0 %v443_v61  ;;  %1166 = vmatpush2.msra.mxu1 %v382_v62  ;;  %v586_v56 = vld [vmem:[%s5524_s2 + $0x1110] sm:$0xff]  ;;  %v515_v57 = vld [vmem:[%s5524_s2 + $0xed8] sm:$0xff] }
 0x100   :  { %1207 = vmatpush1.msra.mxu0 %v442_v63  ;;  %1167 = vmatprep.subr.mxu1 %v379_v0  ;;  %v583_v58 = vld [vmem:[%s5524_s2 + $0x10f8] sm:$0xff]  ;;  %v514_v59 = vld [vmem:[%s5524_s2 + $0xed0] sm:$0xff] }
 0x101   :  { %1208 = vmatprep.subr.mxu0 %v439_v1  ;;  %1168 = vmatpush2.msra.mxu1 %v378_v2  ;;  %v582_v60 = vld [vmem:[%s5524_s2 + $0x10f0] sm:$0xff]  ;;  %v511_v61 = vld [vmem:[%s5524_s2 + $0xeb8] sm:$0xff] }
 0x102   :  { %1209 = vmatpush1.msra.mxu0 %v438_v3  ;;  %1169 = vmatprep.subr.mxu1 %v375_v4  ;;  %v579_v62 = vld [vmem:[%s5524_s2 + $0x10d8] sm:$0xff]  ;;  %v510_v63 = vld [vmem:[%s5524_s2 + $0xeb0] sm:$0xff] }
 0x103   :  { %1210 = vmatprep.subr.mxu0 %v435_v5  ;;  %1170 = vmatpush2.msra.mxu1 %v374_v7  ;;  %v578_v0 = vld [vmem:[%s5524_s2 + $0x10d0] sm:$0xff]  ;;  %v507_v1 = vld [vmem:[%s5524_s2 + $0xe98] sm:$0xff] }
 0x104   :  { %1211 = vmatpush1.msra.mxu0 %v434_v8  ;;  %1171 = vmatprep.subr.mxu1 %v371_v10  ;;  %v575_v2 = vld [vmem:[%s5524_s2 + $0x10b8] sm:$0xff]  ;;  %v506_v3 = vld [vmem:[%s5524_s2 + $0xe90] sm:$0xff] }
 0x105   :  { %1212 = vmatprep.subr.mxu0 %v431_v11  ;;  %1172 = vmatpush2.msra.mxu1 %v370_v12  ;;  %v574_v4 = vld [vmem:[%s5524_s2 + $0x10b0] sm:$0xff]  ;;  %v503_v5 = vld [vmem:[%s5524_s2 + $0xe78] sm:$0xff] }
 0x106   :  { %1213 = vmatpush1.msra.mxu0 %v430_v13  ;;  %1173 = vmatprep.subr.mxu1 %v367_v14  ;;  %v571_v7 = vld [vmem:[%s5524_s2 + $0x1098] sm:$0xff]  ;;  %v502_v8 = vld [vmem:[%s5524_s2 + $0xe70] sm:$0xff] }
 0x107   :  { %1214 = vmatprep.subr.mxu0 %v427_v15  ;;  %1174 = vmatpush2.msra.mxu1 %v366_v16  ;;  %v570_v10 = vld [vmem:[%s5524_s2 + $0x1090] sm:$0xff]  ;;  %v499_v11 = vld [vmem:[%s5524_s2 + $0xe58] sm:$0xff] }
 0x108   :  { %1215 = vmatpush1.msra.mxu0 %v426_v17  ;;  %1175 = vmatprep.subr.mxu1 %v363_v18  ;;  %v567_v12 = vld [vmem:[%s5524_s2 + $0x1078] sm:$0xff]  ;;  %v498_v13 = vld [vmem:[%s5524_s2 + $0xe50] sm:$0xff] }
 0x109   :  { %1216 = vmatprep.subr.mxu0 %v551_v19  ;;  %1176 = vmatpush2.msra.mxu1 %v362_v20  ;;  %v566_v14 = vld [vmem:[%s5524_s2 + $0x1070] sm:$0xff]  ;;  %v495_v15 = vld [vmem:[%s5524_s2 + $0xe38] sm:$0xff] }
 0x10a   :  { %1217 = vmatpush2.msra.mxu0 %v550_v21  ;;  %1177 = vmatprep.mubr.f32.mxu1 %v3128_v26  ;;  %v563_v16 = vld [vmem:[%s5524_s2 + $0x1058] sm:$0xff]  ;;  %v494_v17 = vld [vmem:[%s5524_s2 + $0xe30] sm:$0xff] }
 0x10b   :  { %1218 = vmatprep.subr.mxu0 %v547_v22  ;;  %1255 = vmatprep.subr.mxu1 %v615_v23  ;;  %v562_v18 = vld [vmem:[%s5524_s2 + $0x1050] sm:$0xff]  ;;  %v491_v19 = vld [vmem:[%s5524_s2 + $0xe18] sm:$0xff] }
 0x10c   :  { %1178 = vmatmul.mubr.f32.vlgmr.msra.gmra.mxu1 %v3129_v29  ;;  %1219 = vmatpush2.msra.mxu0 %v546_v24  ;;  %v559_v20 = vld [vmem:[%s5524_s2 + $0x1038] sm:$0xff]  ;;  %v490_v21 = vld [vmem:[%s5524_s2 + $0xe10] sm:$0xff] }
 0x10d   :  { %1256 = vmatpush1.msra.mxu1 %v614_v25  ;;  %1220 = vmatprep.subr.mxu0 %v543_v27  ;;  %v558_v22 = vld [vmem:[%s5524_s2 + $0x1030] sm:$0xff]  ;;  %v555_v23 = vld [vmem:[%s5524_s2 + $0x1018] sm:$0xff] }
 0x10e   :  { %1257 = vmatprep.subr.mxu1 %v611_v28  ;;  %1221 = vmatpush2.msra.mxu0 %v542_v30  ;;  %v3130_v24 = vld [vmem:[%s5525_s0 + $0x38] sm:$0xff]  ;;  %v554_v25 = vld [vmem:[%s5524_s2 + $0x1010] sm:$0xff] }
 0x10f   :  { %1258 = vmatpush1.msra.mxu1 %v610_v31  ;;  %3093 = vset.pattern.permute.xlu0 %v3134_v37  ;;  %v1361_v26 = vld [vmem:[%s5526_s3 + $0xf8] sm:$0xff]  ;;  %v3131_v27 = vld [vmem:[%s5525_s0 + $0x30] sm:$0xff] }
 0x110   :  { %1222 = vmatprep.subr.mxu0 %v539_v32  ;;  %1259 = vmatprep.subr.mxu1 %v607_v34  ;;  %v1345_v28 = vld [vmem:[%s5526_s3 + $0x78] sm:$0xff]  ;;  %v1360_v29 = vld [vmem:[%s5526_s3 + $0xf0] sm:$0xff]  ;;  %v3132_v32 = vld [vmem:[%s5525_s0 + $0x40] sm:$0xff]  ;;  %s3138_s0 = smov 32  }
 0x111   :  { %36 = vperm.xlu0 %3093, %v32_v33   ;;  %1223 = vmatpush2.msra.mxu0 %v538_v35  ;;  %v1344_v30 = vld [vmem:[%s5526_s3 + $0x70] sm:$0xff]  ;;  %v1377_v31 = vld [vmem:[%s5526_s3 + $0x178] sm:$0xff]  ;;  %v1359_v33 = vld [vmem:[%s5526_s3 + $0xe8] sm:$0xff] }
 0x112   :  { %1260 = vmatpush1.msra.mxu1 %v606_v36  ;;  %1224 = vmatprep.subr.mxu0 %v535_v6  ;;  %v1343_v34 = vld [vmem:[%s5526_s3 + $0x68] sm:$0xff]  ;;  %v1358_v35 = vld [vmem:[%s5526_s3 + $0xe0] sm:$0xff]  ;;  %v1357_v37 = vld [vmem:[%s5526_s3 + $0xd8] sm:$0xff] }
 0x113   :  { %1261 = vmatprep.subr.mxu1 %v603_v38  ;;  %1225 = vmatpush2.msra.mxu0 %v534_v39  ;;  %v1342_v36 = vld [vmem:[%s5526_s3 + $0x60] sm:$0xff]  ;;  %v1341_v6 = vld [vmem:[%s5526_s3 + $0x58] sm:$0xff]  ;;  %v1356_v38 = vld [vmem:[%s5526_s3 + $0xd0] sm:$0xff] }
 0x114   :  { %1262 = vmatpush1.msra.mxu1 %v602_v40  ;;  %1226 = vmatprep.subr.mxu0 %v531_v41  ;;  %v1340_v39 = vld [vmem:[%s5526_s3 + $0x50] sm:$0xff]  ;;  %v1355_v40 = vld [vmem:[%s5526_s3 + $0xc8] sm:$0xff] }
 0x115   :  { %1263 = vmatprep.subr.mxu1 %v599_v42  ;;  %1227 = vmatpush2.msra.mxu0 %v530_v43  ;;  %v1339_v41 = vld [vmem:[%s5526_s3 + $0x48] sm:$0xff]  ;;  %v1354_v42 = vld [vmem:[%s5526_s3 + $0xc0] sm:$0xff] }
 0x116   :  { %1264 = vmatpush1.msra.mxu1 %v598_v44  ;;  %1228 = vmatprep.subr.mxu0 %v527_v45  ;;  %v1338_v43 = vld [vmem:[%s5526_s3 + $0x40] sm:$0xff]  ;;  %v1353_v44 = vld [vmem:[%s5526_s3 + $0xb8] sm:$0xff] }
 0x117   :  { %1265 = vmatprep.subr.mxu1 %v595_v46  ;;  %1229 = vmatpush2.msra.mxu0 %v526_v47  ;;  %v1337_v45 = vld [vmem:[%s5526_s3 + $0x38] sm:$0xff]  ;;  %v1352_v46 = vld [vmem:[%s5526_s3 + $0xb0] sm:$0xff] }
 0x118   :  { %1266 = vmatpush1.msra.mxu1 %v594_v48  ;;  %1230 = vmatprep.subr.mxu0 %v523_v49  ;;  %v1336_v47 = vld [vmem:[%s5526_s3 + $0x30] sm:$0xff]  ;;  %v1351_v48 = vld [vmem:[%s5526_s3 + $0xa8] sm:$0xff] }
 0x119   :  { %1267 = vmatprep.subr.mxu1 %v591_v50  ;;  %1231 = vmatpush2.msra.mxu0 %v522_v51  ;;  %v1335_v49 = vld [vmem:[%s5526_s3 + $0x28] sm:$0xff]  ;;  %v1350_v50 = vld [vmem:[%s5526_s3 + $0xa0] sm:$0xff] }
 0x11a   :  { %1268 = vmatpush1.msra.mxu1 %v590_v52  ;;  %1232 = vmatprep.subr.mxu0 %v519_v53  ;;  %v1334_v51 = vld [vmem:[%s5526_s3 + $0x20] sm:$0xff]  ;;  %v1349_v52 = vld [vmem:[%s5526_s3 + $0x98] sm:$0xff] }
 0x11b   :  { %1269 = vmatprep.subr.mxu1 %v587_v54  ;;  %1233 = vmatpush2.msra.mxu0 %v518_v55  ;;  %v1333_v53 = vld [vmem:[%s5526_s3 + $0x18] sm:$0xff]  ;;  %v1348_v54 = vld [vmem:[%s5526_s3 + $0x90] sm:$0xff] }
 0x11c   :  { %1270 = vmatpush1.msra.mxu1 %v586_v56  ;;  %1234 = vmatprep.subr.mxu0 %v515_v57  ;;  %v1332_v55 = vld [vmem:[%s5526_s3 + $0x10] sm:$0xff]  ;;  %v1347_v56 = vld [vmem:[%s5526_s3 + $0x88] sm:$0xff] }
 0x11d   :  { %1271 = vmatprep.subr.mxu1 %v583_v58  ;;  %1235 = vmatpush2.msra.mxu0 %v514_v59  ;;  %v1331_v57 = vld [vmem:[%s5526_s3 + $0x8] sm:$0xff]  ;;  %v1346_v58 = vld [vmem:[%s5526_s3 + $0x80] sm:$0xff] }
 0x11e   :  { %1272 = vmatpush1.msra.mxu1 %v582_v60  ;;  %1236 = vmatprep.subr.mxu0 %v511_v61  ;;  %v1330_v59 = vld [vmem:[%s5526_s3] sm:$0xff]  ;;  %v1376_v60 = vld [vmem:[%s5526_s3 + $0x170] sm:$0xff]  ;;  %v1375_v61 = vld [vmem:[%s5526_s3 + $0x168] sm:$0xff] }
 0x11f   :  { %1273 = vmatprep.subr.mxu1 %v579_v62  ;;  %1237 = vmatpush2.msra.mxu0 %v510_v63  ;;  %v1374_v62 = vld [vmem:[%s5526_s3 + $0x160] sm:$0xff]  ;;  %v1373_v63 = vld [vmem:[%s5526_s3 + $0x158] sm:$0xff] }
 0x120   :  { %1274 = vmatpush1.msra.mxu1 %v578_v0  ;;  %1238 = vmatprep.subr.mxu0 %v507_v1  ;;  %v1372_v0 = vld [vmem:[%s5526_s3 + $0x150] sm:$0xff]  ;;  %v1371_v1 = vld [vmem:[%s5526_s3 + $0x148] sm:$0xff] }
 0x121   :  { %1275 = vmatprep.subr.mxu1 %v575_v2  ;;  %1239 = vmatpush2.msra.mxu0 %v506_v3  ;;  %v682_v2 = vpop.f32.mrf.mxu0  ;;  %v1370_v3 = vld [vmem:[%s5526_s3 + $0x140] sm:$0xff] }
 0x122   :  { %1276 = vmatpush1.msra.mxu1 %v574_v4  ;;  %1240 = vmatprep.subr.mxu0 %v503_v5  ;;  %v1369_v4 = vld [vmem:[%s5526_s3 + $0x138] sm:$0xff]  ;;  %v753_v5 = vpop.f32.mrf.mxu1 }
 0x123   :  { %1277 = vmatprep.subr.mxu1 %v571_v7  ;;  %1241 = vmatpush2.msra.mxu0 %v502_v8  ;;  %v684_v7 = vpop.f32.mrf.mxu0  ;;  %v1368_v8 = vld [vmem:[%s5526_s3 + $0x130] sm:$0xff] }
 0x124   :  { %1278 = vmatpush1.msra.mxu1 %v570_v10  ;;  %1242 = vmatprep.subr.mxu0 %v499_v11  ;;  %v1367_v11 = vld [vmem:[%s5526_s3 + $0x128] sm:$0xff] }
 0x125   :  { %1279 = vmatprep.subr.mxu1 %v567_v12  ;;  %1243 = vmatpush2.msra.mxu0 %v498_v13  ;;  %v755_v12 = vpop.f32.mrf.mxu1  ;;  %v1366_v13 = vld [vmem:[%s5526_s3 + $0x120] sm:$0xff] }
 0x126   :  { %1280 = vmatpush1.msra.mxu1 %v566_v14  ;;  %1244 = vmatprep.subr.mxu0 %v495_v15  ;;  %v754_v14 = vadd.f32 %v753_v5, %v682_v2 }
 0x127   :  { %1281 = vmatprep.subr.mxu1 %v563_v16  ;;  %1245 = vmatpush2.msra.mxu0 %v494_v17  ;;  %v756_v17 = vadd.f32 %v755_v12, %v684_v7 }
 0x128   :  { %1282 = vmatpush1.msra.mxu1 %v562_v18  ;;  %1246 = vmatprep.subr.mxu0 %v491_v19  ;;  %v1365_v18 = vld [vmem:[%s5526_s3 + $0x118] sm:$0xff] }
 0x129   :  { %1283 = vmatprep.subr.mxu1 %v559_v20  ;;  %1247 = vmatpush2.msra.mxu0 %v490_v21 }
 0x12a   :  { %1248 = vmatprep.mubr.f32.mxu0 %v3130_v24  ;;  %1284 = vmatpush1.msra.mxu1 %v558_v22 }
 0x12b   :  { %1249 = vmatmul.mubr.f32.vlgmr.msra.gmra.mxu0 %v3131_v27  ;;  %1285 = vmatprep.subr.mxu1 %v555_v23 }
 0x12c   :  { %1319 = vmatprep.mubr.f32.mxu1 %v3133_v9  ;;  %1286 = vmatpush1.msra.mxu1 %v554_v25 }
 0x12d   :  { %2785 = vmatprep.subr.mxu0 %v1361_v26  ;;  %1320 = vmatmul.mubr.f32.vlgmr.msra.gmra.mxu1 %v3132_v32  ;;  %v1539_v32 = vld [vmem:[%s5527_s4 + $0x70] sm:$0xff] }
 0x12e   :  { %2786 = vmatpush3.msra.mxu0 %v1345_v28  ;;  %1454 = vmatprep.subr.mxu1 %v3133_v9 }
 0x12f   :  { %2787 = vmatprep.subr.mxu0 %v1360_v29  ;;  %1455 = vmatpush1.msra.mxu1 %v1377_v31  ;;  %v1364_v31 = vld [vmem:[%s5526_s3 + $0x110] sm:$0xff] }
 0x130   :  { %2788 = vmatpush3.msra.mxu0 %v1344_v30  ;;  %1456 = vmatprep.subr.mxu1 %v3133_v9  ;;  %v1540_v30 = vld [vmem:[%s5527_s4 + $0x78] sm:$0xff] }
 0x131   :  { %2789 = vmatprep.subr.mxu0 %v1359_v33  ;;  %1457 = vmatpush1.msra.mxu1 %v1376_v60  ;;  %v1363_v33 = vld [vmem:[%s5526_s3 + $0x108] sm:$0xff] }
 0x132   :  { %2790 = vmatpush3.msra.mxu0 %v1343_v34  ;;  %1458 = vmatprep.subr.mxu1 %v3133_v9  ;;  %v1538_v34 = vld [vmem:[%s5527_s4 + $0x68] sm:$0xff] }
 0x133   :  { %2791 = vmatprep.subr.mxu0 %v1358_v35  ;;  %1459 = vmatpush1.msra.mxu1 %v1375_v61  ;;  %v1362_v35 = vld [vmem:[%s5526_s3 + $0x100] sm:$0xff] }
 0x134   :  { %2792 = vmatpush3.msra.mxu0 %v1342_v36  ;;  %1460 = vmatprep.subr.mxu1 %v3133_v9  ;;  %v1537_v36 = vld [vmem:[%s5527_s4 + $0x60] sm:$0xff] }
 0x135   :  { %2793 = vmatprep.subr.mxu0 %v1357_v37  ;;  %1461 = vmatpush1.msra.mxu1 %v1374_v62  ;;  %v1379_v37 = vld [vmem:[%s5526_s3 + $0x188] sm:$0xff] }
 0x136   :  { %2794 = vmatpush3.msra.mxu0 %v1341_v6  ;;  %1462 = vmatprep.subr.mxu1 %v3133_v9  ;;  %v1378_v6 = vld [vmem:[%s5526_s3 + $0x180] sm:$0xff] }
 0x137   :  { %2795 = vmatprep.subr.mxu0 %v1356_v38  ;;  %1463 = vmatpush1.msra.mxu1 %v1373_v63  ;;  %v1536_v38 = vld [vmem:[%s5527_s4 + $0x58] sm:$0xff] }
 0x138   :  { %2796 = vmatpush3.msra.mxu0 %v1340_v39  ;;  %1464 = vmatprep.subr.mxu1 %v3133_v9  ;;  %v1535_v39 = vld [vmem:[%s5527_s4 + $0x50] sm:$0xff] }
 0x139   :  { %2797 = vmatprep.subr.mxu0 %v1355_v40  ;;  %1465 = vmatpush1.msra.mxu1 %v1372_v0  ;;  %v1534_v40 = vld [vmem:[%s5527_s4 + $0x48] sm:$0xff] }
 0x13a   :  { %2798 = vmatpush3.msra.mxu0 %v1339_v41  ;;  %1466 = vmatprep.subr.mxu1 %v3133_v9  ;;  %v1533_v41 = vld [vmem:[%s5527_s4 + $0x40] sm:$0xff] }
 0x13b   :  { %2799 = vmatprep.subr.mxu0 %v1354_v42  ;;  %1467 = vmatpush1.msra.mxu1 %v1371_v1  ;;  %v1532_v42 = vld [vmem:[%s5527_s4 + $0x38] sm:$0xff] }
 0x13c   :  { %2800 = vmatpush3.msra.mxu0 %v1338_v43  ;;  %1468 = vmatprep.subr.mxu1 %v3133_v9  ;;  %v1531_v43 = vld [vmem:[%s5527_s4 + $0x30] sm:$0xff] }
 0x13d   :  { %2801 = vmatprep.subr.mxu0 %v1353_v44  ;;  %1469 = vmatpush1.msra.mxu1 %v1370_v3  ;;  %v1530_v44 = vld [vmem:[%s5527_s4 + $0x28] sm:$0xff] }
 0x13e   :  { %2802 = vmatpush3.msra.mxu0 %v1337_v45  ;;  %1470 = vmatprep.subr.mxu1 %v3133_v9  ;;  %v1529_v45 = vld [vmem:[%s5527_s4 + $0x20] sm:$0xff] }
 0x13f   :  { %2803 = vmatprep.subr.mxu0 %v1352_v46  ;;  %1471 = vmatpush1.msra.mxu1 %v1369_v4  ;;  %v1528_v46 = vld [vmem:[%s5527_s4 + $0x18] sm:$0xff] }
 0x140   :  { %2804 = vmatpush3.msra.mxu0 %v1336_v47  ;;  %1472 = vmatprep.subr.mxu1 %v3133_v9  ;;  %v1527_v47 = vld [vmem:[%s5527_s4 + $0x10] sm:$0xff] }
 0x141   :  { %2805 = vmatprep.subr.mxu0 %v1351_v48  ;;  %1473 = vmatpush1.msra.mxu1 %v1368_v8  ;;  %v1526_v48 = vld [vmem:[%s5527_s4 + $0x8] sm:$0xff] }
 0x142   :  { %2806 = vmatpush3.msra.mxu0 %v1335_v49  ;;  %1474 = vmatprep.subr.mxu1 %v3133_v9  ;;  %v33_v49 = vld [vmem:[%s5528_s1] sm:$0xff] }
 0x143   :  { %2807 = vmatprep.subr.mxu0 %v1350_v50  ;;  %1475 = vmatpush1.msra.mxu1 %v1367_v11  ;;  %v1525_v50 = vld [vmem:[%s5527_s4] sm:$0xff] }
 0x144   :  { %2808 = vmatpush3.msra.mxu0 %v1334_v51  ;;  %v824_v10 = vpop.f32.mrf.mxu0  ;;  %1476 = vmatprep.subr.mxu1 %v3133_v9 }
 0x145   :  { %2809 = vmatprep.subr.mxu0 %v1349_v52  ;;  %v825_v19 = vadd.f32 %v824_v10, %v754_v14  ;;  %1477 = vmatpush1.msra.mxu1 %v1366_v13 }
 0x146   :  { %2810 = vmatpush3.msra.mxu0 %v1333_v53  ;;  %v826_v15 = vpop.f32.mrf.mxu0  ;;  %1478 = vmatprep.subr.mxu1 %v3133_v9  ;;  %v1953_v53 = vld [vmem:[%s5527_s4 + $0x138] sm:$0xff] }
 0x147   :  { %2811 = vmatprep.subr.mxu0 %v1348_v54  ;;  %v895_v16 = vpop.f32.mrf.mxu1  ;;  %v827_v20 = vadd.f32 %v826_v15, %v756_v17  ;;  %1479 = vmatpush1.msra.mxu1 %v1365_v18  ;;  %v1952_v54 = vld [vmem:[%s5527_s4 + $0x130] sm:$0xff]  ;;  %v1629_v15 = vld [vmem:[%s5527_s4 + $0xb8] sm:$0xff]  ;;  %v1627_v17 = vld [vmem:[%s5527_s4 + $0xa8] sm:$0xff] }
 0x148   :  { %2812 = vmatpush3.msra.mxu0 %v1332_v55  ;;  %1480 = vmatprep.subr.mxu1 %v3133_v9  ;;  %v896_v22 = vadd.f32 %v895_v16, %v825_v19  ;;  %v1951_v55 = vld [vmem:[%s5527_s4 + $0x128] sm:$0xff]  ;;  %v1628_v16 = vld [vmem:[%s5527_s4 + $0xb0] sm:$0xff]  ;;  %v1626_v18 = vld [vmem:[%s5527_s4 + $0xa0] sm:$0xff] }
 0x149   :  { %2813 = vmatprep.subr.mxu0 %v1347_v56  ;;  %v897_v21 = vpop.f32.mrf.mxu1  ;;  %1481 = vmatpush1.msra.mxu1 %v1364_v31  ;;  %v1950_v56 = vld [vmem:[%s5527_s4 + $0x120] sm:$0xff]  ;;  %v1625_v19 = vld [vmem:[%s5527_s4 + $0x98] sm:$0xff] }
 0x14a   :  { %2814 = vmatpush3.msra.mxu0 %v1331_v57  ;;  %v898_v24 = vadd.f32 %v897_v21, %v827_v20  ;;  %1482 = vmatprep.subr.mxu1 %v3133_v9  ;;  %v1624_v21 = vld [vmem:[%s5527_s4 + $0x90] sm:$0xff] }
 0x14b   :  { %2815 = vmatprep.subr.mxu0 %v1346_v58  ;;  %1483 = vmatpush1.msra.mxu1 %v1363_v33  ;;  %v2116_v33 = vld [vmem:[%s5527_s4 + $0x168] sm:$0xff] }
 0x14c   :  { %2816 = vmatpush3.msra.mxu0 %v1330_v59  ;;  %1484 = vmatprep.subr.mxu1 %v3133_v9 }
 0x14d   :  { %2904 = vmatprep.subr.mxu0 %v3133_v9  ;;  %1485 = vmatpush1.msra.mxu1 %v1362_v35  ;;  %v2761_v35 = vld [vmem:[%s5529_s5] ss:$0 sm:$0xff] }
 0x14e   :  { %1514 = vmatprep.subr.mxu1 %v3133_v9 }
 0x14f   :  { %1515 = vmatpush2.msra.mxu1 %v1379_v37 }
 0x150   :  { %1516 = vmatprep.subr.mxu1 %v3133_v9 }
 0x151   :  { %1517 = vmatpush2.msra.mxu1 %v1378_v6 }
 0x152   :  { %2939 = vmatprep.subr.mxu1 %v3133_v9 }
 0x166   :  { %v966_v23 = vpop.f32.mrf.mxu0 }
 0x167   :  { %v967_v25 = vadd.f32 %v966_v23, %v896_v22  ;;  %v1623_v22 = vld [vmem:[%s5527_s4 + $0x88] sm:$0xff]  ;;  %v1622_v23 = vld [vmem:[%s5527_s4 + $0x80] sm:$0xff] }
 0x168   :  { %v968_v26 = vpop.f32.mrf.mxu0 }
 0x169   :  { %v969_v27 = vadd.f32 %v968_v26, %v898_v24  ;;  %v1326_v29 = vmax.f32 %v967_v25, 0.0  ;;  %v2122_v24 = vld [vmem:[%s5527_s4 + $0x198] sm:$0xff]  ;;  %v2121_v25 = vld [vmem:[%s5527_s4 + $0x190] sm:$0xff]  ;;  %v2120_v26 = vld [vmem:[%s5527_s4 + $0x188] sm:$0xff] }
 0x16b   :  { %v1327_v28 = vmax.f32 %v969_v27, 0.0  ;;  %v2119_v27 = vld [vmem:[%s5527_s4 + $0x180] sm:$0xff] }
 0x16d   :  { %1448 = vmatprep.mubr.f32.mxu0 %v1327_v28  ;;  %v2118_v28 = vld [vmem:[%s5527_s4 + $0x178] sm:$0xff] }
 0x16e   :  { %1449 = vmatmul.mubr.f32.vlgmr.msra.gmra.mxu0 %v1326_v29 }
 0x16f   :  { %2905 = vmatpush3.msra.mxu0 %v1540_v30  ;;  %2936 = vmatprep.mubr.msk.f32.mxu0 %vm3135_vm0, %v3133_v9 }
 0x170   :  { %2906 = vmatprep.subr.mxu0 %v3133_v9 }
 0x171   :  { %2907 = vmatpush3.msra.mxu0 %v1539_v32  ;;  %v2117_v32 = vld [vmem:[%s5527_s4 + $0x170] sm:$0xff] }
 0x172   :  { %2908 = vmatprep.subr.mxu0 %v3133_v9 }
 0x173   :  { %2909 = vmatpush3.msra.mxu0 %v1538_v34  ;;  %v2115_v34 = vld [vmem:[%s5527_s4 + $0x160] sm:$0xff] }
 0x174   :  { %2910 = vmatprep.subr.mxu0 %v3133_v9 }
 0x175   :  { %2911 = vmatpush3.msra.mxu0 %v1537_v36 }
 0x176   :  { %2912 = vmatprep.subr.mxu0 %v3133_v9 }
 0x177   :  { %2913 = vmatpush3.msra.mxu0 %v1536_v38 }
 0x178   :  { %2914 = vmatprep.subr.mxu0 %v3133_v9 }
 0x179   :  { %2915 = vmatpush3.msra.mxu0 %v1535_v39 }
 0x17a   :  { %2916 = vmatprep.subr.mxu0 %v3133_v9 }
 0x17b   :  { %2917 = vmatpush3.msra.mxu0 %v1534_v40 }
 0x17c   :  { %2918 = vmatprep.subr.mxu0 %v3133_v9 }
 0x17d   :  { %2919 = vmatpush3.msra.mxu0 %v1533_v41 }
 0x17e   :  { %2920 = vmatprep.subr.mxu0 %v3133_v9 }
 0x17f   :  { %2921 = vmatpush3.msra.mxu0 %v1532_v42 }
 0x180   :  { %2922 = vmatprep.subr.mxu0 %v3133_v9 }
 0x181   :  { %2923 = vmatpush3.msra.mxu0 %v1531_v43 }
 0x182   :  { %2924 = vmatprep.subr.mxu0 %v3133_v9 }
 0x183   :  { %2925 = vmatpush3.msra.mxu0 %v1530_v44  ;;  %v1797_v44 = vld [vmem:[%s5527_s4 + $0xf8] sm:$0xff] }
 0x184   :  { %2926 = vmatprep.subr.mxu0 %v3133_v9 }
 0x185   :  { %2927 = vmatpush3.msra.mxu0 %v1529_v45  ;;  %v1796_v45 = vld [vmem:[%s5527_s4 + $0xf0] sm:$0xff] }
 0x186   :  { %2928 = vmatprep.subr.mxu0 %v3133_v9 }
 0x187   :  { %2929 = vmatpush3.msra.mxu0 %v1528_v46  ;;  %v1795_v46 = vld [vmem:[%s5527_s4 + $0xe8] sm:$0xff] }
 0x188   :  { %2930 = vmatprep.subr.mxu0 %v3133_v9 }
 0x189   :  { %2931 = vmatpush3.msra.mxu0 %v1527_v47  ;;  %v1794_v47 = vld [vmem:[%s5527_s4 + $0xe0] sm:$0xff] }
 0x18a   :  { %2932 = vmatprep.subr.mxu0 %v3133_v9  ;;  %v1037_v57 = vpop.f32.mrf.mxu1 }
 0x18b   :  { %2933 = vmatpush3.msra.mxu0 %v1526_v48  ;;  %v1793_v48 = vld [vmem:[%s5527_s4 + $0xd8] sm:$0xff] }
 0x18c   :  { %v37_v51 = vpop.permute.xlu0 %36  ;;  %2934 = vmatprep.subr.mxu0 %v3133_v9  ;;  %v1039_v58 = vpop.f32.mrf.mxu1 }
 0x18d   :  { %v39_v52 = vmul.f32 %v37_v51, %v33_v49  ;;  %2935 = vmatpush3.msra.mxu0 %v1525_v50  ;;  %v1792_v49 = vld [vmem:[%s5527_s4 + $0xd0] sm:$0xff]  ;;  %v1791_v50 = vld [vmem:[%s5527_s4 + $0xc8] sm:$0xff]  ;;  %v1790_v51 = vld [vmem:[%s5527_s4 + $0xc0] sm:$0xff] }
 0x18e   :  { %2983 = vmatprep.subr.mxu0 %v3133_v9 }
 0x18f   :  { %1631 = vrot.lane.b32.xlu0 %v39_v52, %s3136_s13  ;;  %2937 = vmatmul.mubr.f32.vlgmr.msra.gmra.mxu0 %v39_v52  ;;  %v1949_v52 = vld [vmem:[%s5527_s4 + $0x118] sm:$0xff] }
 0x190   :  { %2984 = vmatpush3.msra.mxu0 %v1953_v53  ;;  %2991 = vmatprep.mubr.msk.f32.mxu0 %vm3135_vm0, %v3133_v9  ;;  %v1948_v53 = vld [vmem:[%s5527_s4 + $0x110] sm:$0xff] }
 0x191   :  { %2985 = vmatprep.subr.mxu0 %v3133_v9 }
 0x192   :  { %2986 = vmatpush3.msra.mxu0 %v1952_v54  ;;  %v1947_v54 = vld [vmem:[%s5527_s4 + $0x108] sm:$0xff] }
 0x193   :  { %2987 = vmatprep.subr.mxu0 %v3133_v9 }
 0x194   :  { %2988 = vmatpush3.msra.mxu0 %v1951_v55  ;;  %v1946_v55 = vld [vmem:[%s5527_s4 + $0x100] sm:$0xff] }
 0x195   :  { %2989 = vmatprep.subr.mxu0 %v3133_v9 }
 0x196   :  { %2990 = vmatpush3.msra.mxu0 %v1950_v56 }
 0x197   :  { %3005 = vmatprep.subr.mxu0 %v3133_v9 }
 0x1a9   :  { %v1108_v59 = vpop.f32.mrf.mxu0 }
 0x1aa   :  { %v1109_v62 = vadd.f32 %v1108_v59, %v1037_v57 }
 0x1ab   :  { %v1110_v60 = vpop.f32.mrf.mxu0 }
 0x1ac   :  { %v1111_v63 = vadd.f32 %v1110_v60, %v1039_v58 }
 0x1cc   :  { %v1179_v61 = vpop.f32.mrf.mxu1 }
 0x1cd   :  { %v1180_v1 = vadd.f32 %v1179_v61, %v1109_v62 }
 0x1ce   :  { %v1181_v0 = vpop.f32.mrf.mxu1 }
 0x1cf   :  { %v1182_v3 = vadd.f32 %v1181_v0, %v1111_v63  ;;  %v2114_v0 = vld [vmem:[%s5527_s4 + $0x158] sm:$0xff] }
 0x1eb   :  { %v1250_v2 = vpop.f32.mrf.mxu0 }
 0x1ec   :  { %v1251_v4 = vadd.f32 %v1250_v2, %v1180_v1  ;;  %v2113_v1 = vld [vmem:[%s5527_s4 + $0x150] sm:$0xff]  ;;  %v2112_v2 = vld [vmem:[%s5527_s4 + $0x148] sm:$0xff] }
 0x1ed   :  { %v1252_v5 = vpop.f32.mrf.mxu0  ;;  %v1321_v8 = vpop.f32.mrf.mxu1 }
 0x1ee   :  { %v1253_v7 = vadd.f32 %v1252_v5, %v1182_v3  ;;  %v1322_v10 = vadd.f32 %v1321_v8, %v1251_v4  ;;  %v2111_v3 = vld [vmem:[%s5527_s4 + $0x140] sm:$0xff] }
 0x1ef   :  { %v1323_v11 = vpop.f32.mrf.mxu1  ;;  %v2764_v5 = vld [vmem:[%s5529_s5 + $0x1] ss:$0 sm:$0xff] }
 0x1f0   :  { %v1324_v12 = vadd.f32 %v1323_v11, %v1253_v7  ;;  %v1328_v14 = vmax.f32 %v1322_v10, 0.0 }
 0x1f2   :  { %v1329_v13 = vmax.f32 %v1324_v12, 0.0 }
 0x1f4   :  { %2760 = vmatprep.mubr.msk.f32.mxu1 %vm1380_vm1, %v1329_v13 }
 0x1f5   :  { %1519 = vmatmul.mubr.f32.vlgmr.msra.gmra.mxu1 %v1328_v14 }
 0x1f6   :  { %2940 = vmatpush3.msra.mxu1 %v1629_v15  ;;  %2947 = vmatprep.mubr.msk.f32.mxu1 %vm3135_vm0, %v3133_v9 }
 0x1f7   :  { %2941 = vmatprep.subr.mxu1 %v3133_v9 }
 0x1f8   :  { %2942 = vmatpush3.msra.mxu1 %v1628_v16 }
 0x1f9   :  { %2943 = vmatprep.subr.mxu1 %v3133_v9 }
 0x1fa   :  { %2944 = vmatpush3.msra.mxu1 %v1627_v17 }
 0x1fb   :  { %2945 = vmatprep.subr.mxu1 %v3133_v9 }
 0x1fc   :  { %2946 = vmatpush3.msra.mxu1 %v1626_v18  ;;  %v2770_v18 = vld [vmem:[%s5529_s5 + $0x3] ss:$0 sm:$0xff] }
 0x1fd   :  { %2950 = vmatprep.subr.mxu1 %v3133_v9 }
 0x201   :  { %v5242_v20 = vpop.permute.xlu0 %1631 }
 0x202   :  { %2948 = vmatmul.mubr.msk.f32.vlgmr.msra.gmra.mxu1 %vm1633_vm2, %v5242_v20  ;;  %2992 = vmatmul.mubr.msk.f32.vlgmr.msra.gmra.mxu0 %vm1633_vm2, %v5242_v20 }
 0x203   :  { %2951 = vmatpush3.msra.mxu1 %v1625_v19  ;;  %2958 = vmatprep.mubr.msk.f32.mxu1 %vm3135_vm0, %v3133_v9 }
 0x204   :  { %2952 = vmatprep.subr.mxu1 %v3133_v9  ;;  %3021 = vmatprep.mubr.msk.f32.mxu0 %vm3135_vm0, %v3133_v9 }
 0x205   :  { %2953 = vmatpush3.msra.mxu1 %v1624_v21  ;;  %3006 = vmatpush3.msra.mxu0 %v2122_v24 }
 0x206   :  { %2954 = vmatprep.subr.mxu1 %v3133_v9  ;;  %3007 = vmatprep.subr.mxu0 %v3133_v9 }
 0x207   :  { %2955 = vmatpush3.msra.mxu1 %v1623_v22  ;;  %3008 = vmatpush3.msra.mxu0 %v2121_v25 }
 0x208   :  { %2956 = vmatprep.subr.mxu1 %v3133_v9  ;;  %3009 = vmatprep.subr.mxu0 %v3133_v9 }
 0x209   :  { %2957 = vmatpush3.msra.mxu1 %v1622_v23  ;;  %3010 = vmatpush3.msra.mxu0 %v2120_v26 }
 0x20a   :  { %2961 = vmatprep.subr.mxu1 %v3133_v9  ;;  %3011 = vmatprep.subr.mxu0 %v3133_v9 }
 0x20b   :  { %3012 = vmatpush3.msra.mxu0 %v2119_v27 }
 0x20c   :  { %3013 = vmatprep.subr.mxu0 %v3133_v9 }
 0x20d   :  { %3014 = vmatpush3.msra.mxu0 %v2118_v28 }
 0x20e   :  { %3015 = vmatprep.subr.mxu0 %v3133_v9 }
 0x20f   :  { %3016 = vmatpush3.msra.mxu0 %v2117_v32 }
 0x210   :  { %3017 = vmatprep.subr.mxu0 %v3133_v9 }
 0x211   :  { %3018 = vmatpush3.msra.mxu0 %v2116_v33 }
 0x212   :  { %3019 = vmatprep.subr.mxu0 %v3133_v9 }
 0x213   :  { %3020 = vmatpush3.msra.mxu0 %v2115_v34 }
 0x214   :  { %3046 = vmatprep.subr.mxu0 %v3133_v9 }
 0x22e   :  { %v2817_v29 = vpop.f32.mrf.mxu0 }
 0x230   :  { %v2818_v30 = vpop.f32.mrf.mxu0 }
 0x231   :  { %v5285_v31 = vadd.f32 %v2818_v30, %v2817_v29  ;;  %v2767_v29 = vld [vmem:[%s5529_s5 + $0x2] ss:$0 sm:$0xff] }
 0x24f   :  { %v1612_v36 = vpop.f32.mrf.mxu0 }
 0x250   :  { %v1613_v37 = vadd.f32 %v2761_v35, %v1612_v36 }
 0x251   :  { %v2938_v6 = vpop.f32.mrf.mxu0 }
 0x252   :  { %v1616_v38 = vsub.f32 0.0, %v1613_v37 }
 0x254   :  { %v1617_v39 = vmul.f32 1.442695, %v1616_v38 }
 0x256   :  { %3094 = vpow2.f32 %v1617_v39 }
 0x263   :  { %v3095_v40 = vpop.eup %3094 }
 0x264   :  { %v1619_v41 = vadd.f32 1.0, %v3095_v40 }
 0x266   :  { %3096 = vrcp.f32 %v1619_v41 }
 0x273   :  { %v3097_v42 = vpop.eup %3096 }
 0x274   :  { %v1621_v43 = vmul.f32 %v3097_v42, %v1613_v37  ;;  %v2285_v42 = vld [vmem:[%s5527_s4 + $0x1b8] sm:$0xff] }
 0x276   :  { %2959 = vmatmul.mubr.msk.f32.vlgmr.msra.gmra.mxu1 %vm1633_vm2, %v1621_v43 }
 0x277   :  { %2962 = vmatpush3.msra.mxu1 %v1797_v44  ;;  %2969 = vmatprep.mubr.msk.f32.mxu1 %vm3135_vm0, %v3133_v9  ;;  %v2366_v44 = vld [vmem:[%s5527_s4 + $0x1d0] sm:$0xff] }
 0x278   :  { %2963 = vmatprep.subr.mxu1 %v3133_v9 }
 0x279   :  { %2964 = vmatpush3.msra.mxu1 %v1796_v45  ;;  %v2283_v45 = vld [vmem:[%s5527_s4 + $0x1a8] sm:$0xff] }
 0x27a   :  { %2965 = vmatprep.subr.mxu1 %v3133_v9 }
 0x27b   :  { %2966 = vmatpush3.msra.mxu1 %v1795_v46  ;;  %v2365_v46 = vld [vmem:[%s5527_s4 + $0x1c8] sm:$0xff] }
 0x27c   :  { %2967 = vmatprep.subr.mxu1 %v3133_v9 }
 0x27d   :  { %2968 = vmatpush3.msra.mxu1 %v1794_v47  ;;  %v2282_v47 = vld [vmem:[%s5527_s4 + $0x1a0] sm:$0xff] }
 0x27e   :  { %2970 = vmatmul.mubr.msk.f32.vlgmr.msra.gmra.mxu1 %vm1633_vm2, %v5242_v20  ;;  %2972 = vmatprep.subr.mxu1 %v3133_v9 }
 0x27f   :  { %2973 = vmatpush3.msra.mxu1 %v1793_v48  ;;  %2980 = vmatprep.mubr.msk.f32.mxu1 %vm3135_vm0, %v3133_v9  ;;  %v2364_v48 = vld [vmem:[%s5527_s4 + $0x1c0] sm:$0xff] }
 0x280   :  { %2974 = vmatprep.subr.mxu1 %v3133_v9 }
 0x281   :  { %2975 = vmatpush3.msra.mxu1 %v1792_v49 }
 0x282   :  { %2976 = vmatprep.subr.mxu1 %v3133_v9 }
 0x283   :  { %2977 = vmatpush3.msra.mxu1 %v1791_v50  ;;  %v2774_v50 = vld [vmem:[%s5529_s5 + $0x4] ss:$0 sm:$0xff] }
 0x284   :  { %2978 = vmatprep.subr.mxu1 %v3133_v9 }
 0x285   :  { %2979 = vmatpush3.msra.mxu1 %v1790_v51 }
 0x286   :  { %2981 = vmatmul.mubr.msk.f32.vlgmr.msra.gmra.mxu1 %vm1633_vm2, %v1621_v43  ;;  %2994 = vmatprep.subr.mxu1 %v3133_v9 }
 0x287   :  { %2995 = vmatpush3.msra.mxu1 %v1949_v52  ;;  %3002 = vmatprep.mubr.msk.f32.mxu1 %vm3135_vm0, %v3133_v9 }
 0x288   :  { %2996 = vmatprep.subr.mxu1 %v3133_v9 }
 0x289   :  { %2997 = vmatpush3.msra.mxu1 %v1948_v53 }
 0x28a   :  { %2998 = vmatprep.subr.mxu1 %v3133_v9 }
 0x28b   :  { %2999 = vmatpush3.msra.mxu1 %v1947_v54 }
 0x28c   :  { %3000 = vmatprep.subr.mxu1 %v3133_v9 }
 0x28d   :  { %3001 = vmatpush3.msra.mxu1 %v1946_v55 }
 0x28e   :  { %3003 = vmatmul.mubr.msk.f32.vlgmr.msra.gmra.mxu1 %vm1633_vm2, %v1621_v43  ;;  %3024 = vmatprep.subr.mxu1 %v3133_v9  ;;  %v2367_v43 = vld [vmem:[%s5527_s4 + $0x1d8] sm:$0xff] }
 0x28f   :  { %3032 = vmatprep.mubr.msk.f32.mxu1 %vm3135_vm0, %v3133_v9  ;;  %3025 = vmatpush3.msra.mxu1 %v2114_v0  ;;  %v2454_v0 = vld [vmem:[%s5527_s4 + $0x1e8] sm:$0xff] }
 0x290   :  { %3026 = vmatprep.subr.mxu1 %v3133_v9 }
 0x291   :  { %3027 = vmatpush3.msra.mxu1 %v2113_v1  ;;  %v2453_v1 = vld [vmem:[%s5527_s4 + $0x1e0] sm:$0xff] }
 0x292   :  { %3028 = vmatprep.subr.mxu1 %v3133_v9 }
 0x293   :  { %3029 = vmatpush3.msra.mxu1 %v2112_v2  ;;  %v2775_v2 = vld [vmem:[%s5529_s5 + $0x5] ss:$0 sm:$0xff] }
 0x294   :  { %3030 = vmatprep.subr.mxu1 %v3133_v9 }
 0x295   :  { %3031 = vmatpush3.msra.mxu1 %v2111_v3 }
 0x296   :  { %3035 = vmatprep.subr.mxu1 %v3133_v9 }
 0x2b5   :  { %v1520_v56 = vpop.f32.mrf.mxu1 }
 0x2b6   :  { %v1521_v57 = vadd.f32 %v5285_v31, %v1520_v56 }
 0x2b7   :  { %v1522_v58 = vpop.f32.mrf.mxu1 }
 0x2b8   :  { %v1524_v59 = vmax.f32 %v1521_v57, 0.0 }
 0x2ba   :  { %3022 = vmatmul.mubr.msk.f32.vlgmr.msra.gmra.mxu0 %vm2123_vm3, %v1524_v59 }
 0x2bb   :  { %3054 = vmatprep.mubr.msk.f32.mxu0 %vm3135_vm0, %v3133_v9  ;;  %3047 = vmatpush3.msra.mxu0 %v2367_v43 }
 0x2bc   :  { %3048 = vmatprep.subr.mxu0 %v3133_v9 }
 0x2bd   :  { %3049 = vmatpush3.msra.mxu0 %v2366_v44 }
 0x2be   :  { %3050 = vmatprep.subr.mxu0 %v3133_v9 }
 0x2bf   :  { %3051 = vmatpush3.msra.mxu0 %v2365_v46 }
 0x2c0   :  { %3052 = vmatprep.subr.mxu0 %v3133_v9 }
 0x2c1   :  { %3053 = vmatpush3.msra.mxu0 %v2364_v48 }
 0x2c2   :  { %v1702_v60 = vpop.f32.mrf.mxu1  ;;  %v2020_v61 = vpop.f32.mrf.mxu0  ;;  %3075 = vmatprep.subr.mxu0 %v3133_v9 }
 0x2c4   :  { %v2949_v62 = vpop.f32.mrf.mxu1  ;;  %v2993_v63 = vpop.f32.mrf.mxu0 }
 0x2c5   :  { %v2456_v62 = vld [vmem:[%s5527_s4 + $0x1f8] sm:$0xff]  ;;  %v2455_v63 = vld [vmem:[%s5527_s4 + $0x1f0] sm:$0xff] }
 0x336   :  { %v1775_v4 = vpop.f32.mrf.mxu1 }
 0x337   :  { %v1776_v7 = vadd.f32 %v1775_v4, %v1702_v60  ;;  %v2458_v60 = vld [vmem:[%s5527_s4 + $0x208] sm:$0xff] }
 0x338   :  { %v2960_v8 = vpop.f32.mrf.mxu1 }
 0x339   :  { %v1784_v10 = vadd.f32 %v2764_v5, %v1776_v7 }
 0x33b   :  { %v1785_v11 = vsub.f32 0.0, %v1784_v10 }
 0x33d   :  { %v1786_v13 = vmul.f32 1.442695, %v1785_v11 }
 0x33e   :  { %v1864_v12 = vpop.f32.mrf.mxu1 }
 0x33f   :  { %3098 = vpow2.f32 %v1786_v13  ;;  %v2616_v13 = vld [vmem:[%s5527_s4 + $0x220] sm:$0xff] }
 0x340   :  { %v2971_v14 = vpop.f32.mrf.mxu1 }
 0x341   :  { %v2615_v14 = vld [vmem:[%s5527_s4 + $0x218] sm:$0xff] }
 0x346   :  { %v1934_v15 = vpop.f32.mrf.mxu1 }
 0x347   :  { %v1935_v28 = vadd.f32 %v1934_v15, %v1864_v12  ;;  %v2617_v12 = vld [vmem:[%s5527_s4 + $0x228] sm:$0xff]  ;;  %v2614_v15 = vld [vmem:[%s5527_s4 + $0x210] sm:$0xff] }
 0x348   :  { %v2982_v16 = vpop.f32.mrf.mxu1 }
 0x349   :  { %v1943_v31 = vadd.f32 %v2767_v29, %v1935_v28  ;;  %v2782_v28 = vld [vmem:[%s5529_s5 + $0x8] ss:$0 sm:$0xff] }
 0x34c   :  { %v3099_v21 = vpop.eup %3098 }
 0x34d   :  { %v1788_v24 = vadd.f32 1.0, %v3099_v21 }
 0x34e   :  { %v2090_v17 = vpop.f32.mrf.mxu1 }
 0x34f   :  { %v2091_v19 = vadd.f32 %v2090_v17, %v2020_v61  ;;  %3100 = vrcp.f32 %v1788_v24  ;;  %v2457_v61 = vld [vmem:[%s5527_s4 + $0x200] sm:$0xff] }
 0x350   :  { %v3004_v22 = vpop.f32.mrf.mxu1  ;;  %v2781_v17 = vld [vmem:[%s5529_s5 + $0x7] ss:$0 sm:$0xff] }
 0x351   :  { %v2099_v23 = vadd.f32 %v2770_v18, %v2091_v19 }
 0x353   :  { %v2771_v25 = vadd.f32 -1.0, %v2099_v23 }
 0x355   :  { %v2101_v26 = vsub.f32 0.0, %v2771_v25 }
 0x357   :  { %v2102_v27 = vmul.f32 1.442695, %v2101_v26 }
 0x359   :  { %3102 = vpow2.f32 %v2102_v27 }
 0x35c   :  { %v3101_v30 = vpop.eup %3100 }
 0x35d   :  { %v1944_v33 = vmul.f32 %v3101_v30, %v1943_v31 }
 0x366   :  { %v3103_v32 = vpop.eup %3102 }
 0x367   :  { %v2104_v34 = vadd.f32 1.0, %v3103_v32 }
 0x369   :  { %3104 = vrcp.f32 %v2104_v34 }
 0x36a   :  { %3106 = vtanh.f32 %v1944_v33  ;;  %v2700_v33 = vlaneseq }
 0x36c   :  { %v2701_v34 = vand.u32 127, %v2700_v33 }
 0x376   :  { %v3105_v35 = vpop.eup %3104 }
 0x377   :  { %v2107_v36 = vsub.f32 1.0, %v3105_v35  ;;  %v3107_v37 = vpop.eup %3106 }
 0x378   :  { %v2106_v6 = vmul.f32 %v3107_v37, %v3105_v35 }
 0x379   :  { %v2109_v38 = vmul.f32 %v2107_v36, %v5242_v20  ;;  %v2284_v20 = vld [vmem:[%s5527_s4 + $0x1b0] sm:$0xff] }
 0x37a   :  { %v2193_v39 = vpop.f32.mrf.mxu0 }
 0x37b   :  { %v5392_v40 = vadd.f32 %v2109_v38, %v2106_v6 }
 0x37c   :  { %v3023_v41 = vpop.f32.mrf.mxu0 }
 0x37d   :  { %3033 = vmatmul.mubr.msk.f32.vlgmr.msra.gmra.mxu1 %vm1633_vm2, %v5392_v40 }
 0x37e   :  { %3043 = vmatprep.mubr.msk.f32.mxu1 %vm3135_vm0, %v3133_v9  ;;  %3036 = vmatpush3.msra.mxu1 %v2285_v42 }
 0x37f   :  { %3037 = vmatprep.subr.mxu1 %v3133_v9 }
 0x380   :  { %3038 = vmatpush3.msra.mxu1 %v2284_v20 }
 0x381   :  { %3039 = vmatprep.subr.mxu1 %v3133_v9 }
 0x382   :  { %3040 = vmatpush3.msra.mxu1 %v2283_v45 }
 0x383   :  { %3041 = vmatprep.subr.mxu1 %v3133_v9 }
 0x384   :  { %3042 = vmatpush3.msra.mxu1 %v2282_v47  ;;  %v2777_v47 = vld [vmem:[%s5529_s5 + $0x6] ss:$0 sm:$0xff] }
 0x385   :  { %3057 = vmatprep.subr.mxu1 %v3133_v9 }
 0x43d   :  { %v2266_v49 = vpop.f32.mrf.mxu1 }
 0x43e   :  { %v2267_v51 = vadd.f32 %v2266_v49, %v2193_v39 }
 0x43f   :  { %v3034_v52 = vpop.f32.mrf.mxu1 }
 0x440   :  { %v2275_v53 = vadd.f32 %v2774_v50, %v2267_v51 }
 0x442   :  { %v2276_v54 = vsub.f32 0.0, %v2275_v53 }
 0x444   :  { %v2277_v55 = vmul.f32 1.442695, %v2276_v54 }
 0x446   :  { %3108 = vpow2.f32 %v2277_v55 }
 0x453   :  { %v3109_v56 = vpop.eup %3108 }
 0x454   :  { %v2279_v57 = vadd.f32 1.0, %v3109_v56 }
 0x456   :  { %3110 = vrcp.f32 %v2279_v57 }
 0x463   :  { %v3111_v58 = vpop.eup %3110 }
 0x464   :  { %v2281_v59 = vmul.f32 %v3111_v58, %v2275_v53 }
 0x466   :  { %3044 = vmatmul.mubr.msk.f32.vlgmr.msra.gmra.mxu1 %vm1633_vm2, %v2281_v59  ;;  %3055 = vmatmul.mubr.msk.f32.vlgmr.msra.gmra.mxu0 %vm1633_vm2, %v2281_v59 }
 0x467   :  { %3058 = vmatpush3.msra.mxu1 %v2458_v60  ;;  %3065 = vmatprep.mubr.msk.f32.mxu1 %vm3135_vm0, %v3133_v9 }
 0x468   :  { %3059 = vmatprep.subr.mxu1 %v3133_v9  ;;  %3083 = vmatprep.mubr.msk.f32.mxu0 %vm3135_vm0, %v3133_v9 }
 0x469   :  { %3060 = vmatpush3.msra.mxu1 %v2457_v61  ;;  %3076 = vmatpush3.msra.mxu0 %v2617_v12 }
 0x46a   :  { %3061 = vmatprep.subr.mxu1 %v3133_v9  ;;  %3077 = vmatprep.subr.mxu0 %v3133_v9 }
 0x46b   :  { %3062 = vmatpush3.msra.mxu1 %v2456_v62  ;;  %3078 = vmatpush3.msra.mxu0 %v2616_v13 }
 0x46c   :  { %3063 = vmatprep.subr.mxu1 %v3133_v9  ;;  %3079 = vmatprep.subr.mxu0 %v3133_v9 }
 0x46d   :  { %3064 = vmatpush3.msra.mxu1 %v2455_v63  ;;  %3080 = vmatpush3.msra.mxu0 %v2615_v14 }
 0x46e   :  { %3066 = vmatmul.mubr.msk.f32.vlgmr.msra.gmra.mxu1 %vm1633_vm2, %v5392_v40  ;;  %3068 = vmatprep.subr.mxu1 %v3133_v9 }
 0x46f   :  { %3069 = vmatpush3.msra.mxu1 %v2454_v0  ;;  %3072 = vmatprep.mubr.msk.f32.mxu1 %vm3135_vm0, %v3133_v9 }
 0x470   :  { %3070 = vmatprep.subr.mxu1 %v3133_v9  ;;  %3081 = vmatprep.subr.mxu0 %v3133_v9 }
 0x471   :  { %3071 = vmatpush3.msra.mxu1 %v2453_v1  ;;  %3082 = vmatpush3.msra.mxu0 %v2614_v15 }
 0x526   :  { %v2360_v3 = vpop.f32.mrf.mxu1  ;;  %v5469_v4 = vpop.f32.mrf.mxu0 }
 0x527   :  { %v2361_v5 = vadd.f32 %v2775_v2, %v2360_v3  ;;  %v2440_v48 = vadd.f32 %v2777_v47, %v5469_v4 }
 0x528   :  { %v3045_v7 = vpop.f32.mrf.mxu1  ;;  %v3056_v8 = vpop.f32.mrf.mxu0 }
 0x529   :  { %3073 = vmatmul.mubr.msk.f32.vlgmr.msra.gmra.mxu1 %vm1380_vm1, %v2361_v5  ;;  %v2444_v49 = vand.u32 2147483647, %v2440_v48  ;;  %v2443_v4 = vmax.f32 %v2440_v48, 0.0 }
 0x52b   :  { %v2445_v50 = vsub.f32 0.0, %v2444_v49 }
 0x52d   :  { %v2446_v51 = vmul.f32 1.442695, %v2445_v50 }
 0x52e   :  { %v2525_v10 = vpop.f32.mrf.mxu1 }
 0x530   :  { %v3067_v11 = vpop.f32.mrf.mxu1 }
 0x5e9   :  { %v2598_v16 = vpop.f32.mrf.mxu1 }
 0x5ea   :  { %v2599_v18 = vadd.f32 %v2598_v16, %v2525_v10 }
 0x5eb   :  { %v3074_v19 = vpop.f32.mrf.mxu1 }
 0x5ec   :  { %v2607_v21 = vadd.f32 %v2781_v17, %v2599_v18 }
 0x5ee   :  { %v2608_v22 = vsub.f32 0.0, %v2607_v21 }
 0x5f0   :  { %v2609_v23 = vmul.f32 1.442695, %v2608_v22 }
 0x5f2   :  { %3112 = vpow2.f32 %v2609_v23 }
 0x5ff   :  { %v3113_v24 = vpop.eup %3112 }
 0x600   :  { %v2611_v25 = vadd.f32 1.0, %v3113_v24 }
 0x602   :  { %3114 = vrcp.f32 %v2611_v25 }
 0x60f   :  { %v3115_v26 = vpop.eup %3114 }
 0x610   :  { %v2613_v27 = vmul.f32 %v3115_v26, %v2607_v21 }
 0x612   :  { %3084 = vmatmul.mubr.msk.f32.vlgmr.msra.gmra.mxu0 %vm1633_vm2, %v2613_v27 }
 0x6d2   :  { %v2692_v29 = vpop.f32.mrf.mxu0 }
 0x6d3   :  { %v2693_v30 = vadd.f32 %v2782_v28, %v2692_v29 }
 0x6d4   :  { %v3085_v31 = vpop.f32.mrf.mxu0 }
 0x6d5   :  { %v2697_v32 = vsel %vm2696_vm4, %v2693_v30, -inf }
 0x6d6   :  { %2698 = vmax.xlane.f32.xlu1 %v2697_v32 }
 0x75f   :  { %v2699_v35 = vpop.xlane.xlu1 %2698 }
 0x760   :  { %vm2702_vm5 = vcmp.ge.f32.partialorder %v2693_v30, %v2699_v35  ;;  %v2722_v36 = vsub.f32 %v2693_v30, %v2699_v35 }
 0x761   :  { %v2703_v37 = vsel %vm2702_vm5, %v2701_v34, 6 }
 0x762   :  { %v2723_v6 = vmul.f32 1.442695, %v2722_v36  ;;  %v2704_v38 = vsel %vm2696_vm4, %v2703_v37, 2147483647 }
 0x763   :  { %v2706_v39 = vshra.s32 %v2704_v38, 16  ;;  %v2705_v20 = vand.u32 65535, %v2704_v38 }
 0x764   :  { %3116 = vpow2.f32 %v2723_v6 }
 0x765   :  { %v2708_v41 = vcvt.s32.f32 %v2706_v39  ;;  %v2707_v45 = vcvt.s32.f32 %v2705_v20  ;;  %3118 = vpow2.f32 %v2446_v51 }
 0x767   :  { %2709 = vmin.xlane.f32.xlu1 %v2708_v41 }
 0x771   :  { %v3117_v42 = vpop.eup %3116 }
 0x772   :  { %v2725_v43 = vsel %vm2696_vm4, %v3117_v42, 0.0  ;;  %v3119_v53 = vpop.eup %3118 }
 0x773   :  { %2726 = vadd.xlane.f32.xlu0 %v2725_v43  ;;  %v2448_v55 = vadd.f32 1.0, %v3119_v53 }
 0x7f0   :  { %v2710_v44 = vpop.xlane.xlu1 %2709 }
 0x7f1   :  { %vm2711_vm6 = vcmp.eq.f32.partialorder %v2708_v41, %v2710_v44  ;;  %v2716_v56 = vcvt.f32.s32 %v2710_v44 }
 0x7f2   :  { %v2712_v46 = vsel %vm2711_vm6, %v2707_v45, inf }
 0x7f3   :  { %2713 = vmin.xlane.f32.xlu1 %v2712_v46 }
 0x7fc   :  { %v2727_v52 = vpop.xlane.xlu0 %2726 }
 0x7fd   :  { %3120 = vlog2.f32 %v2727_v52 }
 0x7fe   :  { %3122 = vlog2.f32 %v2448_v55 }
 0x804   :  { %2740 = vrot.lane.b32.xlu1 %v2361_v5, %s3137_s21 }
 0x808   :  { %2745 = vrot.lane.b32.xlu1 %v5392_v40, %s3138_s0  ;;  %v2717_v40 = vshll.u32 %v2716_v56, 16 }
 0x80a   :  { %v3121_v54 = vpop.eup %3120 }
 0x80b   :  { %v2729_v57 = vmul.f32 0.6931472, %v3121_v54  ;;  %v3123_v2 = vpop.eup %3122 }
 0x80c   :  { %v2450_v3 = vmul.f32 0.6931472, %v3123_v2 }
 0x80d   :  { %v2730_v59 = vadd.f32 %v2729_v57, %v2699_v35 }
 0x80e   :  { %v2451_v5 = vadd.f32 %v2450_v3, %v2443_v4 }
 0x80f   :  { %v2731_v62 = vsub.f32 %v2693_v30, %v2730_v59 }
 0x810   :  { %v2452_v7 = vadd.f32 0.1, %v2451_v5 }
 0x87c   :  { %v2714_v58 = vpop.xlane.xlu1 %2713 }
 0x87d   :  { %v2715_v60 = vcvt.f32.s32 %v2714_v58 }
 0x87f   :  { %v2718_v61 = vadd.s32 %v2717_v40, %v2715_v60 }
 0x880   :  { %v2741_v8 = vpop.permute.xlu1 %2740 }
 0x881   :  { %vm2719_vm7 = vcmp.eq.s32.totalorder %v2701_v34, %v2718_v61 }
 0x882   :  { %v2784_v63 = vsel %vm2719_vm7, 1.0, %v3133_v9 }
 0x883   :  { %v2732_v0 = vmul.f32 %v2784_v63, %v2731_v62  ;;  %2737 = vst.msk [vmem:[%s5530_s6] sm:$0xff] %vm2696_vm4, %v2784_v63 }
 0x884   :  { %v2746_v10 = vpop.permute.xlu1 %2745 }
 0x885   :  { %v2733_v1 = vsel %vm2696_vm4, %v2732_v0, 0.0 }
 0x886   :  { %2734 = vadd.xlane.f32.xlu1 %v2733_v1 }
 0x897   :  { %2751 = vrot.lane.b32.xlu1 %v2452_v7, %s3139_s27 }
 0x90f   :  { %v2735_v9 = vpop.xlane.xlu1 %2734 }
 0x910   :  { %2739 = vst.msk [vmem:[%s5530_s6] sm:$0xff] %vm2738_vm8, %v2735_v9 }
 0x911   :  { %2744 = vst.msk [vmem:[%s5530_s6] sm:$0xff] %vm2743_vm9, %v2741_v8 }
 0x912   :  { %2749 = vst.msk [vmem:[%s5530_s6] sm:$0xff] %vm2748_vm10, %v2746_v10 }
 0x913   :  { %v2752_v11 = vpop.permute.xlu1 %2751 }
 0x914   :  { %2755 = vst.msk [vmem:[%s5530_s6] sm:$0xff] %vm2754_vm11, %v2752_v11 }

</bundles_post_ra>
